<compile_context>
chip_gen: v6e
topology: v6e:2x2x1
jax: 0.10.0
libtpu: 0.0.40
codegen_flags: <defaults>
</compile_context>

<pallas_src>
import jax
import jax.numpy as jnp
from jax import lax
from jax.experimental import pallas as pl
from jax.experimental.pallas import tpu as pltpu

IN_FEATURES = 1024
OUT_FEATURES = 1000
PADDED_OUT = 1024  # next multiple of 128 >= OUT_FEATURES (lane-aligned)


def linear_add_relu_kernel(x_ref, w_ref, b_ref, other_ref, o_ref):
    # x_ref:     (1, 1024)        VMEM
    # w_ref:     (block_n, 1024)  VMEM, PyTorch layout (out_features, in_features)
    # b_ref:     (1, block_n)     VMEM
    # other_ref: (1, block_n)     VMEM
    # o_ref:     (1, block_n)     VMEM
    y = lax.dot_general(
        x_ref[...], w_ref[...],
        dimension_numbers=(((1,), (1,)), ((), ())),   # contract K with K on the MXU
        preferred_element_type=jnp.float32,
    )                                                  # (1, block_n), f32 accumulate
    y = y + b_ref[...] + other_ref[...]
    o_ref[...] = jnp.maximum(y, 0.0).astype(o_ref.dtype)


def _n_parallel_blocks():
    """2 on v7x (2 TensorCores/chip) to shard the weight DMA across cores, else 1."""
    try:
        kind = jax.devices()[0].device_kind.lower()
        if "v7" in kind or "7x" in kind:
            return 2
    except Exception:
        pass
    return 1


def prepare_params(weight, bias):
    """One-time (outside the per-call path): zero-pad out-features 1000 -> 1024."""
    w_pad = jnp.zeros((PADDED_OUT, IN_FEATURES), weight.dtype)
    w_pad = w_pad.at[:OUT_FEATURES, :].set(weight)
    b_pad = jnp.zeros((1, PADDED_OUT), bias.dtype)
    b_pad = b_pad.at[0, :OUT_FEATURES].set(bias)
    return w_pad, b_pad


def model_forward(x1, other, w_pad, b_pad, n_blocks=1):
    """x1: (1024,), other: (1000,); w_pad/b_pad from prepare_params."""
    x2d = x1.reshape(1, IN_FEATURES)
    other2d = jnp.zeros((1, PADDED_OUT), other.dtype)
    other2d = other2d.at[0, :OUT_FEATURES].set(other)   # 4 KB pad, negligible

    block_n = PADDED_OUT // n_blocks
    nbytes = 4 * (w_pad.size + x2d.size + b_pad.size + 2 * other2d.size)
    cost = pl.CostEstimate(
        flops=2 * IN_FEATURES * PADDED_OUT, transcendentals=0, bytes_accessed=nbytes)

    out = pl.pallas_call(
        linear_add_relu_kernel,
        out_shape=jax.ShapeDtypeStruct((1, PADDED_OUT), jnp.float32),
        grid=(n_blocks,),
        in_specs=[
            pl.BlockSpec((1, IN_FEATURES), lambda j: (0, 0)),        # x (same every step)
            pl.BlockSpec((block_n, IN_FEATURES), lambda j: (j, 0)),  # weight N-slab
            pl.BlockSpec((1, block_n), lambda j: (0, j)),            # bias
            pl.BlockSpec((1, block_n), lambda j: (0, j)),            # other
        ],
        out_specs=pl.BlockSpec((1, block_n), lambda j: (0, j)),
        compiler_params=pltpu.CompilerParams(
            dimension_semantics=("parallel",)),
        cost_estimate=cost,
    )(x2d, w_pad, b_pad, other2d)
    return out[0, :OUT_FEATURES]


if __name__ == "__main__":
    key = jax.random.PRNGKey(0)
    k_w, k_b, k_x, k_o = jax.random.split(key, 4)

    # Deterministic "Linear" parameters (PyTorch-style shapes).
    bound = 1.0 / (IN_FEATURES ** 0.5)
    weight = jax.random.uniform(
        k_w, (OUT_FEATURES, IN_FEATURES), jnp.float32, -bound, bound)
    bias = jax.random.uniform(
        k_b, (OUT_FEATURES,), jnp.float32, -bound, bound)

    # Inputs matching the module's globals: x1 ~ N(0,1) (1024,), other (1000,).
    x1 = jax.random.normal(k_x, (IN_FEATURES,), jnp.float32)
    other = jax.random.normal(k_o, (OUT_FEATURES,), jnp.float32)

    w_pad, b_pad = prepare_params(weight, bias)      # once, outside the forward path
    n_blocks = _n_parallel_blocks()                  # 2 on v7x, else 1

    out = model_forward(x1, other, w_pad, b_pad, n_blocks=n_blocks)
    jax.block_until_ready(out)

    # Reference check in plain JAX.
    ref = jnp.maximum(x1 @ weight.T + bias + other, 0.0)
    assert out.shape == (OUT_FEATURES,)
    assert jnp.allclose(out, ref, atol=1e-4, rtol=1e-4)

    print("KERNEL_OK")
</pallas_src>

<mosaic_0001>
module attributes {stable_mosaic.version = 11 : i64} {
  func.func @linear_add_relu_kernel(%arg0: i32, %arg1: memref<1x1024xf32, #tpu.memory_space<vmem>>, %arg2: memref<1024x1024xf32, #tpu.memory_space<vmem>>, %arg3: memref<1x1024xf32, #tpu.memory_space<vmem>>, %arg4: memref<1x1024xf32, #tpu.memory_space<vmem>>, %arg5: memref<1x1024xf32, #tpu.memory_space<vmem>>) attributes {dimension_semantics = [#tpu.dimension_semantics<parallel>], iteration_bounds = array<i64: 1>, scalar_prefetch = 0 : i64, scratch_operands = 0 : i64, tpu.core_type = #tpu.core_type<tc>, window_params = [{pipeline_mode = #tpu.pipeline_mode<synchronous>, transform_indices = @transform_0, window_bounds = array<i64: 1, 1024>}, {transform_indices = @transform_1, window_bounds = array<i64: 1024, 1024>}, {transform_indices = @transform_2, window_bounds = array<i64: 1, 1024>}, {transform_indices = @transform_3, window_bounds = array<i64: 1, 1024>}, {transform_indices = @transform_4, window_bounds = array<i64: 1, 1024>}]} {
    %c0 = arith.constant 0 : index
    %c0_0 = arith.constant 0 : index
    %0 = vector.load %arg1[%c0, %c0_0] : memref<1x1024xf32, #tpu.memory_space<vmem>>, vector<1x1024xf32>
    %c0_1 = arith.constant 0 : index
    %c0_2 = arith.constant 0 : index
    %1 = vector.load %arg2[%c0_1, %c0_2] : memref<1024x1024xf32, #tpu.memory_space<vmem>>, vector<1024x1024xf32>
    %cst = arith.constant dense<0.000000e+00> : vector<1x1024xf32>
    %2 = tpu.matmul %0, %1, %cst {dimension_numbers = #tpu.dot_dimension_numbers<[1], [1], [0], [0], [0, 0, 1, 0], [], []>} : vector<1x1024xf32>, vector<1024x1024xf32>, vector<1x1024xf32> -> vector<1x1024xf32>
    %c0_3 = arith.constant 0 : index
    %c0_4 = arith.constant 0 : index
    %3 = vector.load %arg3[%c0_3, %c0_4] : memref<1x1024xf32, #tpu.memory_space<vmem>>, vector<1x1024xf32>
    %4 = arith.addf %2, %3 : vector<1x1024xf32>
    %c0_5 = arith.constant 0 : index
    %c0_6 = arith.constant 0 : index
    %5 = vector.load %arg4[%c0_5, %c0_6] : memref<1x1024xf32, #tpu.memory_space<vmem>>, vector<1x1024xf32>
    %6 = arith.addf %4, %5 : vector<1x1024xf32>
    %cst_7 = arith.constant 0.000000e+00 : f32
    %7 = vector.broadcast %cst_7 : f32 to vector<1x1024xf32>
    %8 = arith.maximumf %6, %7 : vector<1x1024xf32>
    %c0_8 = arith.constant 0 : index
    %c0_9 = arith.constant 0 : index
    %9 = vector.load %arg5[%c0_8, %c0_9] : memref<1x1024xf32, #tpu.memory_space<vmem>>, vector<1x1024xf32>
    tpu.vector_store %arg5[%c0_8, %c0_9], %8 {strides = array<i32>} : memref<1x1024xf32, #tpu.memory_space<vmem>>, vector<1x1024xf32>,
    return
  }
  func.func @transform_0(%arg0: i32) -> (i32, i32) {
    %c0_i32 = arith.constant 0 : i32
    %c0_i32_0 = arith.constant 0 : i32
    %c0_i32_1 = arith.constant 0 : i32
    return %c0_i32, %c0_i32_0 : i32, i32
  }
  func.func @transform_1(%arg0: i32) -> (i32, i32) {
    %c0_i32 = arith.constant 0 : i32
    %c0_i32_0 = arith.constant 0 : i32
    return %arg0, %c0_i32 : i32, i32
  }
  func.func @transform_2(%arg0: i32) -> (i32, i32) {
    %c0_i32 = arith.constant 0 : i32
    %c0_i32_0 = arith.constant 0 : i32
    return %c0_i32, %arg0 : i32, i32
  }
  func.func @transform_3(%arg0: i32) -> (i32, i32) {
    %c0_i32 = arith.constant 0 : i32
    %c0_i32_0 = arith.constant 0 : i32
    return %c0_i32, %arg0 : i32, i32
  }
  func.func @transform_4(%arg0: i32) -> (i32, i32) {
    %c0_i32 = arith.constant 0 : i32
    %c0_i32_0 = arith.constant 0 : i32
    return %c0_i32, %arg0 : i32, i32
  }
}

</mosaic_0001>

<bundles_post_ra>
// kernel: tpu_custom_call.1
= control target key start
LH: loop header
LB: loop body
LE: loop exit
PB: predicated region body
PF: predicated region fallthrough
CT: control target
= control target key end

     0   :  { %9 = vsyncpa [#allocation3], 0  ;;  %s2718_s0 = inlined_call_operand.hbm [shape: f32[1,1024], index: 0, kind: input, shape index: {}]   ;;  %s2719_s1 = inlined_call_operand.hbm [shape: f32[1024,1024], index: 1, kind: input, shape index: {}]   ;;  %s2720_s2 = inlined_call_operand.hbm [shape: f32[1,1024], index: 2, kind: input, shape index: {}]   ;;  %s2721_s3 = inlined_call_operand.hbm [shape: f32[1,1024], index: 3, kind: input, shape index: {}]   ;;  %s2722_s4 = inlined_call_operand.hbm [shape: f32[1,1024], index: 4, kind: output, shape index: {}]  }
   0x1   :  { %10 = vsyncpa [#allocation6], 0 }
   0x2   :  { %11 = vsyncpa [#allocation9], 0 }
   0x3   :  { %12 = vsyncpa [#allocation4], 0  ;;  %s2561_s15 = smov [#allocation5]  }
   0x4   :  { %s28_s16 = sshll.u32 %s2561_s15, 4  ;;  %s29_s16 = int_to_ptr.vmem [resolvable:$true] %s28_s16 }
   0x5   :  { %s2461_s17 = scalar_lea.vmem %s29_s16, 131072  ;;  %p2466_p1 = scmp.lt.s32.totalorder %s29_s16, %s29_s16 }
   0x6   :  { %p2462_p0 = scmp.ne.s32.totalorder %s29_s16, %s2461_s17  ;;  %p2467_p2 = scmp.lt.s32.totalorder %s2461_s17, %s2461_s17 }
   0x8   :  { %p2468_p3 = por %p2467_p2, %p2466_p1 }
   0xa   :  { %p2469_p4 = pnand %p2468_p3, %p2462_p0 }
   0xc   :  { %2472 = shalt.err (!%p2469_p4)
}
   0xd   :  { %s2562_s18 = smov 1024   ;;  %s2563_s19 = smov 64  }
   0xe   :  { %34 = dma.hbm_to_vmem [thread:$0]  %s2719_s1, 131072, %s29_s16, [#allocation6], %s2562_s18, %s2562_s18, %s2563_s19  }
   0xf   :  { %s2564_s22 = smov [#allocation2]   ;;  %s2565_s24 = smov [#allocation7]  }
  0x10   :  { %s19_s23 = sshll.u32 %s2564_s22, 4  ;;  %s41_s25 = sshll.u32 %s2565_s24, 4  ;;  %s20_s23 = int_to_ptr.vmem [resolvable:$true] %s19_s23  ;;  %s42_s25 = int_to_ptr.vmem [resolvable:$true] %s41_s25 }
  0x11   :  { %s2481_s26 = scalar_lea.vmem %s20_s23, 128  ;;  %p2486_p6 = scmp.lt.s32.totalorder %s20_s23, %s20_s23 }
  0x12   :  { %p2482_p5 = scmp.ne.s32.totalorder %s20_s23, %s2481_s26  ;;  %p2487_p7 = scmp.lt.s32.totalorder %s2481_s26, %s2481_s26 }
  0x14   :  { %p2488_p8 = por %p2487_p7, %p2486_p6 }
  0x16   :  { %p2489_p9 = pnand %p2488_p8, %p2482_p5 }
  0x18   :  { %2492 = shalt.err (!%p2489_p9)
}
  0x19   :  { %22 = dma.hbm_to_vmem [thread:$0]  %s2718_s0, 128, %s20_s23, [#allocation3]  }
  0x1a   :  { %s2501_s29 = scalar_lea.vmem %s42_s25, 128  ;;  %p2506_p11 = scmp.lt.s32.totalorder %s42_s25, %s42_s25 }
  0x1b   :  { %p2502_p10 = scmp.ne.s32.totalorder %s42_s25, %s2501_s29  ;;  %p2507_p12 = scmp.lt.s32.totalorder %s2501_s29, %s2501_s29 }
  0x1d   :  { %p2508_p13 = por %p2507_p12, %p2506_p11 }
  0x1f   :  { %p2509_p0 = pnand %p2508_p13, %p2502_p10 }
  0x21   :  { %2512 = shalt.err (!%p2509_p0)
}
  0x22   :  { %44 = dma.hbm_to_vmem [thread:$0]  %s2720_s2, 128, %s42_s25, [#allocation6]  }
  0x23   :  { %s2566_s5 = smov [#allocation8]  }
  0x24   :  { %s51_s6 = sshll.u32 %s2566_s5, 4  ;;  %s52_s6 = int_to_ptr.vmem [resolvable:$true] %s51_s6 }
  0x25   :  { %s2521_s7 = scalar_lea.vmem %s52_s6, 128  ;;  %p2526_p2 = scmp.lt.s32.totalorder %s52_s6, %s52_s6 }
  0x26   :  { %p2522_p1 = scmp.ne.s32.totalorder %s52_s6, %s2521_s7  ;;  %p2527_p3 = scmp.lt.s32.totalorder %s2521_s7, %s2521_s7 }
  0x28   :  { %p2528_p4 = por %p2527_p3, %p2526_p2 }
  0x2a   :  { %p2529_p5 = pnand %p2528_p4, %p2522_p1 }
  0x2c   :  { %2532 = shalt.err (!%p2529_p5)
}
  0x2d   :  { %54 = dma.hbm_to_vmem [thread:$0]  %s2721_s3, 128, %s52_s6, [#allocation9]  }
  0x2e   :  { %2553 = dma.done.wait [#allocation3], 128  }
  0x2f   :  { %2554 = vsyncadd [#allocation3], 4294967168 }
  0x30   :  { %2555 = dma.done.wait [#allocation6], 131200  }
  0x31   :  { %2556 = vsyncadd [#allocation6], 4294836096 }
  0x32   :  { %2557 = dma.done.wait [#allocation9], 128  }
  0x33   :  { %2558 = vsyncadd [#allocation9], 4294967168  ;;  %v189_v0 = vld [vmem:[#allocation5 + $0x3c8] sm:$0xff]  ;;  %v191_v1 = vld [vmem:[#allocation5 + $0x3d8] sm:$0xff]  ;;  %v1094_v36 = vlaneseq  ;;  %s2568_s2 = smov [#allocation10]  }
  0x34   :  { %v188_v2 = vld [vmem:[#allocation5 + $0x3c0] sm:$0xff]  ;;  %1175 = vmatprep.subr.mxu0 %v189_v0  ;;  %1246 = vmatprep.subr.mxu1 %v191_v1  ;;  %v190_v3 = vld [vmem:[#allocation5 + $0x3d0] sm:$0xff]  ;;  %v181_v4 = vld [vmem:[#allocation5 + $0x388] sm:$0xff]  ;;  %s2434_s3 = sshll.u32 %s2568_s2, 4  ;;  %s2435_s3 = int_to_ptr.vmem [resolvable:$true] %s2434_s3 }
  0x35   :  { %v183_v5 = vld [vmem:[#allocation5 + $0x398] sm:$0xff]  ;;  %1176 = vmatpush1.xpose.msra.mxu0 %v188_v2  ;;  %1247 = vmatpush1.xpose.msra.mxu1 %v190_v3  ;;  %v180_v6 = vld [vmem:[#allocation5 + $0x380] sm:$0xff]  ;;  %v182_v7 = vld [vmem:[#allocation5 + $0x390] sm:$0xff]  ;;  %v2606_v41 = vshrl.u32 %v1094_v36, 7  ;;  %s2533_s9 = scalar_lea.vmem %s2435_s3, 128  ;;  %p2538_p7 = scmp.lt.s32.totalorder %s2435_s3, %s2435_s3 }
  0x36   :  { %1177 = vmatprep.subr.mxu0 %v181_v4  ;;  %1248 = vmatprep.subr.mxu1 %v183_v5  ;;  %v173_v8 = vld [vmem:[#allocation5 + $0x348] sm:$0xff]  ;;  %v175_v9 = vld [vmem:[#allocation5 + $0x358] sm:$0xff]  ;;  %v172_v10 = vld [vmem:[#allocation5 + $0x340] sm:$0xff]  ;;  %p2534_p6 = scmp.ne.s32.totalorder %s2435_s3, %s2533_s9  ;;  %p2539_p8 = scmp.lt.s32.totalorder %s2533_s9, %s2533_s9 }
  0x37   :  { %v174_v11 = vld [vmem:[#allocation5 + $0x350] sm:$0xff]  ;;  %v165_v12 = vld [vmem:[#allocation5 + $0x308] sm:$0xff]  ;;  %v167_v13 = vld [vmem:[#allocation5 + $0x318] sm:$0xff]  ;;  %v2609_v46 = vsub.s32 1, %v2606_v41  ;;  %v2612_v47 = vsub.s32 3, %v2606_v41 }
  0x38   :  { %v164_v14 = vld [vmem:[#allocation5 + $0x300] sm:$0xff]  ;;  %v166_v15 = vld [vmem:[#allocation5 + $0x310] sm:$0xff]  ;;  %v157_v16 = vld [vmem:[#allocation5 + $0x2c8] sm:$0xff]  ;;  %p2540_p9 = por %p2539_p8, %p2538_p7 }
  0x39   :  { %1178 = vmatpush1.xpose.msra.mxu0 %v180_v6  ;;  %1249 = vmatpush1.xpose.msra.mxu1 %v182_v7  ;;  %v159_v17 = vld [vmem:[#allocation5 + $0x2d8] sm:$0xff]  ;;  %v156_v18 = vld [vmem:[#allocation5 + $0x2c0] sm:$0xff]  ;;  %v158_v19 = vld [vmem:[#allocation5 + $0x2d0] sm:$0xff] }
  0x3a   :  { %1179 = vmatprep.subr.mxu0 %v173_v8  ;;  %1250 = vmatprep.subr.mxu1 %v175_v9  ;;  %v149_v20 = vld [vmem:[#allocation5 + $0x288] sm:$0xff]  ;;  %v151_v21 = vld [vmem:[#allocation5 + $0x298] sm:$0xff]  ;;  %v148_v22 = vld [vmem:[#allocation5 + $0x280] sm:$0xff]  ;;  %p2541_p10 = pnand %p2540_p9, %p2534_p6 }
  0x3b   :  { %v150_v23 = vld [vmem:[#allocation5 + $0x290] sm:$0xff]  ;;  %v141_v24 = vld [vmem:[#allocation5 + $0x248] sm:$0xff]  ;;  %v143_v25 = vld [vmem:[#allocation5 + $0x258] sm:$0xff] }
  0x3c   :  { %v140_v26 = vld [vmem:[#allocation5 + $0x240] sm:$0xff]  ;;  %v142_v27 = vld [vmem:[#allocation5 + $0x250] sm:$0xff]  ;;  %v133_v28 = vld [vmem:[#allocation5 + $0x208] sm:$0xff] }
  0x3d   :  { %1180 = vmatpush1.xpose.msra.mxu0 %v172_v10  ;;  %1251 = vmatpush1.xpose.msra.mxu1 %v174_v11  ;;  %v135_v29 = vld [vmem:[#allocation5 + $0x218] sm:$0xff]  ;;  %v132_v30 = vld [vmem:[#allocation5 + $0x200] sm:$0xff]  ;;  %v134_v31 = vld [vmem:[#allocation5 + $0x210] sm:$0xff] }
  0x3e   :  { %1181 = vmatprep.subr.mxu0 %v165_v12  ;;  %1252 = vmatprep.subr.mxu1 %v167_v13  ;;  %v125_v32 = vld [vmem:[#allocation5 + $0x1c8] sm:$0xff]  ;;  %v127_v33 = vld [vmem:[#allocation5 + $0x1d8] sm:$0xff]  ;;  %v124_v34 = vld [vmem:[#allocation5 + $0x1c0] sm:$0xff] }
  0x3f   :  { %v126_v35 = vld [vmem:[#allocation5 + $0x1d0] sm:$0xff]  ;;  %v117_v37 = vld [vmem:[#allocation5 + $0x188] sm:$0xff]  ;;  %v119_v38 = vld [vmem:[#allocation5 + $0x198] sm:$0xff] }
  0x40   :  { %v116_v39 = vld [vmem:[#allocation5 + $0x180] sm:$0xff]  ;;  %v118_v40 = vld [vmem:[#allocation5 + $0x190] sm:$0xff]  ;;  %v109_v42 = vld [vmem:[#allocation5 + $0x148] sm:$0xff] }
  0x41   :  { %1182 = vmatpush1.xpose.msra.mxu0 %v164_v14  ;;  %1253 = vmatpush1.xpose.msra.mxu1 %v166_v15  ;;  %v111_v43 = vld [vmem:[#allocation5 + $0x158] sm:$0xff]  ;;  %v108_v44 = vld [vmem:[#allocation5 + $0x140] sm:$0xff]  ;;  %v110_v45 = vld [vmem:[#allocation5 + $0x150] sm:$0xff] }
  0x42   :  { %1183 = vmatprep.subr.mxu0 %v157_v16  ;;  %1254 = vmatprep.subr.mxu1 %v159_v17  ;;  %v101_v48 = vld [vmem:[#allocation5 + $0x108] sm:$0xff]  ;;  %v103_v49 = vld [vmem:[#allocation5 + $0x118] sm:$0xff]  ;;  %v100_v51 = vld [vmem:[#allocation5 + $0x100] sm:$0xff] }
  0x43   :  { %v2614_v50 = vld [vmem:[#allocation2] sm:$0xff]  ;;  %v102_v52 = vld [vmem:[#allocation5 + $0x110] sm:$0xff]  ;;  %v93_v55 = vld [vmem:[#allocation5 + $0xc8] sm:$0xff] }
  0x44   :  { %v2618_v53 = vrot.slane %v2614_v50, %v2609_v46  ;;  %v2622_v54 = vrot.slane %v2614_v50, %v2612_v47  ;;  %v95_v56 = vld [vmem:[#allocation5 + $0xd8] sm:$0xff]  ;;  %v92_v57 = vld [vmem:[#allocation5 + $0xc0] sm:$0xff]  ;;  %v94_v58 = vld [vmem:[#allocation5 + $0xd0] sm:$0xff] }
  0x45   :  { %1184 = vmatpush1.xpose.msra.mxu0 %v156_v18  ;;  %1255 = vmatpush1.xpose.msra.mxu1 %v158_v19  ;;  %v85_v59 = vld [vmem:[#allocation5 + $0x88] sm:$0xff]  ;;  %v87_v60 = vld [vmem:[#allocation5 + $0x98] sm:$0xff]  ;;  %v84_v61 = vld [vmem:[#allocation5 + $0x80] sm:$0xff] }
  0x46   :  { %1185 = vmatprep.subr.mxu0 %v149_v20  ;;  %1256 = vmatprep.subr.mxu1 %v151_v21  ;;  %v86_v62 = vld [vmem:[#allocation5 + $0x90] sm:$0xff]  ;;  %v77_v63 = vld [vmem:[#allocation5 + $0x48] sm:$0xff]  ;;  %v79_v0 = vld [vmem:[#allocation5 + $0x58] sm:$0xff] }
  0x47   :  { %1239 = vmatprep.mubr.f32.mxu0 %v2618_v53  ;;  %1310 = vmatprep.mubr.f32.mxu1 %v2622_v54  ;;  %v76_v1 = vld [vmem:[#allocation5 + $0x40] sm:$0xff]  ;;  %v78_v2 = vld [vmem:[#allocation5 + $0x50] sm:$0xff]  ;;  %v69_v3 = vld [vmem:[#allocation5 + $0x8] sm:$0xff] }
  0x48   :  { %v71_v4 = vld [vmem:[#allocation5 + $0x18] sm:$0xff]  ;;  %v68_v5 = vld [vmem:[#allocation5] sm:$0xff]  ;;  %v70_v6 = vld [vmem:[#allocation5 + $0x10] sm:$0xff] }
  0x49   :  { %1186 = vmatpush1.xpose.msra.mxu0 %v148_v22  ;;  %1257 = vmatpush1.xpose.msra.mxu1 %v150_v23  ;;  %v317_v7 = vld [vmem:[#allocation5 + $0x7c8] sm:$0xff]  ;;  %v319_v8 = vld [vmem:[#allocation5 + $0x7d8] sm:$0xff]  ;;  %v316_v9 = vld [vmem:[#allocation5 + $0x7c0] sm:$0xff] }
  0x4a   :  { %1187 = vmatprep.subr.mxu0 %v141_v24  ;;  %1258 = vmatprep.subr.mxu1 %v143_v25  ;;  %v318_v10 = vld [vmem:[#allocation5 + $0x7d0] sm:$0xff]  ;;  %v309_v11 = vld [vmem:[#allocation5 + $0x788] sm:$0xff]  ;;  %v311_v12 = vld [vmem:[#allocation5 + $0x798] sm:$0xff] }
  0x4b   :  { %v308_v13 = vld [vmem:[#allocation5 + $0x780] sm:$0xff]  ;;  %v310_v14 = vld [vmem:[#allocation5 + $0x790] sm:$0xff]  ;;  %v301_v15 = vld [vmem:[#allocation5 + $0x748] sm:$0xff] }
  0x4c   :  { %v303_v16 = vld [vmem:[#allocation5 + $0x758] sm:$0xff]  ;;  %v300_v17 = vld [vmem:[#allocation5 + $0x740] sm:$0xff]  ;;  %v302_v18 = vld [vmem:[#allocation5 + $0x750] sm:$0xff] }
  0x4d   :  { %1188 = vmatpush1.xpose.msra.mxu0 %v140_v26  ;;  %1259 = vmatpush1.xpose.msra.mxu1 %v142_v27  ;;  %v293_v19 = vld [vmem:[#allocation5 + $0x708] sm:$0xff]  ;;  %v295_v20 = vld [vmem:[#allocation5 + $0x718] sm:$0xff]  ;;  %v292_v21 = vld [vmem:[#allocation5 + $0x700] sm:$0xff] }
  0x4e   :  { %1189 = vmatprep.subr.mxu0 %v133_v28  ;;  %1260 = vmatprep.subr.mxu1 %v135_v29  ;;  %v294_v22 = vld [vmem:[#allocation5 + $0x710] sm:$0xff]  ;;  %v285_v23 = vld [vmem:[#allocation5 + $0x6c8] sm:$0xff]  ;;  %v287_v24 = vld [vmem:[#allocation5 + $0x6d8] sm:$0xff] }
  0x4f   :  { %v284_v25 = vld [vmem:[#allocation5 + $0x6c0] sm:$0xff]  ;;  %v286_v26 = vld [vmem:[#allocation5 + $0x6d0] sm:$0xff]  ;;  %v277_v27 = vld [vmem:[#allocation5 + $0x688] sm:$0xff] }
  0x50   :  { %v279_v28 = vld [vmem:[#allocation5 + $0x698] sm:$0xff]  ;;  %v276_v29 = vld [vmem:[#allocation5 + $0x680] sm:$0xff] }
  0x51   :  { %1190 = vmatpush1.xpose.msra.mxu0 %v132_v30  ;;  %1261 = vmatpush1.xpose.msra.mxu1 %v134_v31  ;;  %v278_v30 = vld [vmem:[#allocation5 + $0x690] sm:$0xff]  ;;  %v269_v31 = vld [vmem:[#allocation5 + $0x648] sm:$0xff]  ;;  %v263_v36 = vld [vmem:[#allocation5 + $0x618] sm:$0xff] }
  0x52   :  { %1191 = vmatprep.subr.mxu0 %v125_v32  ;;  %1262 = vmatprep.subr.mxu1 %v127_v33  ;;  %v271_v32 = vld [vmem:[#allocation5 + $0x658] sm:$0xff]  ;;  %v268_v33 = vld [vmem:[#allocation5 + $0x640] sm:$0xff] }
  0x55   :  { %1192 = vmatpush1.xpose.msra.mxu0 %v124_v34  ;;  %1263 = vmatpush1.xpose.msra.mxu1 %v126_v35  ;;  %v270_v34 = vld [vmem:[#allocation5 + $0x650] sm:$0xff]  ;;  %v261_v35 = vld [vmem:[#allocation5 + $0x608] sm:$0xff] }
  0x56   :  { %1193 = vmatprep.subr.mxu0 %v117_v37  ;;  %1264 = vmatprep.subr.mxu1 %v119_v38  ;;  %v260_v37 = vld [vmem:[#allocation5 + $0x600] sm:$0xff]  ;;  %v262_v38 = vld [vmem:[#allocation5 + $0x610] sm:$0xff] }
  0x59   :  { %1194 = vmatpush1.xpose.msra.mxu0 %v116_v39  ;;  %1265 = vmatpush1.xpose.msra.mxu1 %v118_v40  ;;  %v253_v39 = vld [vmem:[#allocation5 + $0x5c8] sm:$0xff]  ;;  %v255_v40 = vld [vmem:[#allocation5 + $0x5d8] sm:$0xff] }
  0x5a   :  { %1195 = vmatprep.subr.mxu0 %v109_v42  ;;  %1266 = vmatprep.subr.mxu1 %v111_v43  ;;  %v252_v42 = vld [vmem:[#allocation5 + $0x5c0] sm:$0xff]  ;;  %v254_v43 = vld [vmem:[#allocation5 + $0x5d0] sm:$0xff] }
  0x5d   :  { %1196 = vmatpush1.xpose.msra.mxu0 %v108_v44  ;;  %1267 = vmatpush1.xpose.msra.mxu1 %v110_v45  ;;  %v245_v44 = vld [vmem:[#allocation5 + $0x588] sm:$0xff]  ;;  %v247_v45 = vld [vmem:[#allocation5 + $0x598] sm:$0xff] }
  0x5e   :  { %1197 = vmatprep.subr.mxu0 %v101_v48  ;;  %1268 = vmatprep.subr.mxu1 %v103_v49  ;;  %v244_v48 = vld [vmem:[#allocation5 + $0x580] sm:$0xff]  ;;  %v246_v49 = vld [vmem:[#allocation5 + $0x590] sm:$0xff] }
  0x61   :  { %1198 = vmatpush1.xpose.msra.mxu0 %v100_v51  ;;  %1269 = vmatpush1.xpose.msra.mxu1 %v102_v52  ;;  %v237_v51 = vld [vmem:[#allocation5 + $0x548] sm:$0xff]  ;;  %v239_v52 = vld [vmem:[#allocation5 + $0x558] sm:$0xff] }
  0x62   :  { %1199 = vmatprep.subr.mxu0 %v93_v55  ;;  %1270 = vmatprep.subr.mxu1 %v95_v56  ;;  %v236_v55 = vld [vmem:[#allocation5 + $0x540] sm:$0xff]  ;;  %v238_v56 = vld [vmem:[#allocation5 + $0x550] sm:$0xff] }
  0x65   :  { %1200 = vmatpush1.xpose.msra.mxu0 %v92_v57  ;;  %1271 = vmatpush1.xpose.msra.mxu1 %v94_v58  ;;  %v229_v57 = vld [vmem:[#allocation5 + $0x508] sm:$0xff]  ;;  %v231_v58 = vld [vmem:[#allocation5 + $0x518] sm:$0xff] }
  0x66   :  { %1201 = vmatprep.subr.mxu0 %v85_v59  ;;  %1272 = vmatprep.subr.mxu1 %v87_v60  ;;  %v228_v59 = vld [vmem:[#allocation5 + $0x500] sm:$0xff]  ;;  %v230_v60 = vld [vmem:[#allocation5 + $0x510] sm:$0xff] }
  0x69   :  { %1202 = vmatpush1.xpose.msra.mxu0 %v84_v61  ;;  %1273 = vmatpush1.xpose.msra.mxu1 %v86_v62  ;;  %v221_v61 = vld [vmem:[#allocation5 + $0x4c8] sm:$0xff]  ;;  %v223_v62 = vld [vmem:[#allocation5 + $0x4d8] sm:$0xff] }
  0x6a   :  { %1203 = vmatprep.subr.mxu0 %v77_v63  ;;  %1274 = vmatprep.subr.mxu1 %v79_v0  ;;  %v220_v63 = vld [vmem:[#allocation5 + $0x4c0] sm:$0xff]  ;;  %v222_v0 = vld [vmem:[#allocation5 + $0x4d0] sm:$0xff] }
  0x6d   :  { %1204 = vmatpush1.xpose.msra.mxu0 %v76_v1  ;;  %1275 = vmatpush1.xpose.msra.mxu1 %v78_v2  ;;  %v213_v1 = vld [vmem:[#allocation5 + $0x488] sm:$0xff]  ;;  %v215_v2 = vld [vmem:[#allocation5 + $0x498] sm:$0xff] }
  0x6e   :  { %1205 = vmatprep.subr.mxu0 %v69_v3  ;;  %1276 = vmatprep.subr.mxu1 %v71_v4  ;;  %v212_v3 = vld [vmem:[#allocation5 + $0x480] sm:$0xff]  ;;  %v214_v4 = vld [vmem:[#allocation5 + $0x490] sm:$0xff] }
  0x71   :  { %1206 = vmatpush1.xpose.msra.mxu0 %v68_v5  ;;  %1277 = vmatpush1.xpose.msra.mxu1 %v70_v6  ;;  %v205_v5 = vld [vmem:[#allocation5 + $0x448] sm:$0xff]  ;;  %v207_v6 = vld [vmem:[#allocation5 + $0x458] sm:$0xff] }
  0x72   :  { %1207 = vmatprep.subr.mxu0 %v317_v7  ;;  %1278 = vmatprep.subr.mxu1 %v319_v8  ;;  %v204_v7 = vld [vmem:[#allocation5 + $0x440] sm:$0xff]  ;;  %v206_v8 = vld [vmem:[#allocation5 + $0x450] sm:$0xff] }
  0x75   :  { %1208 = vmatpush2.xpose.msra.mxu0 %v316_v9  ;;  %1279 = vmatpush2.xpose.msra.mxu1 %v318_v10  ;;  %v197_v9 = vld [vmem:[#allocation5 + $0x408] sm:$0xff]  ;;  %v199_v10 = vld [vmem:[#allocation5 + $0x418] sm:$0xff] }
  0x76   :  { %1209 = vmatprep.subr.mxu0 %v309_v11  ;;  %1280 = vmatprep.subr.mxu1 %v311_v12  ;;  %v2627_v11 = vsub.s32 0, %v2606_v41  ;;  %v2630_v12 = vsub.s32 2, %v2606_v41 }
  0x79   :  { %1210 = vmatpush2.xpose.msra.mxu0 %v308_v13  ;;  %1281 = vmatpush2.xpose.msra.mxu1 %v310_v14  ;;  %v196_v13 = vld [vmem:[#allocation5 + $0x400] sm:$0xff]  ;;  %v198_v14 = vld [vmem:[#allocation5 + $0x410] sm:$0xff] }
  0x7a   :  { %1211 = vmatprep.subr.mxu0 %v301_v15  ;;  %1282 = vmatprep.subr.mxu1 %v303_v16  ;;  %v193_v15 = vld [vmem:[#allocation5 + $0x3e8] sm:$0xff]  ;;  %v195_v16 = vld [vmem:[#allocation5 + $0x3f8] sm:$0xff] }
  0x7d   :  { %1212 = vmatpush2.xpose.msra.mxu0 %v300_v17  ;;  %1283 = vmatpush2.xpose.msra.mxu1 %v302_v18  ;;  %v2633_v17 = vsub.s32 5, %v2606_v41  ;;  %v2637_v18 = vrot.slane %v2614_v50, %v2627_v11 }
  0x7e   :  { %1213 = vmatprep.subr.mxu0 %v293_v19  ;;  %1284 = vmatprep.subr.mxu1 %v295_v20  ;;  %v2641_v19 = vrot.slane %v2614_v50, %v2630_v12  ;;  %v2644_v20 = vsub.s32 7, %v2606_v41 }
  0x81   :  { %1214 = vmatpush2.xpose.msra.mxu0 %v292_v21  ;;  %1285 = vmatpush2.xpose.msra.mxu1 %v294_v22  ;;  %v192_v21 = vld [vmem:[#allocation5 + $0x3e0] sm:$0xff]  ;;  %v194_v22 = vld [vmem:[#allocation5 + $0x3f0] sm:$0xff] }
  0x82   :  { %1215 = vmatprep.subr.mxu0 %v285_v23  ;;  %1286 = vmatprep.subr.mxu1 %v287_v24  ;;  %v185_v23 = vld [vmem:[#allocation5 + $0x3a8] sm:$0xff]  ;;  %v187_v24 = vld [vmem:[#allocation5 + $0x3b8] sm:$0xff] }
  0x85   :  { %1216 = vmatpush2.xpose.msra.mxu0 %v284_v25  ;;  %1287 = vmatpush2.xpose.msra.mxu1 %v286_v26  ;;  %v2648_v25 = vrot.slane %v2614_v50, %v2633_v17  ;;  %v2652_v26 = vrot.slane %v2614_v50, %v2644_v20 }
  0x86   :  { %1217 = vmatprep.subr.mxu0 %v277_v27  ;;  %1288 = vmatprep.subr.mxu1 %v279_v28  ;;  %v184_v27 = vld [vmem:[#allocation5 + $0x3a0] sm:$0xff]  ;;  %v186_v28 = vld [vmem:[#allocation5 + $0x3b0] sm:$0xff] }
  0x89   :  { %1218 = vmatpush2.xpose.msra.mxu0 %v276_v29  ;;  %1289 = vmatpush2.xpose.msra.mxu1 %v278_v30  ;;  %v177_v29 = vld [vmem:[#allocation5 + $0x368] sm:$0xff]  ;;  %v179_v30 = vld [vmem:[#allocation5 + $0x378] sm:$0xff] }
  0x8a   :  { %1219 = vmatprep.subr.mxu0 %v269_v31  ;;  %1290 = vmatprep.subr.mxu1 %v271_v32  ;;  %v176_v31 = vld [vmem:[#allocation5 + $0x360] sm:$0xff]  ;;  %v178_v32 = vld [vmem:[#allocation5 + $0x370] sm:$0xff] }
  0x8d   :  { %1220 = vmatpush2.xpose.msra.mxu0 %v268_v33  ;;  %1291 = vmatpush2.xpose.msra.mxu1 %v270_v34  ;;  %v169_v33 = vld [vmem:[#allocation5 + $0x328] sm:$0xff]  ;;  %v171_v34 = vld [vmem:[#allocation5 + $0x338] sm:$0xff] }
  0x8e   :  { %1221 = vmatprep.subr.mxu0 %v261_v35  ;;  %1292 = vmatprep.subr.mxu1 %v263_v36  ;;  %v168_v35 = vld [vmem:[#allocation5 + $0x320] sm:$0xff]  ;;  %v170_v36 = vld [vmem:[#allocation5 + $0x330] sm:$0xff] }
  0x91   :  { %1222 = vmatpush2.xpose.msra.mxu0 %v260_v37  ;;  %1293 = vmatpush2.xpose.msra.mxu1 %v262_v38  ;;  %v161_v37 = vld [vmem:[#allocation5 + $0x2e8] sm:$0xff]  ;;  %v163_v38 = vld [vmem:[#allocation5 + $0x2f8] sm:$0xff] }
  0x92   :  { %1223 = vmatprep.subr.mxu0 %v253_v39  ;;  %1294 = vmatprep.subr.mxu1 %v255_v40  ;;  %v160_v39 = vld [vmem:[#allocation5 + $0x2e0] sm:$0xff]  ;;  %v162_v40 = vld [vmem:[#allocation5 + $0x2f0] sm:$0xff] }
  0x95   :  { %1224 = vmatpush2.xpose.msra.mxu0 %v252_v42  ;;  %1295 = vmatpush2.xpose.msra.mxu1 %v254_v43  ;;  %v153_v42 = vld [vmem:[#allocation5 + $0x2a8] sm:$0xff]  ;;  %v155_v43 = vld [vmem:[#allocation5 + $0x2b8] sm:$0xff] }
  0x96   :  { %1225 = vmatprep.subr.mxu0 %v245_v44  ;;  %1296 = vmatprep.subr.mxu1 %v247_v45  ;;  %v152_v44 = vld [vmem:[#allocation5 + $0x2a0] sm:$0xff]  ;;  %v154_v45 = vld [vmem:[#allocation5 + $0x2b0] sm:$0xff] }
  0x99   :  { %1226 = vmatpush2.xpose.msra.mxu0 %v244_v48  ;;  %1297 = vmatpush2.xpose.msra.mxu1 %v246_v49  ;;  %v145_v48 = vld [vmem:[#allocation5 + $0x268] sm:$0xff]  ;;  %v147_v49 = vld [vmem:[#allocation5 + $0x278] sm:$0xff] }
  0x9a   :  { %1227 = vmatprep.subr.mxu0 %v237_v51  ;;  %1298 = vmatprep.subr.mxu1 %v239_v52  ;;  %v144_v51 = vld [vmem:[#allocation5 + $0x260] sm:$0xff]  ;;  %v146_v52 = vld [vmem:[#allocation5 + $0x270] sm:$0xff] }
  0x9d   :  { %1228 = vmatpush2.xpose.msra.mxu0 %v236_v55  ;;  %1299 = vmatpush2.xpose.msra.mxu1 %v238_v56  ;;  %v137_v55 = vld [vmem:[#allocation5 + $0x228] sm:$0xff]  ;;  %v139_v56 = vld [vmem:[#allocation5 + $0x238] sm:$0xff] }
  0x9e   :  { %1229 = vmatprep.subr.mxu0 %v229_v57  ;;  %1300 = vmatprep.subr.mxu1 %v231_v58  ;;  %v136_v57 = vld [vmem:[#allocation5 + $0x220] sm:$0xff]  ;;  %v138_v58 = vld [vmem:[#allocation5 + $0x230] sm:$0xff] }
  0xa1   :  { %1230 = vmatpush2.xpose.msra.mxu0 %v228_v59  ;;  %1301 = vmatpush2.xpose.msra.mxu1 %v230_v60  ;;  %v129_v59 = vld [vmem:[#allocation5 + $0x1e8] sm:$0xff]  ;;  %v131_v60 = vld [vmem:[#allocation5 + $0x1f8] sm:$0xff] }
  0xa2   :  { %1231 = vmatprep.subr.mxu0 %v221_v61  ;;  %1302 = vmatprep.subr.mxu1 %v223_v62  ;;  %v128_v61 = vld [vmem:[#allocation5 + $0x1e0] sm:$0xff]  ;;  %v130_v62 = vld [vmem:[#allocation5 + $0x1f0] sm:$0xff] }
  0xa5   :  { %1232 = vmatpush2.xpose.msra.mxu0 %v220_v63  ;;  %1303 = vmatpush2.xpose.msra.mxu1 %v222_v0  ;;  %v121_v63 = vld [vmem:[#allocation5 + $0x1a8] sm:$0xff]  ;;  %v123_v0 = vld [vmem:[#allocation5 + $0x1b8] sm:$0xff] }
  0xa6   :  { %1233 = vmatprep.subr.mxu0 %v213_v1  ;;  %1304 = vmatprep.subr.mxu1 %v215_v2  ;;  %v120_v1 = vld [vmem:[#allocation5 + $0x1a0] sm:$0xff]  ;;  %v122_v2 = vld [vmem:[#allocation5 + $0x1b0] sm:$0xff] }
  0xa9   :  { %1234 = vmatpush2.xpose.msra.mxu0 %v212_v3  ;;  %1305 = vmatpush2.xpose.msra.mxu1 %v214_v4  ;;  %v113_v3 = vld [vmem:[#allocation5 + $0x168] sm:$0xff]  ;;  %v115_v4 = vld [vmem:[#allocation5 + $0x178] sm:$0xff] }
  0xaa   :  { %1235 = vmatprep.subr.mxu0 %v205_v5  ;;  %1306 = vmatprep.subr.mxu1 %v207_v6  ;;  %v112_v5 = vld [vmem:[#allocation5 + $0x160] sm:$0xff]  ;;  %v114_v6 = vld [vmem:[#allocation5 + $0x170] sm:$0xff] }
  0xad   :  { %1236 = vmatpush2.xpose.msra.mxu0 %v204_v7  ;;  %1307 = vmatpush2.xpose.msra.mxu1 %v206_v8  ;;  %v105_v7 = vld [vmem:[#allocation5 + $0x128] sm:$0xff]  ;;  %v107_v8 = vld [vmem:[#allocation5 + $0x138] sm:$0xff] }
  0xae   :  { %1237 = vmatprep.subr.mxu0 %v197_v9  ;;  %1308 = vmatprep.subr.mxu1 %v199_v10  ;;  %v104_v9 = vld [vmem:[#allocation5 + $0x120] sm:$0xff]  ;;  %v106_v10 = vld [vmem:[#allocation5 + $0x130] sm:$0xff] }
  0xb1   :  { %1238 = vmatpush2.xpose.msra.mxu0 %v196_v13  ;;  %1309 = vmatpush2.xpose.msra.mxu1 %v198_v14  ;;  %v97_v13 = vld [vmem:[#allocation5 + $0xe8] sm:$0xff]  ;;  %v99_v14 = vld [vmem:[#allocation5 + $0xf8] sm:$0xff] }
  0xb2   :  { %1317 = vmatprep.subr.mxu0 %v193_v15  ;;  %1388 = vmatprep.subr.mxu1 %v195_v16  ;;  %v96_v15 = vld [vmem:[#allocation5 + $0xe0] sm:$0xff]  ;;  %v98_v16 = vld [vmem:[#allocation5 + $0xf0] sm:$0xff] }
  0xb4   :  { %1240 = vmatmul.mubr.f32.vlgmr.msra.gmra.mxu0 %v2637_v18  ;;  %1311 = vmatmul.mubr.f32.vlgmr.msra.gmra.mxu1 %v2641_v19 }
  0xb5   :  { %1318 = vmatpush1.xpose.msra.mxu0 %v192_v21  ;;  %1389 = vmatpush1.xpose.msra.mxu1 %v194_v22  ;;  %v89_v21 = vld [vmem:[#allocation5 + $0xa8] sm:$0xff]  ;;  %v91_v22 = vld [vmem:[#allocation5 + $0xb8] sm:$0xff] }
  0xb6   :  { %1319 = vmatprep.subr.mxu0 %v185_v23  ;;  %1390 = vmatprep.subr.mxu1 %v187_v24  ;;  %v88_v23 = vld [vmem:[#allocation5 + $0xa0] sm:$0xff]  ;;  %v90_v24 = vld [vmem:[#allocation5 + $0xb0] sm:$0xff] }
  0xb7   :  { %1381 = vmatprep.mubr.f32.mxu0 %v2648_v25  ;;  %1452 = vmatprep.mubr.f32.mxu1 %v2652_v26 }
  0xb9   :  { %1320 = vmatpush1.xpose.msra.mxu0 %v184_v27  ;;  %1391 = vmatpush1.xpose.msra.mxu1 %v186_v28  ;;  %v81_v27 = vld [vmem:[#allocation5 + $0x68] sm:$0xff]  ;;  %v83_v28 = vld [vmem:[#allocation5 + $0x78] sm:$0xff] }
  0xba   :  { %1321 = vmatprep.subr.mxu0 %v177_v29  ;;  %1392 = vmatprep.subr.mxu1 %v179_v30  ;;  %v80_v29 = vld [vmem:[#allocation5 + $0x60] sm:$0xff]  ;;  %v82_v30 = vld [vmem:[#allocation5 + $0x70] sm:$0xff] }
  0xbd   :  { %1322 = vmatpush1.xpose.msra.mxu0 %v176_v31  ;;  %1393 = vmatpush1.xpose.msra.mxu1 %v178_v32  ;;  %v73_v31 = vld [vmem:[#allocation5 + $0x28] sm:$0xff]  ;;  %v75_v32 = vld [vmem:[#allocation5 + $0x38] sm:$0xff] }
  0xbe   :  { %1323 = vmatprep.subr.mxu0 %v169_v33  ;;  %1394 = vmatprep.subr.mxu1 %v171_v34  ;;  %v72_v33 = vld [vmem:[#allocation5 + $0x20] sm:$0xff]  ;;  %v74_v34 = vld [vmem:[#allocation5 + $0x30] sm:$0xff] }
  0xc1   :  { %1324 = vmatpush1.xpose.msra.mxu0 %v168_v35  ;;  %1395 = vmatpush1.xpose.msra.mxu1 %v170_v36  ;;  %v321_v35 = vld [vmem:[#allocation5 + $0x7e8] sm:$0xff]  ;;  %v323_v36 = vld [vmem:[#allocation5 + $0x7f8] sm:$0xff] }
  0xc2   :  { %1325 = vmatprep.subr.mxu0 %v161_v37  ;;  %1396 = vmatprep.subr.mxu1 %v163_v38  ;;  %v320_v37 = vld [vmem:[#allocation5 + $0x7e0] sm:$0xff]  ;;  %v322_v38 = vld [vmem:[#allocation5 + $0x7f0] sm:$0xff] }
  0xc5   :  { %1326 = vmatpush1.xpose.msra.mxu0 %v160_v39  ;;  %1397 = vmatpush1.xpose.msra.mxu1 %v162_v40  ;;  %v313_v39 = vld [vmem:[#allocation5 + $0x7a8] sm:$0xff]  ;;  %v315_v40 = vld [vmem:[#allocation5 + $0x7b8] sm:$0xff] }
  0xc6   :  { %1327 = vmatprep.subr.mxu0 %v153_v42  ;;  %1398 = vmatprep.subr.mxu1 %v155_v43  ;;  %v312_v42 = vld [vmem:[#allocation5 + $0x7a0] sm:$0xff]  ;;  %v314_v43 = vld [vmem:[#allocation5 + $0x7b0] sm:$0xff] }
  0xc9   :  { %1328 = vmatpush1.xpose.msra.mxu0 %v152_v44  ;;  %1399 = vmatpush1.xpose.msra.mxu1 %v154_v45  ;;  %v305_v44 = vld [vmem:[#allocation5 + $0x768] sm:$0xff]  ;;  %v307_v45 = vld [vmem:[#allocation5 + $0x778] sm:$0xff] }
  0xca   :  { %1329 = vmatprep.subr.mxu0 %v145_v48  ;;  %1400 = vmatprep.subr.mxu1 %v147_v49  ;;  %v304_v48 = vld [vmem:[#allocation5 + $0x760] sm:$0xff]  ;;  %v306_v49 = vld [vmem:[#allocation5 + $0x770] sm:$0xff] }
  0xcd   :  { %1330 = vmatpush1.xpose.msra.mxu0 %v144_v51  ;;  %1401 = vmatpush1.xpose.msra.mxu1 %v146_v52  ;;  %v297_v51 = vld [vmem:[#allocation5 + $0x728] sm:$0xff]  ;;  %v299_v52 = vld [vmem:[#allocation5 + $0x738] sm:$0xff] }
  0xce   :  { %1331 = vmatprep.subr.mxu0 %v137_v55  ;;  %1402 = vmatprep.subr.mxu1 %v139_v56  ;;  %v296_v55 = vld [vmem:[#allocation5 + $0x720] sm:$0xff]  ;;  %v298_v56 = vld [vmem:[#allocation5 + $0x730] sm:$0xff] }
  0xd1   :  { %1332 = vmatpush1.xpose.msra.mxu0 %v136_v57  ;;  %1403 = vmatpush1.xpose.msra.mxu1 %v138_v58  ;;  %v289_v57 = vld [vmem:[#allocation5 + $0x6e8] sm:$0xff]  ;;  %v291_v58 = vld [vmem:[#allocation5 + $0x6f8] sm:$0xff] }
  0xd2   :  { %1333 = vmatprep.subr.mxu0 %v129_v59  ;;  %1404 = vmatprep.subr.mxu1 %v131_v60  ;;  %v288_v59 = vld [vmem:[#allocation5 + $0x6e0] sm:$0xff]  ;;  %v290_v60 = vld [vmem:[#allocation5 + $0x6f0] sm:$0xff] }
  0xd5   :  { %1334 = vmatpush1.xpose.msra.mxu0 %v128_v61  ;;  %1405 = vmatpush1.xpose.msra.mxu1 %v130_v62  ;;  %v281_v61 = vld [vmem:[#allocation5 + $0x6a8] sm:$0xff]  ;;  %v283_v62 = vld [vmem:[#allocation5 + $0x6b8] sm:$0xff] }
  0xd6   :  { %1335 = vmatprep.subr.mxu0 %v121_v63  ;;  %1406 = vmatprep.subr.mxu1 %v123_v0  ;;  %v280_v63 = vld [vmem:[#allocation5 + $0x6a0] sm:$0xff]  ;;  %v282_v0 = vld [vmem:[#allocation5 + $0x6b0] sm:$0xff] }
  0xd9   :  { %1336 = vmatpush1.xpose.msra.mxu0 %v120_v1  ;;  %1407 = vmatpush1.xpose.msra.mxu1 %v122_v2  ;;  %v273_v1 = vld [vmem:[#allocation5 + $0x668] sm:$0xff]  ;;  %v275_v2 = vld [vmem:[#allocation5 + $0x678] sm:$0xff] }
  0xda   :  { %1337 = vmatprep.subr.mxu0 %v113_v3  ;;  %1408 = vmatprep.subr.mxu1 %v115_v4  ;;  %v272_v3 = vld [vmem:[#allocation5 + $0x660] sm:$0xff]  ;;  %v274_v4 = vld [vmem:[#allocation5 + $0x670] sm:$0xff] }
  0xdd   :  { %1338 = vmatpush1.xpose.msra.mxu0 %v112_v5  ;;  %1409 = vmatpush1.xpose.msra.mxu1 %v114_v6  ;;  %v265_v5 = vld [vmem:[#allocation5 + $0x628] sm:$0xff]  ;;  %v267_v6 = vld [vmem:[#allocation5 + $0x638] sm:$0xff] }
  0xde   :  { %1339 = vmatprep.subr.mxu0 %v105_v7  ;;  %1410 = vmatprep.subr.mxu1 %v107_v8  ;;  %v264_v7 = vld [vmem:[#allocation5 + $0x620] sm:$0xff]  ;;  %v266_v8 = vld [vmem:[#allocation5 + $0x630] sm:$0xff] }
  0xe1   :  { %1340 = vmatpush1.xpose.msra.mxu0 %v104_v9  ;;  %1411 = vmatpush1.xpose.msra.mxu1 %v106_v10  ;;  %v257_v9 = vld [vmem:[#allocation5 + $0x5e8] sm:$0xff]  ;;  %v259_v10 = vld [vmem:[#allocation5 + $0x5f8] sm:$0xff] }
  0xe2   :  { %1341 = vmatprep.subr.mxu0 %v97_v13  ;;  %1412 = vmatprep.subr.mxu1 %v99_v14  ;;  %v256_v13 = vld [vmem:[#allocation5 + $0x5e0] sm:$0xff]  ;;  %v258_v14 = vld [vmem:[#allocation5 + $0x5f0] sm:$0xff] }
  0xe5   :  { %1342 = vmatpush1.xpose.msra.mxu0 %v96_v15  ;;  %1413 = vmatpush1.xpose.msra.mxu1 %v98_v16  ;;  %v249_v15 = vld [vmem:[#allocation5 + $0x5a8] sm:$0xff]  ;;  %v251_v16 = vld [vmem:[#allocation5 + $0x5b8] sm:$0xff] }
  0xe6   :  { %1343 = vmatprep.subr.mxu0 %v89_v21  ;;  %1414 = vmatprep.subr.mxu1 %v91_v22  ;;  %v248_v21 = vld [vmem:[#allocation5 + $0x5a0] sm:$0xff]  ;;  %v250_v22 = vld [vmem:[#allocation5 + $0x5b0] sm:$0xff] }
  0xe9   :  { %1344 = vmatpush1.xpose.msra.mxu0 %v88_v23  ;;  %1415 = vmatpush1.xpose.msra.mxu1 %v90_v24  ;;  %v241_v23 = vld [vmem:[#allocation5 + $0x568] sm:$0xff]  ;;  %v243_v24 = vld [vmem:[#allocation5 + $0x578] sm:$0xff] }
  0xea   :  { %1345 = vmatprep.subr.mxu0 %v81_v27  ;;  %1416 = vmatprep.subr.mxu1 %v83_v28  ;;  %v240_v27 = vld [vmem:[#allocation5 + $0x560] sm:$0xff]  ;;  %v242_v28 = vld [vmem:[#allocation5 + $0x570] sm:$0xff] }
  0xed   :  { %1346 = vmatpush1.xpose.msra.mxu0 %v80_v29  ;;  %1417 = vmatpush1.xpose.msra.mxu1 %v82_v30  ;;  %v233_v29 = vld [vmem:[#allocation5 + $0x528] sm:$0xff]  ;;  %v235_v30 = vld [vmem:[#allocation5 + $0x538] sm:$0xff] }
  0xee   :  { %1347 = vmatprep.subr.mxu0 %v73_v31  ;;  %1418 = vmatprep.subr.mxu1 %v75_v32  ;;  %v232_v31 = vld [vmem:[#allocation5 + $0x520] sm:$0xff]  ;;  %v234_v32 = vld [vmem:[#allocation5 + $0x530] sm:$0xff] }
  0xf1   :  { %1348 = vmatpush1.xpose.msra.mxu0 %v72_v33  ;;  %1419 = vmatpush1.xpose.msra.mxu1 %v74_v34  ;;  %v225_v33 = vld [vmem:[#allocation5 + $0x4e8] sm:$0xff]  ;;  %v227_v34 = vld [vmem:[#allocation5 + $0x4f8] sm:$0xff] }
  0xf2   :  { %1349 = vmatprep.subr.mxu0 %v321_v35  ;;  %1420 = vmatprep.subr.mxu1 %v323_v36  ;;  %v224_v35 = vld [vmem:[#allocation5 + $0x4e0] sm:$0xff]  ;;  %v226_v36 = vld [vmem:[#allocation5 + $0x4f0] sm:$0xff] }
  0xf5   :  { %1350 = vmatpush2.xpose.msra.mxu0 %v320_v37  ;;  %1421 = vmatpush2.xpose.msra.mxu1 %v322_v38  ;;  %v217_v37 = vld [vmem:[#allocation5 + $0x4a8] sm:$0xff]  ;;  %v219_v38 = vld [vmem:[#allocation5 + $0x4b8] sm:$0xff] }
  0xf6   :  { %1351 = vmatprep.subr.mxu0 %v313_v39  ;;  %1422 = vmatprep.subr.mxu1 %v315_v40  ;;  %v216_v39 = vld [vmem:[#allocation5 + $0x4a0] sm:$0xff]  ;;  %v218_v40 = vld [vmem:[#allocation5 + $0x4b0] sm:$0xff] }
  0xf9   :  { %1352 = vmatpush2.xpose.msra.mxu0 %v312_v42  ;;  %1423 = vmatpush2.xpose.msra.mxu1 %v314_v43  ;;  %v209_v42 = vld [vmem:[#allocation5 + $0x468] sm:$0xff]  ;;  %v211_v43 = vld [vmem:[#allocation5 + $0x478] sm:$0xff] }
  0xfa   :  { %1353 = vmatprep.subr.mxu0 %v305_v44  ;;  %1424 = vmatprep.subr.mxu1 %v307_v45  ;;  %v208_v44 = vld [vmem:[#allocation5 + $0x460] sm:$0xff]  ;;  %v210_v45 = vld [vmem:[#allocation5 + $0x470] sm:$0xff] }
  0xfd   :  { %1354 = vmatpush2.xpose.msra.mxu0 %v304_v48  ;;  %1425 = vmatpush2.xpose.msra.mxu1 %v306_v49  ;;  %v201_v48 = vld [vmem:[#allocation5 + $0x428] sm:$0xff]  ;;  %v203_v49 = vld [vmem:[#allocation5 + $0x438] sm:$0xff] }
  0xfe   :  { %1355 = vmatprep.subr.mxu0 %v297_v51  ;;  %1426 = vmatprep.subr.mxu1 %v299_v52  ;;  %v2659_v51 = vsub.s32 4, %v2606_v41  ;;  %v2662_v52 = vsub.s32 6, %v2606_v41 }
 0x101   :  { %1356 = vmatpush2.xpose.msra.mxu0 %v296_v55  ;;  %1427 = vmatpush2.xpose.msra.mxu1 %v298_v56  ;;  %v200_v55 = vld [vmem:[#allocation5 + $0x420] sm:$0xff]  ;;  %v202_v56 = vld [vmem:[#allocation5 + $0x430] sm:$0xff] }
 0x102   :  { %1357 = vmatprep.subr.mxu0 %v289_v57  ;;  %1428 = vmatprep.subr.mxu1 %v291_v58  ;;  %v445_v57 = vld [vmem:[#allocation5 + $0xbc8] sm:$0xff]  ;;  %v447_v58 = vld [vmem:[#allocation5 + $0xbd8] sm:$0xff] }
 0x105   :  { %1358 = vmatpush2.xpose.msra.mxu0 %v288_v59  ;;  %1429 = vmatpush2.xpose.msra.mxu1 %v290_v60  ;;  %v2666_v59 = vrot.slane %v2614_v50, %v2659_v51  ;;  %v2670_v60 = vrot.slane %v2614_v50, %v2662_v52  ;;  %v429_v50 = vld [vmem:[#allocation5 + $0xb48] sm:$0xff] }
 0x106   :  { %1359 = vmatprep.subr.mxu0 %v281_v61  ;;  %1430 = vmatprep.subr.mxu1 %v283_v62  ;;  %v444_v61 = vld [vmem:[#allocation5 + $0xbc0] sm:$0xff]  ;;  %v446_v62 = vld [vmem:[#allocation5 + $0xbd0] sm:$0xff] }
 0x109   :  { %1360 = vmatpush2.xpose.msra.mxu0 %v280_v63  ;;  %1431 = vmatpush2.xpose.msra.mxu1 %v282_v0  ;;  %v437_v63 = vld [vmem:[#allocation5 + $0xb88] sm:$0xff]  ;;  %v439_v0 = vld [vmem:[#allocation5 + $0xb98] sm:$0xff] }
 0x10a   :  { %1361 = vmatprep.subr.mxu0 %v273_v1  ;;  %1432 = vmatprep.subr.mxu1 %v275_v2  ;;  %v436_v1 = vld [vmem:[#allocation5 + $0xb80] sm:$0xff]  ;;  %v438_v2 = vld [vmem:[#allocation5 + $0xb90] sm:$0xff] }
 0x10d   :  { %1362 = vmatpush2.xpose.msra.mxu0 %v272_v3  ;;  %1433 = vmatpush2.xpose.msra.mxu1 %v274_v4  ;;  %v431_v3 = vld [vmem:[#allocation5 + $0xb58] sm:$0xff]  ;;  %v428_v4 = vld [vmem:[#allocation5 + $0xb40] sm:$0xff] }
 0x10e   :  { %1363 = vmatprep.subr.mxu0 %v265_v5  ;;  %1434 = vmatprep.subr.mxu1 %v267_v6  ;;  %v430_v5 = vld [vmem:[#allocation5 + $0xb50] sm:$0xff]  ;;  %v421_v6 = vld [vmem:[#allocation5 + $0xb08] sm:$0xff] }
 0x111   :  { %1364 = vmatpush2.xpose.msra.mxu0 %v264_v7  ;;  %1435 = vmatpush2.xpose.msra.mxu1 %v266_v8  ;;  %v423_v7 = vld [vmem:[#allocation5 + $0xb18] sm:$0xff]  ;;  %v420_v8 = vld [vmem:[#allocation5 + $0xb00] sm:$0xff] }
 0x112   :  { %1365 = vmatprep.subr.mxu0 %v257_v9  ;;  %1436 = vmatprep.subr.mxu1 %v259_v10  ;;  %v422_v9 = vld [vmem:[#allocation5 + $0xb10] sm:$0xff]  ;;  %v413_v10 = vld [vmem:[#allocation5 + $0xac8] sm:$0xff] }
 0x115   :  { %1366 = vmatpush2.xpose.msra.mxu0 %v256_v13  ;;  %1437 = vmatpush2.xpose.msra.mxu1 %v258_v14  ;;  %v415_v13 = vld [vmem:[#allocation5 + $0xad8] sm:$0xff]  ;;  %v412_v14 = vld [vmem:[#allocation5 + $0xac0] sm:$0xff] }
 0x116   :  { %1367 = vmatprep.subr.mxu0 %v249_v15  ;;  %1438 = vmatprep.subr.mxu1 %v251_v16  ;;  %v414_v15 = vld [vmem:[#allocation5 + $0xad0] sm:$0xff]  ;;  %v405_v16 = vld [vmem:[#allocation5 + $0xa88] sm:$0xff] }
 0x119   :  { %1368 = vmatpush2.xpose.msra.mxu0 %v248_v21  ;;  %1439 = vmatpush2.xpose.msra.mxu1 %v250_v22  ;;  %v407_v21 = vld [vmem:[#allocation5 + $0xa98] sm:$0xff]  ;;  %v404_v22 = vld [vmem:[#allocation5 + $0xa80] sm:$0xff] }
 0x11a   :  { %1369 = vmatprep.subr.mxu0 %v241_v23  ;;  %1440 = vmatprep.subr.mxu1 %v243_v24  ;;  %v406_v23 = vld [vmem:[#allocation5 + $0xa90] sm:$0xff]  ;;  %v397_v24 = vld [vmem:[#allocation5 + $0xa48] sm:$0xff] }
 0x11d   :  { %1370 = vmatpush2.xpose.msra.mxu0 %v240_v27  ;;  %1441 = vmatpush2.xpose.msra.mxu1 %v242_v28  ;;  %v399_v27 = vld [vmem:[#allocation5 + $0xa58] sm:$0xff]  ;;  %v396_v28 = vld [vmem:[#allocation5 + $0xa40] sm:$0xff] }
 0x11e   :  { %1371 = vmatprep.subr.mxu0 %v233_v29  ;;  %1442 = vmatprep.subr.mxu1 %v235_v30  ;;  %v398_v29 = vld [vmem:[#allocation5 + $0xa50] sm:$0xff]  ;;  %v389_v30 = vld [vmem:[#allocation5 + $0xa08] sm:$0xff] }
 0x121   :  { %1372 = vmatpush2.xpose.msra.mxu0 %v232_v31  ;;  %1443 = vmatpush2.xpose.msra.mxu1 %v234_v32  ;;  %v391_v31 = vld [vmem:[#allocation5 + $0xa18] sm:$0xff]  ;;  %v388_v32 = vld [vmem:[#allocation5 + $0xa00] sm:$0xff] }
 0x122   :  { %1373 = vmatprep.subr.mxu0 %v225_v33  ;;  %1444 = vmatprep.subr.mxu1 %v227_v34  ;;  %v390_v33 = vld [vmem:[#allocation5 + $0xa10] sm:$0xff]  ;;  %v381_v34 = vld [vmem:[#allocation5 + $0x9c8] sm:$0xff] }
 0x125   :  { %1374 = vmatpush2.xpose.msra.mxu0 %v224_v35  ;;  %1445 = vmatpush2.xpose.msra.mxu1 %v226_v36  ;;  %v383_v35 = vld [vmem:[#allocation5 + $0x9d8] sm:$0xff]  ;;  %v380_v36 = vld [vmem:[#allocation5 + $0x9c0] sm:$0xff] }
 0x126   :  { %1375 = vmatprep.subr.mxu0 %v217_v37  ;;  %1446 = vmatprep.subr.mxu1 %v219_v38  ;;  %v382_v37 = vld [vmem:[#allocation5 + $0x9d0] sm:$0xff]  ;;  %v373_v38 = vld [vmem:[#allocation5 + $0x988] sm:$0xff] }
 0x129   :  { %1376 = vmatpush2.xpose.msra.mxu0 %v216_v39  ;;  %1447 = vmatpush2.xpose.msra.mxu1 %v218_v40  ;;  %v375_v39 = vld [vmem:[#allocation5 + $0x998] sm:$0xff]  ;;  %v372_v40 = vld [vmem:[#allocation5 + $0x980] sm:$0xff] }
 0x12a   :  { %1377 = vmatprep.subr.mxu0 %v209_v42  ;;  %1448 = vmatprep.subr.mxu1 %v211_v43  ;;  %v374_v42 = vld [vmem:[#allocation5 + $0x990] sm:$0xff]  ;;  %v365_v43 = vld [vmem:[#allocation5 + $0x948] sm:$0xff] }
 0x12d   :  { %1378 = vmatpush2.xpose.msra.mxu0 %v208_v44  ;;  %1449 = vmatpush2.xpose.msra.mxu1 %v210_v45  ;;  %v367_v44 = vld [vmem:[#allocation5 + $0x958] sm:$0xff]  ;;  %v364_v45 = vld [vmem:[#allocation5 + $0x940] sm:$0xff] }
 0x12e   :  { %1379 = vmatprep.subr.mxu0 %v201_v48  ;;  %1450 = vmatprep.subr.mxu1 %v203_v49  ;;  %v366_v48 = vld [vmem:[#allocation5 + $0x950] sm:$0xff]  ;;  %v357_v49 = vld [vmem:[#allocation5 + $0x908] sm:$0xff] }
 0x131   :  { %1380 = vmatpush2.xpose.msra.mxu0 %v200_v55  ;;  %1451 = vmatpush2.xpose.msra.mxu1 %v202_v56  ;;  %v359_v55 = vld [vmem:[#allocation5 + $0x918] sm:$0xff]  ;;  %v356_v56 = vld [vmem:[#allocation5 + $0x900] sm:$0xff] }
 0x132   :  { %1459 = vmatprep.subr.mxu0 %v445_v57  ;;  %1530 = vmatprep.subr.mxu1 %v447_v58  ;;  %v358_v57 = vld [vmem:[#allocation5 + $0x910] sm:$0xff]  ;;  %v349_v58 = vld [vmem:[#allocation5 + $0x8c8] sm:$0xff] }
 0x134   :  { %1382 = vmatmul.mubr.f32.vlgmr.msra.gmra.mxu0 %v2666_v59  ;;  %1453 = vmatmul.mubr.f32.vlgmr.msra.gmra.mxu1 %v2670_v60 }
 0x135   :  { %1460 = vmatpush1.xpose.msra.mxu0 %v444_v61  ;;  %1531 = vmatpush1.xpose.msra.mxu1 %v446_v62  ;;  %v351_v61 = vld [vmem:[#allocation5 + $0x8d8] sm:$0xff]  ;;  %v348_v62 = vld [vmem:[#allocation5 + $0x8c0] sm:$0xff] }
 0x136   :  { %1461 = vmatprep.subr.mxu0 %v437_v63  ;;  %1532 = vmatprep.subr.mxu1 %v439_v0  ;;  %v350_v63 = vld [vmem:[#allocation5 + $0x8d0] sm:$0xff]  ;;  %v341_v0 = vld [vmem:[#allocation5 + $0x888] sm:$0xff] }
 0x137   :  { %1523 = vmatprep.mubr.f32.mxu0 %v2618_v53  ;;  %1594 = vmatprep.mubr.f32.mxu1 %v2622_v54 }
 0x139   :  { %1462 = vmatpush1.xpose.msra.mxu0 %v436_v1  ;;  %1533 = vmatpush1.xpose.msra.mxu1 %v438_v2  ;;  %v343_v1 = vld [vmem:[#allocation5 + $0x898] sm:$0xff]  ;;  %v340_v2 = vld [vmem:[#allocation5 + $0x880] sm:$0xff] }
 0x13a   :  { %1463 = vmatprep.subr.mxu0 %v429_v50  ;;  %1534 = vmatprep.subr.mxu1 %v431_v3  ;;  %v342_v50 = vld [vmem:[#allocation5 + $0x890] sm:$0xff]  ;;  %v333_v3 = vld [vmem:[#allocation5 + $0x848] sm:$0xff] }
 0x13d   :  { %1464 = vmatpush1.xpose.msra.mxu0 %v428_v4  ;;  %1535 = vmatpush1.xpose.msra.mxu1 %v430_v5  ;;  %v335_v4 = vld [vmem:[#allocation5 + $0x858] sm:$0xff]  ;;  %v332_v5 = vld [vmem:[#allocation5 + $0x840] sm:$0xff] }
 0x13e   :  { %1465 = vmatprep.subr.mxu0 %v421_v6  ;;  %1536 = vmatprep.subr.mxu1 %v423_v7  ;;  %v334_v6 = vld [vmem:[#allocation5 + $0x850] sm:$0xff]  ;;  %v325_v7 = vld [vmem:[#allocation5 + $0x808] sm:$0xff] }
 0x141   :  { %1466 = vmatpush1.xpose.msra.mxu0 %v420_v8  ;;  %1537 = vmatpush1.xpose.msra.mxu1 %v422_v9  ;;  %v327_v8 = vld [vmem:[#allocation5 + $0x818] sm:$0xff]  ;;  %v324_v9 = vld [vmem:[#allocation5 + $0x800] sm:$0xff] }
 0x142   :  { %1467 = vmatprep.subr.mxu0 %v413_v10  ;;  %1538 = vmatprep.subr.mxu1 %v415_v13  ;;  %v326_v10 = vld [vmem:[#allocation5 + $0x810] sm:$0xff]  ;;  %v573_v13 = vld [vmem:[#allocation5 + $0xfc8] sm:$0xff] }
 0x145   :  { %1468 = vmatpush1.xpose.msra.mxu0 %v412_v14  ;;  %1539 = vmatpush1.xpose.msra.mxu1 %v414_v15  ;;  %v575_v14 = vld [vmem:[#allocation5 + $0xfd8] sm:$0xff]  ;;  %v572_v15 = vld [vmem:[#allocation5 + $0xfc0] sm:$0xff] }
 0x146   :  { %1469 = vmatprep.subr.mxu0 %v405_v16  ;;  %1540 = vmatprep.subr.mxu1 %v407_v21  ;;  %v574_v16 = vld [vmem:[#allocation5 + $0xfd0] sm:$0xff]  ;;  %v565_v21 = vld [vmem:[#allocation5 + $0xf88] sm:$0xff] }
 0x149   :  { %1470 = vmatpush1.xpose.msra.mxu0 %v404_v22  ;;  %1541 = vmatpush1.xpose.msra.mxu1 %v406_v23  ;;  %v567_v22 = vld [vmem:[#allocation5 + $0xf98] sm:$0xff]  ;;  %v564_v23 = vld [vmem:[#allocation5 + $0xf80] sm:$0xff] }
 0x14a   :  { %1471 = vmatprep.subr.mxu0 %v397_v24  ;;  %1542 = vmatprep.subr.mxu1 %v399_v27  ;;  %v566_v24 = vld [vmem:[#allocation5 + $0xf90] sm:$0xff]  ;;  %v557_v27 = vld [vmem:[#allocation5 + $0xf48] sm:$0xff] }
 0x14d   :  { %1472 = vmatpush1.xpose.msra.mxu0 %v396_v28  ;;  %1543 = vmatpush1.xpose.msra.mxu1 %v398_v29  ;;  %v559_v28 = vld [vmem:[#allocation5 + $0xf58] sm:$0xff]  ;;  %v556_v29 = vld [vmem:[#allocation5 + $0xf40] sm:$0xff] }
 0x14e   :  { %1473 = vmatprep.subr.mxu0 %v389_v30  ;;  %1544 = vmatprep.subr.mxu1 %v391_v31  ;;  %v558_v30 = vld [vmem:[#allocation5 + $0xf50] sm:$0xff]  ;;  %v549_v31 = vld [vmem:[#allocation5 + $0xf08] sm:$0xff] }
 0x151   :  { %1474 = vmatpush1.xpose.msra.mxu0 %v388_v32  ;;  %1545 = vmatpush1.xpose.msra.mxu1 %v390_v33  ;;  %v551_v32 = vld [vmem:[#allocation5 + $0xf18] sm:$0xff]  ;;  %v548_v33 = vld [vmem:[#allocation5 + $0xf00] sm:$0xff] }
 0x152   :  { %1475 = vmatprep.subr.mxu0 %v381_v34  ;;  %1546 = vmatprep.subr.mxu1 %v383_v35  ;;  %v550_v34 = vld [vmem:[#allocation5 + $0xf10] sm:$0xff]  ;;  %v541_v35 = vld [vmem:[#allocation5 + $0xec8] sm:$0xff] }
 0x155   :  { %1476 = vmatpush1.xpose.msra.mxu0 %v380_v36  ;;  %1547 = vmatpush1.xpose.msra.mxu1 %v382_v37  ;;  %v543_v36 = vld [vmem:[#allocation5 + $0xed8] sm:$0xff]  ;;  %v540_v37 = vld [vmem:[#allocation5 + $0xec0] sm:$0xff] }
 0x156   :  { %1477 = vmatprep.subr.mxu0 %v373_v38  ;;  %1548 = vmatprep.subr.mxu1 %v375_v39  ;;  %v542_v38 = vld [vmem:[#allocation5 + $0xed0] sm:$0xff]  ;;  %v533_v39 = vld [vmem:[#allocation5 + $0xe88] sm:$0xff] }
 0x159   :  { %1478 = vmatpush1.xpose.msra.mxu0 %v372_v40  ;;  %1549 = vmatpush1.xpose.msra.mxu1 %v374_v42  ;;  %v535_v40 = vld [vmem:[#allocation5 + $0xe98] sm:$0xff]  ;;  %v532_v42 = vld [vmem:[#allocation5 + $0xe80] sm:$0xff] }
 0x15a   :  { %1479 = vmatprep.subr.mxu0 %v365_v43  ;;  %1550 = vmatprep.subr.mxu1 %v367_v44  ;;  %v534_v43 = vld [vmem:[#allocation5 + $0xe90] sm:$0xff]  ;;  %v525_v44 = vld [vmem:[#allocation5 + $0xe48] sm:$0xff] }
 0x15d   :  { %1480 = vmatpush1.xpose.msra.mxu0 %v364_v45  ;;  %1551 = vmatpush1.xpose.msra.mxu1 %v366_v48  ;;  %v527_v45 = vld [vmem:[#allocation5 + $0xe58] sm:$0xff]  ;;  %v524_v48 = vld [vmem:[#allocation5 + $0xe40] sm:$0xff] }
 0x15e   :  { %1481 = vmatprep.subr.mxu0 %v357_v49  ;;  %1552 = vmatprep.subr.mxu1 %v359_v55  ;;  %v526_v49 = vld [vmem:[#allocation5 + $0xe50] sm:$0xff]  ;;  %v517_v55 = vld [vmem:[#allocation5 + $0xe08] sm:$0xff] }
 0x161   :  { %1482 = vmatpush1.xpose.msra.mxu0 %v356_v56  ;;  %1553 = vmatpush1.xpose.msra.mxu1 %v358_v57  ;;  %v519_v56 = vld [vmem:[#allocation5 + $0xe18] sm:$0xff]  ;;  %v516_v57 = vld [vmem:[#allocation5 + $0xe00] sm:$0xff] }
 0x162   :  { %1483 = vmatprep.subr.mxu0 %v349_v58  ;;  %1554 = vmatprep.subr.mxu1 %v351_v61  ;;  %v518_v58 = vld [vmem:[#allocation5 + $0xe10] sm:$0xff]  ;;  %v509_v61 = vld [vmem:[#allocation5 + $0xdc8] sm:$0xff] }
 0x165   :  { %1484 = vmatpush1.xpose.msra.mxu0 %v348_v62  ;;  %1555 = vmatpush1.xpose.msra.mxu1 %v350_v63  ;;  %v511_v62 = vld [vmem:[#allocation5 + $0xdd8] sm:$0xff]  ;;  %v508_v63 = vld [vmem:[#allocation5 + $0xdc0] sm:$0xff] }
 0x166   :  { %1485 = vmatprep.subr.mxu0 %v341_v0  ;;  %1556 = vmatprep.subr.mxu1 %v343_v1  ;;  %v510_v0 = vld [vmem:[#allocation5 + $0xdd0] sm:$0xff]  ;;  %v501_v1 = vld [vmem:[#allocation5 + $0xd88] sm:$0xff] }
 0x169   :  { %1486 = vmatpush1.xpose.msra.mxu0 %v340_v2  ;;  %1557 = vmatpush1.xpose.msra.mxu1 %v342_v50  ;;  %v503_v2 = vld [vmem:[#allocation5 + $0xd98] sm:$0xff]  ;;  %v500_v50 = vld [vmem:[#allocation5 + $0xd80] sm:$0xff] }
 0x16a   :  { %1487 = vmatprep.subr.mxu0 %v333_v3  ;;  %1558 = vmatprep.subr.mxu1 %v335_v4  ;;  %v502_v3 = vld [vmem:[#allocation5 + $0xd90] sm:$0xff]  ;;  %v493_v4 = vld [vmem:[#allocation5 + $0xd48] sm:$0xff] }
 0x16d   :  { %1488 = vmatpush1.xpose.msra.mxu0 %v332_v5  ;;  %1559 = vmatpush1.xpose.msra.mxu1 %v334_v6  ;;  %v495_v5 = vld [vmem:[#allocation5 + $0xd58] sm:$0xff]  ;;  %v492_v6 = vld [vmem:[#allocation5 + $0xd40] sm:$0xff] }
 0x16e   :  { %1489 = vmatprep.subr.mxu0 %v325_v7  ;;  %1560 = vmatprep.subr.mxu1 %v327_v8  ;;  %v494_v7 = vld [vmem:[#allocation5 + $0xd50] sm:$0xff]  ;;  %v485_v8 = vld [vmem:[#allocation5 + $0xd08] sm:$0xff] }
 0x171   :  { %1490 = vmatpush1.xpose.msra.mxu0 %v324_v9  ;;  %1561 = vmatpush1.xpose.msra.mxu1 %v326_v10  ;;  %v487_v9 = vld [vmem:[#allocation5 + $0xd18] sm:$0xff]  ;;  %v484_v10 = vld [vmem:[#allocation5 + $0xd00] sm:$0xff] }
 0x172   :  { %1491 = vmatprep.subr.mxu0 %v573_v13  ;;  %1562 = vmatprep.subr.mxu1 %v575_v14  ;;  %v486_v13 = vld [vmem:[#allocation5 + $0xd10] sm:$0xff]  ;;  %v477_v14 = vld [vmem:[#allocation5 + $0xcc8] sm:$0xff] }
 0x175   :  { %1492 = vmatpush2.xpose.msra.mxu0 %v572_v15  ;;  %1563 = vmatpush2.xpose.msra.mxu1 %v574_v16  ;;  %v479_v15 = vld [vmem:[#allocation5 + $0xcd8] sm:$0xff]  ;;  %v476_v16 = vld [vmem:[#allocation5 + $0xcc0] sm:$0xff] }
 0x176   :  { %1493 = vmatprep.subr.mxu0 %v565_v21  ;;  %1564 = vmatprep.subr.mxu1 %v567_v22  ;;  %v478_v21 = vld [vmem:[#allocation5 + $0xcd0] sm:$0xff]  ;;  %v469_v22 = vld [vmem:[#allocation5 + $0xc88] sm:$0xff] }
 0x179   :  { %1494 = vmatpush2.xpose.msra.mxu0 %v564_v23  ;;  %1565 = vmatpush2.xpose.msra.mxu1 %v566_v24  ;;  %v471_v23 = vld [vmem:[#allocation5 + $0xc98] sm:$0xff]  ;;  %v468_v24 = vld [vmem:[#allocation5 + $0xc80] sm:$0xff] }
 0x17a   :  { %1495 = vmatprep.subr.mxu0 %v557_v27  ;;  %1566 = vmatprep.subr.mxu1 %v559_v28  ;;  %v470_v27 = vld [vmem:[#allocation5 + $0xc90] sm:$0xff]  ;;  %v461_v28 = vld [vmem:[#allocation5 + $0xc48] sm:$0xff] }
 0x17d   :  { %1496 = vmatpush2.xpose.msra.mxu0 %v556_v29  ;;  %1567 = vmatpush2.xpose.msra.mxu1 %v558_v30  ;;  %v463_v29 = vld [vmem:[#allocation5 + $0xc58] sm:$0xff]  ;;  %v460_v30 = vld [vmem:[#allocation5 + $0xc40] sm:$0xff] }
 0x17e   :  { %1497 = vmatprep.subr.mxu0 %v549_v31  ;;  %1568 = vmatprep.subr.mxu1 %v551_v32  ;;  %v462_v31 = vld [vmem:[#allocation5 + $0xc50] sm:$0xff]  ;;  %v453_v32 = vld [vmem:[#allocation5 + $0xc08] sm:$0xff] }
 0x181   :  { %1498 = vmatpush2.xpose.msra.mxu0 %v548_v33  ;;  %1569 = vmatpush2.xpose.msra.mxu1 %v550_v34  ;;  %v455_v33 = vld [vmem:[#allocation5 + $0xc18] sm:$0xff]  ;;  %v452_v34 = vld [vmem:[#allocation5 + $0xc00] sm:$0xff] }
 0x182   :  { %1499 = vmatprep.subr.mxu0 %v541_v35  ;;  %1570 = vmatprep.subr.mxu1 %v543_v36  ;;  %v454_v35 = vld [vmem:[#allocation5 + $0xc10] sm:$0xff]  ;;  %v449_v36 = vld [vmem:[#allocation5 + $0xbe8] sm:$0xff] }
 0x185   :  { %1500 = vmatpush2.xpose.msra.mxu0 %v540_v37  ;;  %1571 = vmatpush2.xpose.msra.mxu1 %v542_v38  ;;  %v451_v37 = vld [vmem:[#allocation5 + $0xbf8] sm:$0xff]  ;;  %v448_v38 = vld [vmem:[#allocation5 + $0xbe0] sm:$0xff] }
 0x186   :  { %1501 = vmatprep.subr.mxu0 %v533_v39  ;;  %1572 = vmatprep.subr.mxu1 %v535_v40  ;;  %v450_v39 = vld [vmem:[#allocation5 + $0xbf0] sm:$0xff]  ;;  %v441_v40 = vld [vmem:[#allocation5 + $0xba8] sm:$0xff] }
 0x189   :  { %1502 = vmatpush2.xpose.msra.mxu0 %v532_v42  ;;  %1573 = vmatpush2.xpose.msra.mxu1 %v534_v43  ;;  %v443_v42 = vld [vmem:[#allocation5 + $0xbb8] sm:$0xff]  ;;  %v440_v43 = vld [vmem:[#allocation5 + $0xba0] sm:$0xff] }
 0x18a   :  { %1503 = vmatprep.subr.mxu0 %v525_v44  ;;  %1574 = vmatprep.subr.mxu1 %v527_v45  ;;  %v442_v44 = vld [vmem:[#allocation5 + $0xbb0] sm:$0xff]  ;;  %v433_v45 = vld [vmem:[#allocation5 + $0xb68] sm:$0xff] }
 0x18d   :  { %1504 = vmatpush2.xpose.msra.mxu0 %v524_v48  ;;  %1575 = vmatpush2.xpose.msra.mxu1 %v526_v49  ;;  %v435_v48 = vld [vmem:[#allocation5 + $0xb78] sm:$0xff]  ;;  %v432_v49 = vld [vmem:[#allocation5 + $0xb60] sm:$0xff] }
 0x18e   :  { %1505 = vmatprep.subr.mxu0 %v517_v55  ;;  %1576 = vmatprep.subr.mxu1 %v519_v56  ;;  %v434_v55 = vld [vmem:[#allocation5 + $0xb70] sm:$0xff]  ;;  %v425_v56 = vld [vmem:[#allocation5 + $0xb28] sm:$0xff] }
 0x191   :  { %1506 = vmatpush2.xpose.msra.mxu0 %v516_v57  ;;  %1577 = vmatpush2.xpose.msra.mxu1 %v518_v58  ;;  %v427_v57 = vld [vmem:[#allocation5 + $0xb38] sm:$0xff]  ;;  %v424_v58 = vld [vmem:[#allocation5 + $0xb20] sm:$0xff] }
 0x192   :  { %1507 = vmatprep.subr.mxu0 %v509_v61  ;;  %1578 = vmatprep.subr.mxu1 %v511_v62  ;;  %v426_v61 = vld [vmem:[#allocation5 + $0xb30] sm:$0xff]  ;;  %v417_v62 = vld [vmem:[#allocation5 + $0xae8] sm:$0xff] }
 0x195   :  { %1508 = vmatpush2.xpose.msra.mxu0 %v508_v63  ;;  %1579 = vmatpush2.xpose.msra.mxu1 %v510_v0  ;;  %v419_v63 = vld [vmem:[#allocation5 + $0xaf8] sm:$0xff]  ;;  %v416_v0 = vld [vmem:[#allocation5 + $0xae0] sm:$0xff] }
 0x196   :  { %1509 = vmatprep.subr.mxu0 %v501_v1  ;;  %1580 = vmatprep.subr.mxu1 %v503_v2  ;;  %v418_v1 = vld [vmem:[#allocation5 + $0xaf0] sm:$0xff]  ;;  %v409_v2 = vld [vmem:[#allocation5 + $0xaa8] sm:$0xff] }
 0x199   :  { %1510 = vmatpush2.xpose.msra.mxu0 %v500_v50  ;;  %1581 = vmatpush2.xpose.msra.mxu1 %v502_v3  ;;  %v411_v50 = vld [vmem:[#allocation5 + $0xab8] sm:$0xff]  ;;  %v408_v3 = vld [vmem:[#allocation5 + $0xaa0] sm:$0xff] }
 0x19a   :  { %1511 = vmatprep.subr.mxu0 %v493_v4  ;;  %1582 = vmatprep.subr.mxu1 %v495_v5  ;;  %v410_v4 = vld [vmem:[#allocation5 + $0xab0] sm:$0xff]  ;;  %v401_v5 = vld [vmem:[#allocation5 + $0xa68] sm:$0xff] }
 0x19d   :  { %1512 = vmatpush2.xpose.msra.mxu0 %v492_v6  ;;  %1583 = vmatpush2.xpose.msra.mxu1 %v494_v7  ;;  %v403_v6 = vld [vmem:[#allocation5 + $0xa78] sm:$0xff]  ;;  %v400_v7 = vld [vmem:[#allocation5 + $0xa60] sm:$0xff] }
 0x19e   :  { %1513 = vmatprep.subr.mxu0 %v485_v8  ;;  %1584 = vmatprep.subr.mxu1 %v487_v9  ;;  %v402_v8 = vld [vmem:[#allocation5 + $0xa70] sm:$0xff]  ;;  %v393_v9 = vld [vmem:[#allocation5 + $0xa28] sm:$0xff] }
 0x1a1   :  { %1514 = vmatpush2.xpose.msra.mxu0 %v484_v10  ;;  %1585 = vmatpush2.xpose.msra.mxu1 %v486_v13  ;;  %v395_v10 = vld [vmem:[#allocation5 + $0xa38] sm:$0xff]  ;;  %v392_v13 = vld [vmem:[#allocation5 + $0xa20] sm:$0xff] }
 0x1a2   :  { %1515 = vmatprep.subr.mxu0 %v477_v14  ;;  %1586 = vmatprep.subr.mxu1 %v479_v15  ;;  %v394_v14 = vld [vmem:[#allocation5 + $0xa30] sm:$0xff]  ;;  %v385_v15 = vld [vmem:[#allocation5 + $0x9e8] sm:$0xff] }
 0x1a5   :  { %1516 = vmatpush2.xpose.msra.mxu0 %v476_v16  ;;  %1587 = vmatpush2.xpose.msra.mxu1 %v478_v21  ;;  %v387_v16 = vld [vmem:[#allocation5 + $0x9f8] sm:$0xff]  ;;  %v384_v21 = vld [vmem:[#allocation5 + $0x9e0] sm:$0xff] }
 0x1a6   :  { %1517 = vmatprep.subr.mxu0 %v469_v22  ;;  %1588 = vmatprep.subr.mxu1 %v471_v23  ;;  %v386_v22 = vld [vmem:[#allocation5 + $0x9f0] sm:$0xff]  ;;  %v377_v23 = vld [vmem:[#allocation5 + $0x9a8] sm:$0xff] }
 0x1a9   :  { %1518 = vmatpush2.xpose.msra.mxu0 %v468_v24  ;;  %1589 = vmatpush2.xpose.msra.mxu1 %v470_v27  ;;  %v379_v24 = vld [vmem:[#allocation5 + $0x9b8] sm:$0xff]  ;;  %v376_v27 = vld [vmem:[#allocation5 + $0x9a0] sm:$0xff] }
 0x1aa   :  { %1519 = vmatprep.subr.mxu0 %v461_v28  ;;  %1590 = vmatprep.subr.mxu1 %v463_v29  ;;  %v378_v28 = vld [vmem:[#allocation5 + $0x9b0] sm:$0xff]  ;;  %v369_v29 = vld [vmem:[#allocation5 + $0x968] sm:$0xff] }
 0x1ad   :  { %1520 = vmatpush2.xpose.msra.mxu0 %v460_v30  ;;  %1591 = vmatpush2.xpose.msra.mxu1 %v462_v31  ;;  %v371_v30 = vld [vmem:[#allocation5 + $0x978] sm:$0xff]  ;;  %v368_v31 = vld [vmem:[#allocation5 + $0x960] sm:$0xff] }
 0x1ae   :  { %1521 = vmatprep.subr.mxu0 %v453_v32  ;;  %1592 = vmatprep.subr.mxu1 %v455_v33  ;;  %v370_v32 = vld [vmem:[#allocation5 + $0x970] sm:$0xff]  ;;  %v361_v33 = vld [vmem:[#allocation5 + $0x928] sm:$0xff] }
 0x1b1   :  { %1522 = vmatpush2.xpose.msra.mxu0 %v452_v34  ;;  %1593 = vmatpush2.xpose.msra.mxu1 %v454_v35  ;;  %v363_v34 = vld [vmem:[#allocation5 + $0x938] sm:$0xff]  ;;  %v360_v35 = vld [vmem:[#allocation5 + $0x920] sm:$0xff] }
 0x1b2   :  { %1601 = vmatprep.subr.mxu0 %v449_v36  ;;  %1672 = vmatprep.subr.mxu1 %v451_v37  ;;  %v362_v36 = vld [vmem:[#allocation5 + $0x930] sm:$0xff]  ;;  %v353_v37 = vld [vmem:[#allocation5 + $0x8e8] sm:$0xff] }
 0x1b4   :  { %1524 = vmatmul.mubr.f32.vlgmr.msra.gmra.mxu0 %v2637_v18  ;;  %1595 = vmatmul.mubr.f32.vlgmr.msra.gmra.mxu1 %v2641_v19 }
 0x1b5   :  { %1602 = vmatpush1.xpose.msra.mxu0 %v448_v38  ;;  %1673 = vmatpush1.xpose.msra.mxu1 %v450_v39  ;;  %v355_v38 = vld [vmem:[#allocation5 + $0x8f8] sm:$0xff]  ;;  %v352_v39 = vld [vmem:[#allocation5 + $0x8e0] sm:$0xff] }
 0x1b6   :  { %1603 = vmatprep.subr.mxu0 %v441_v40  ;;  %1674 = vmatprep.subr.mxu1 %v443_v42  ;;  %v354_v40 = vld [vmem:[#allocation5 + $0x8f0] sm:$0xff]  ;;  %v345_v42 = vld [vmem:[#allocation5 + $0x8a8] sm:$0xff] }
 0x1b7   :  { %1665 = vmatprep.mubr.f32.mxu0 %v2648_v25  ;;  %1736 = vmatprep.mubr.f32.mxu1 %v2652_v26 }
 0x1b9   :  { %1604 = vmatpush1.xpose.msra.mxu0 %v440_v43  ;;  %1675 = vmatpush1.xpose.msra.mxu1 %v442_v44  ;;  %v347_v43 = vld [vmem:[#allocation5 + $0x8b8] sm:$0xff]  ;;  %v344_v44 = vld [vmem:[#allocation5 + $0x8a0] sm:$0xff] }
 0x1ba   :  { %1605 = vmatprep.subr.mxu0 %v433_v45  ;;  %1676 = vmatprep.subr.mxu1 %v435_v48  ;;  %v346_v45 = vld [vmem:[#allocation5 + $0x8b0] sm:$0xff]  ;;  %v337_v48 = vld [vmem:[#allocation5 + $0x868] sm:$0xff] }
 0x1bd   :  { %1606 = vmatpush1.xpose.msra.mxu0 %v432_v49  ;;  %1677 = vmatpush1.xpose.msra.mxu1 %v434_v55  ;;  %v339_v49 = vld [vmem:[#allocation5 + $0x878] sm:$0xff]  ;;  %v336_v55 = vld [vmem:[#allocation5 + $0x860] sm:$0xff] }
 0x1be   :  { %1607 = vmatprep.subr.mxu0 %v425_v56  ;;  %1678 = vmatprep.subr.mxu1 %v427_v57  ;;  %v338_v56 = vld [vmem:[#allocation5 + $0x870] sm:$0xff]  ;;  %v329_v57 = vld [vmem:[#allocation5 + $0x828] sm:$0xff] }
 0x1c1   :  { %1608 = vmatpush1.xpose.msra.mxu0 %v424_v58  ;;  %1679 = vmatpush1.xpose.msra.mxu1 %v426_v61  ;;  %v331_v58 = vld [vmem:[#allocation5 + $0x838] sm:$0xff]  ;;  %v328_v61 = vld [vmem:[#allocation5 + $0x820] sm:$0xff] }
 0x1c2   :  { %1609 = vmatprep.subr.mxu0 %v417_v62  ;;  %1680 = vmatprep.subr.mxu1 %v419_v63  ;;  %v330_v62 = vld [vmem:[#allocation5 + $0x830] sm:$0xff]  ;;  %v577_v63 = vld [vmem:[#allocation5 + $0xfe8] sm:$0xff] }
 0x1c5   :  { %1610 = vmatpush1.xpose.msra.mxu0 %v416_v0  ;;  %1681 = vmatpush1.xpose.msra.mxu1 %v418_v1  ;;  %v579_v0 = vld [vmem:[#allocation5 + $0xff8] sm:$0xff]  ;;  %v576_v1 = vld [vmem:[#allocation5 + $0xfe0] sm:$0xff] }
 0x1c6   :  { %1611 = vmatprep.subr.mxu0 %v409_v2  ;;  %1682 = vmatprep.subr.mxu1 %v411_v50  ;;  %v578_v2 = vld [vmem:[#allocation5 + $0xff0] sm:$0xff]  ;;  %v569_v50 = vld [vmem:[#allocation5 + $0xfa8] sm:$0xff] }
 0x1c9   :  { %1612 = vmatpush1.xpose.msra.mxu0 %v408_v3  ;;  %1683 = vmatpush1.xpose.msra.mxu1 %v410_v4  ;;  %v571_v3 = vld [vmem:[#allocation5 + $0xfb8] sm:$0xff]  ;;  %v568_v4 = vld [vmem:[#allocation5 + $0xfa0] sm:$0xff] }
 0x1ca   :  { %1613 = vmatprep.subr.mxu0 %v401_v5  ;;  %1684 = vmatprep.subr.mxu1 %v403_v6  ;;  %v570_v5 = vld [vmem:[#allocation5 + $0xfb0] sm:$0xff]  ;;  %v561_v6 = vld [vmem:[#allocation5 + $0xf68] sm:$0xff] }
 0x1cd   :  { %1614 = vmatpush1.xpose.msra.mxu0 %v400_v7  ;;  %1685 = vmatpush1.xpose.msra.mxu1 %v402_v8  ;;  %v563_v7 = vld [vmem:[#allocation5 + $0xf78] sm:$0xff]  ;;  %v560_v8 = vld [vmem:[#allocation5 + $0xf60] sm:$0xff] }
 0x1ce   :  { %1615 = vmatprep.subr.mxu0 %v393_v9  ;;  %1686 = vmatprep.subr.mxu1 %v395_v10  ;;  %v562_v9 = vld [vmem:[#allocation5 + $0xf70] sm:$0xff]  ;;  %v553_v10 = vld [vmem:[#allocation5 + $0xf28] sm:$0xff] }
 0x1d1   :  { %1616 = vmatpush1.xpose.msra.mxu0 %v392_v13  ;;  %1687 = vmatpush1.xpose.msra.mxu1 %v394_v14  ;;  %v555_v13 = vld [vmem:[#allocation5 + $0xf38] sm:$0xff]  ;;  %v552_v14 = vld [vmem:[#allocation5 + $0xf20] sm:$0xff] }
 0x1d2   :  { %1617 = vmatprep.subr.mxu0 %v385_v15  ;;  %1688 = vmatprep.subr.mxu1 %v387_v16  ;;  %v554_v15 = vld [vmem:[#allocation5 + $0xf30] sm:$0xff]  ;;  %v545_v16 = vld [vmem:[#allocation5 + $0xee8] sm:$0xff] }
 0x1d5   :  { %1618 = vmatpush1.xpose.msra.mxu0 %v384_v21  ;;  %1689 = vmatpush1.xpose.msra.mxu1 %v386_v22  ;;  %v547_v21 = vld [vmem:[#allocation5 + $0xef8] sm:$0xff]  ;;  %v544_v22 = vld [vmem:[#allocation5 + $0xee0] sm:$0xff] }
 0x1d6   :  { %1619 = vmatprep.subr.mxu0 %v377_v23  ;;  %1690 = vmatprep.subr.mxu1 %v379_v24  ;;  %v546_v23 = vld [vmem:[#allocation5 + $0xef0] sm:$0xff]  ;;  %v537_v24 = vld [vmem:[#allocation5 + $0xea8] sm:$0xff] }
 0x1d9   :  { %1620 = vmatpush1.xpose.msra.mxu0 %v376_v27  ;;  %1691 = vmatpush1.xpose.msra.mxu1 %v378_v28  ;;  %v539_v27 = vld [vmem:[#allocation5 + $0xeb8] sm:$0xff]  ;;  %v536_v28 = vld [vmem:[#allocation5 + $0xea0] sm:$0xff] }
 0x1da   :  { %1621 = vmatprep.subr.mxu0 %v369_v29  ;;  %1692 = vmatprep.subr.mxu1 %v371_v30  ;;  %v538_v29 = vld [vmem:[#allocation5 + $0xeb0] sm:$0xff]  ;;  %v529_v30 = vld [vmem:[#allocation5 + $0xe68] sm:$0xff] }
 0x1dd   :  { %1622 = vmatpush1.xpose.msra.mxu0 %v368_v31  ;;  %1693 = vmatpush1.xpose.msra.mxu1 %v370_v32  ;;  %v531_v31 = vld [vmem:[#allocation5 + $0xe78] sm:$0xff]  ;;  %v528_v32 = vld [vmem:[#allocation5 + $0xe60] sm:$0xff] }
 0x1de   :  { %1623 = vmatprep.subr.mxu0 %v361_v33  ;;  %1694 = vmatprep.subr.mxu1 %v363_v34  ;;  %v530_v33 = vld [vmem:[#allocation5 + $0xe70] sm:$0xff]  ;;  %v521_v34 = vld [vmem:[#allocation5 + $0xe28] sm:$0xff] }
 0x1e1   :  { %1624 = vmatpush1.xpose.msra.mxu0 %v360_v35  ;;  %1695 = vmatpush1.xpose.msra.mxu1 %v362_v36  ;;  %v523_v35 = vld [vmem:[#allocation5 + $0xe38] sm:$0xff]  ;;  %v520_v36 = vld [vmem:[#allocation5 + $0xe20] sm:$0xff] }
 0x1e2   :  { %1625 = vmatprep.subr.mxu0 %v353_v37  ;;  %1696 = vmatprep.subr.mxu1 %v355_v38  ;;  %v522_v37 = vld [vmem:[#allocation5 + $0xe30] sm:$0xff]  ;;  %v513_v38 = vld [vmem:[#allocation5 + $0xde8] sm:$0xff] }
 0x1e5   :  { %1626 = vmatpush1.xpose.msra.mxu0 %v352_v39  ;;  %1697 = vmatpush1.xpose.msra.mxu1 %v354_v40  ;;  %v515_v39 = vld [vmem:[#allocation5 + $0xdf8] sm:$0xff]  ;;  %v512_v40 = vld [vmem:[#allocation5 + $0xde0] sm:$0xff] }
 0x1e6   :  { %1627 = vmatprep.subr.mxu0 %v345_v42  ;;  %1698 = vmatprep.subr.mxu1 %v347_v43  ;;  %v514_v42 = vld [vmem:[#allocation5 + $0xdf0] sm:$0xff]  ;;  %v505_v43 = vld [vmem:[#allocation5 + $0xda8] sm:$0xff] }
 0x1e9   :  { %1628 = vmatpush1.xpose.msra.mxu0 %v344_v44  ;;  %1699 = vmatpush1.xpose.msra.mxu1 %v346_v45  ;;  %v507_v44 = vld [vmem:[#allocation5 + $0xdb8] sm:$0xff]  ;;  %v504_v45 = vld [vmem:[#allocation5 + $0xda0] sm:$0xff] }
 0x1ea   :  { %1629 = vmatprep.subr.mxu0 %v337_v48  ;;  %1700 = vmatprep.subr.mxu1 %v339_v49  ;;  %v506_v48 = vld [vmem:[#allocation5 + $0xdb0] sm:$0xff]  ;;  %v497_v49 = vld [vmem:[#allocation5 + $0xd68] sm:$0xff] }
 0x1ed   :  { %1630 = vmatpush1.xpose.msra.mxu0 %v336_v55  ;;  %1701 = vmatpush1.xpose.msra.mxu1 %v338_v56  ;;  %v499_v55 = vld [vmem:[#allocation5 + $0xd78] sm:$0xff]  ;;  %v496_v56 = vld [vmem:[#allocation5 + $0xd60] sm:$0xff] }
 0x1ee   :  { %1631 = vmatprep.subr.mxu0 %v329_v57  ;;  %1702 = vmatprep.subr.mxu1 %v331_v58  ;;  %v498_v57 = vld [vmem:[#allocation5 + $0xd70] sm:$0xff]  ;;  %v489_v58 = vld [vmem:[#allocation5 + $0xd28] sm:$0xff] }
 0x1f1   :  { %1632 = vmatpush1.xpose.msra.mxu0 %v328_v61  ;;  %1703 = vmatpush1.xpose.msra.mxu1 %v330_v62  ;;  %v491_v61 = vld [vmem:[#allocation5 + $0xd38] sm:$0xff]  ;;  %v488_v62 = vld [vmem:[#allocation5 + $0xd20] sm:$0xff] }
 0x1f2   :  { %1633 = vmatprep.subr.mxu0 %v577_v63  ;;  %1704 = vmatprep.subr.mxu1 %v579_v0  ;;  %v490_v63 = vld [vmem:[#allocation5 + $0xd30] sm:$0xff]  ;;  %v481_v0 = vld [vmem:[#allocation5 + $0xce8] sm:$0xff] }
 0x1f5   :  { %1634 = vmatpush2.xpose.msra.mxu0 %v576_v1  ;;  %1705 = vmatpush2.xpose.msra.mxu1 %v578_v2  ;;  %v483_v1 = vld [vmem:[#allocation5 + $0xcf8] sm:$0xff]  ;;  %v480_v2 = vld [vmem:[#allocation5 + $0xce0] sm:$0xff] }
 0x1f6   :  { %1635 = vmatprep.subr.mxu0 %v569_v50  ;;  %1706 = vmatprep.subr.mxu1 %v571_v3  ;;  %v482_v50 = vld [vmem:[#allocation5 + $0xcf0] sm:$0xff]  ;;  %v473_v3 = vld [vmem:[#allocation5 + $0xca8] sm:$0xff] }
 0x1f9   :  { %1636 = vmatpush2.xpose.msra.mxu0 %v568_v4  ;;  %1707 = vmatpush2.xpose.msra.mxu1 %v570_v5  ;;  %v475_v4 = vld [vmem:[#allocation5 + $0xcb8] sm:$0xff]  ;;  %v472_v5 = vld [vmem:[#allocation5 + $0xca0] sm:$0xff] }
 0x1fa   :  { %1637 = vmatprep.subr.mxu0 %v561_v6  ;;  %1708 = vmatprep.subr.mxu1 %v563_v7  ;;  %v474_v6 = vld [vmem:[#allocation5 + $0xcb0] sm:$0xff]  ;;  %v465_v7 = vld [vmem:[#allocation5 + $0xc68] sm:$0xff] }
 0x1fd   :  { %1638 = vmatpush2.xpose.msra.mxu0 %v560_v8  ;;  %1709 = vmatpush2.xpose.msra.mxu1 %v562_v9  ;;  %v467_v8 = vld [vmem:[#allocation5 + $0xc78] sm:$0xff]  ;;  %v464_v9 = vld [vmem:[#allocation5 + $0xc60] sm:$0xff] }
 0x1fe   :  { %1639 = vmatprep.subr.mxu0 %v553_v10  ;;  %1710 = vmatprep.subr.mxu1 %v555_v13  ;;  %v466_v10 = vld [vmem:[#allocation5 + $0xc70] sm:$0xff]  ;;  %v457_v13 = vld [vmem:[#allocation5 + $0xc28] sm:$0xff] }
 0x201   :  { %1640 = vmatpush2.xpose.msra.mxu0 %v552_v14  ;;  %1711 = vmatpush2.xpose.msra.mxu1 %v554_v15  ;;  %v459_v14 = vld [vmem:[#allocation5 + $0xc38] sm:$0xff]  ;;  %v456_v15 = vld [vmem:[#allocation5 + $0xc20] sm:$0xff] }
 0x202   :  { %1641 = vmatprep.subr.mxu0 %v545_v16  ;;  %1712 = vmatprep.subr.mxu1 %v547_v21  ;;  %v458_v16 = vld [vmem:[#allocation5 + $0xc30] sm:$0xff]  ;;  %v701_v21 = vld [vmem:[#allocation5 + $0x13c8] sm:$0xff] }
 0x205   :  { %1642 = vmatpush2.xpose.msra.mxu0 %v544_v22  ;;  %1713 = vmatpush2.xpose.msra.mxu1 %v546_v23  ;;  %v703_v22 = vld [vmem:[#allocation5 + $0x13d8] sm:$0xff]  ;;  %v700_v23 = vld [vmem:[#allocation5 + $0x13c0] sm:$0xff] }
 0x206   :  { %1643 = vmatprep.subr.mxu0 %v537_v24  ;;  %1714 = vmatprep.subr.mxu1 %v539_v27  ;;  %v702_v24 = vld [vmem:[#allocation5 + $0x13d0] sm:$0xff]  ;;  %v693_v27 = vld [vmem:[#allocation5 + $0x1388] sm:$0xff] }
 0x209   :  { %1644 = vmatpush2.xpose.msra.mxu0 %v536_v28  ;;  %1715 = vmatpush2.xpose.msra.mxu1 %v538_v29  ;;  %v695_v28 = vld [vmem:[#allocation5 + $0x1398] sm:$0xff]  ;;  %v692_v29 = vld [vmem:[#allocation5 + $0x1380] sm:$0xff] }
 0x20a   :  { %1645 = vmatprep.subr.mxu0 %v529_v30  ;;  %1716 = vmatprep.subr.mxu1 %v531_v31  ;;  %v694_v30 = vld [vmem:[#allocation5 + $0x1390] sm:$0xff]  ;;  %v685_v31 = vld [vmem:[#allocation5 + $0x1348] sm:$0xff] }
 0x20d   :  { %1646 = vmatpush2.xpose.msra.mxu0 %v528_v32  ;;  %1717 = vmatpush2.xpose.msra.mxu1 %v530_v33  ;;  %v687_v32 = vld [vmem:[#allocation5 + $0x1358] sm:$0xff]  ;;  %v684_v33 = vld [vmem:[#allocation5 + $0x1340] sm:$0xff] }
 0x20e   :  { %1647 = vmatprep.subr.mxu0 %v521_v34  ;;  %1718 = vmatprep.subr.mxu1 %v523_v35  ;;  %v686_v34 = vld [vmem:[#allocation5 + $0x1350] sm:$0xff]  ;;  %v677_v35 = vld [vmem:[#allocation5 + $0x1308] sm:$0xff] }
 0x211   :  { %1648 = vmatpush2.xpose.msra.mxu0 %v520_v36  ;;  %1719 = vmatpush2.xpose.msra.mxu1 %v522_v37  ;;  %v679_v36 = vld [vmem:[#allocation5 + $0x1318] sm:$0xff]  ;;  %v676_v37 = vld [vmem:[#allocation5 + $0x1300] sm:$0xff] }
 0x212   :  { %1649 = vmatprep.subr.mxu0 %v513_v38  ;;  %1720 = vmatprep.subr.mxu1 %v515_v39  ;;  %v678_v38 = vld [vmem:[#allocation5 + $0x1310] sm:$0xff]  ;;  %v669_v39 = vld [vmem:[#allocation5 + $0x12c8] sm:$0xff] }
 0x215   :  { %1650 = vmatpush2.xpose.msra.mxu0 %v512_v40  ;;  %1721 = vmatpush2.xpose.msra.mxu1 %v514_v42  ;;  %v671_v40 = vld [vmem:[#allocation5 + $0x12d8] sm:$0xff]  ;;  %v668_v42 = vld [vmem:[#allocation5 + $0x12c0] sm:$0xff] }
 0x216   :  { %1651 = vmatprep.subr.mxu0 %v505_v43  ;;  %1722 = vmatprep.subr.mxu1 %v507_v44  ;;  %v670_v43 = vld [vmem:[#allocation5 + $0x12d0] sm:$0xff]  ;;  %v661_v44 = vld [vmem:[#allocation5 + $0x1288] sm:$0xff] }
 0x219   :  { %1652 = vmatpush2.xpose.msra.mxu0 %v504_v45  ;;  %1723 = vmatpush2.xpose.msra.mxu1 %v506_v48  ;;  %v663_v45 = vld [vmem:[#allocation5 + $0x1298] sm:$0xff]  ;;  %v660_v48 = vld [vmem:[#allocation5 + $0x1280] sm:$0xff] }
 0x21a   :  { %1653 = vmatprep.subr.mxu0 %v497_v49  ;;  %1724 = vmatprep.subr.mxu1 %v499_v55  ;;  %v662_v49 = vld [vmem:[#allocation5 + $0x1290] sm:$0xff]  ;;  %v653_v55 = vld [vmem:[#allocation5 + $0x1248] sm:$0xff] }
 0x21d   :  { %1654 = vmatpush2.xpose.msra.mxu0 %v496_v56  ;;  %1725 = vmatpush2.xpose.msra.mxu1 %v498_v57  ;;  %v655_v56 = vld [vmem:[#allocation5 + $0x1258] sm:$0xff]  ;;  %v652_v57 = vld [vmem:[#allocation5 + $0x1240] sm:$0xff] }
 0x21e   :  { %1655 = vmatprep.subr.mxu0 %v489_v58  ;;  %1726 = vmatprep.subr.mxu1 %v491_v61  ;;  %v654_v58 = vld [vmem:[#allocation5 + $0x1250] sm:$0xff]  ;;  %v645_v61 = vld [vmem:[#allocation5 + $0x1208] sm:$0xff] }
 0x221   :  { %1656 = vmatpush2.xpose.msra.mxu0 %v488_v62  ;;  %1727 = vmatpush2.xpose.msra.mxu1 %v490_v63  ;;  %v647_v62 = vld [vmem:[#allocation5 + $0x1218] sm:$0xff]  ;;  %v644_v63 = vld [vmem:[#allocation5 + $0x1200] sm:$0xff] }
 0x222   :  { %1657 = vmatprep.subr.mxu0 %v481_v0  ;;  %1728 = vmatprep.subr.mxu1 %v483_v1  ;;  %v646_v0 = vld [vmem:[#allocation5 + $0x1210] sm:$0xff]  ;;  %v637_v1 = vld [vmem:[#allocation5 + $0x11c8] sm:$0xff] }
 0x225   :  { %1658 = vmatpush2.xpose.msra.mxu0 %v480_v2  ;;  %1729 = vmatpush2.xpose.msra.mxu1 %v482_v50  ;;  %v639_v2 = vld [vmem:[#allocation5 + $0x11d8] sm:$0xff]  ;;  %v636_v50 = vld [vmem:[#allocation5 + $0x11c0] sm:$0xff] }
 0x226   :  { %1659 = vmatprep.subr.mxu0 %v473_v3  ;;  %1730 = vmatprep.subr.mxu1 %v475_v4  ;;  %v638_v3 = vld [vmem:[#allocation5 + $0x11d0] sm:$0xff]  ;;  %v629_v4 = vld [vmem:[#allocation5 + $0x1188] sm:$0xff] }
 0x229   :  { %1660 = vmatpush2.xpose.msra.mxu0 %v472_v5  ;;  %1731 = vmatpush2.xpose.msra.mxu1 %v474_v6  ;;  %v631_v5 = vld [vmem:[#allocation5 + $0x1198] sm:$0xff]  ;;  %v628_v6 = vld [vmem:[#allocation5 + $0x1180] sm:$0xff] }
 0x22a   :  { %1661 = vmatprep.subr.mxu0 %v465_v7  ;;  %1732 = vmatprep.subr.mxu1 %v467_v8  ;;  %v630_v7 = vld [vmem:[#allocation5 + $0x1190] sm:$0xff]  ;;  %v621_v8 = vld [vmem:[#allocation5 + $0x1148] sm:$0xff] }
 0x22d   :  { %1662 = vmatpush2.xpose.msra.mxu0 %v464_v9  ;;  %1733 = vmatpush2.xpose.msra.mxu1 %v466_v10  ;;  %v623_v9 = vld [vmem:[#allocation5 + $0x1158] sm:$0xff]  ;;  %v620_v10 = vld [vmem:[#allocation5 + $0x1140] sm:$0xff] }
 0x22e   :  { %1663 = vmatprep.subr.mxu0 %v457_v13  ;;  %1734 = vmatprep.subr.mxu1 %v459_v14  ;;  %v622_v13 = vld [vmem:[#allocation5 + $0x1150] sm:$0xff]  ;;  %v613_v14 = vld [vmem:[#allocation5 + $0x1108] sm:$0xff] }
 0x231   :  { %1664 = vmatpush2.xpose.msra.mxu0 %v456_v15  ;;  %1735 = vmatpush2.xpose.msra.mxu1 %v458_v16  ;;  %v615_v15 = vld [vmem:[#allocation5 + $0x1118] sm:$0xff]  ;;  %v612_v16 = vld [vmem:[#allocation5 + $0x1100] sm:$0xff] }
 0x232   :  { %1743 = vmatprep.subr.mxu0 %v701_v21  ;;  %1814 = vmatprep.subr.mxu1 %v703_v22  ;;  %v614_v21 = vld [vmem:[#allocation5 + $0x1110] sm:$0xff]  ;;  %v605_v22 = vld [vmem:[#allocation5 + $0x10c8] sm:$0xff] }
 0x234   :  { %1666 = vmatmul.mubr.f32.vlgmr.msra.gmra.mxu0 %v2666_v59  ;;  %1737 = vmatmul.mubr.f32.vlgmr.msra.gmra.mxu1 %v2670_v60 }
 0x235   :  { %1744 = vmatpush1.xpose.msra.mxu0 %v700_v23  ;;  %1815 = vmatpush1.xpose.msra.mxu1 %v702_v24  ;;  %v607_v23 = vld [vmem:[#allocation5 + $0x10d8] sm:$0xff]  ;;  %v604_v24 = vld [vmem:[#allocation5 + $0x10c0] sm:$0xff] }
 0x236   :  { %1745 = vmatprep.subr.mxu0 %v693_v27  ;;  %1816 = vmatprep.subr.mxu1 %v695_v28  ;;  %v606_v27 = vld [vmem:[#allocation5 + $0x10d0] sm:$0xff]  ;;  %v597_v28 = vld [vmem:[#allocation5 + $0x1088] sm:$0xff] }
 0x237   :  { %1807 = vmatprep.mubr.f32.mxu0 %v2618_v53  ;;  %1878 = vmatprep.mubr.f32.mxu1 %v2622_v54 }
 0x239   :  { %1746 = vmatpush1.xpose.msra.mxu0 %v692_v29  ;;  %1817 = vmatpush1.xpose.msra.mxu1 %v694_v30  ;;  %v599_v29 = vld [vmem:[#allocation5 + $0x1098] sm:$0xff]  ;;  %v596_v30 = vld [vmem:[#allocation5 + $0x1080] sm:$0xff] }
 0x23a   :  { %1747 = vmatprep.subr.mxu0 %v685_v31  ;;  %1818 = vmatprep.subr.mxu1 %v687_v32  ;;  %v598_v31 = vld [vmem:[#allocation5 + $0x1090] sm:$0xff]  ;;  %v589_v32 = vld [vmem:[#allocation5 + $0x1048] sm:$0xff] }
 0x23d   :  { %1748 = vmatpush1.xpose.msra.mxu0 %v684_v33  ;;  %1819 = vmatpush1.xpose.msra.mxu1 %v686_v34  ;;  %v591_v33 = vld [vmem:[#allocation5 + $0x1058] sm:$0xff]  ;;  %v588_v34 = vld [vmem:[#allocation5 + $0x1040] sm:$0xff] }
 0x23e   :  { %1749 = vmatprep.subr.mxu0 %v677_v35  ;;  %1820 = vmatprep.subr.mxu1 %v679_v36  ;;  %v590_v35 = vld [vmem:[#allocation5 + $0x1050] sm:$0xff]  ;;  %v581_v36 = vld [vmem:[#allocation5 + $0x1008] sm:$0xff] }
 0x241   :  { %1750 = vmatpush1.xpose.msra.mxu0 %v676_v37  ;;  %1821 = vmatpush1.xpose.msra.mxu1 %v678_v38  ;;  %v583_v37 = vld [vmem:[#allocation5 + $0x1018] sm:$0xff]  ;;  %v580_v38 = vld [vmem:[#allocation5 + $0x1000] sm:$0xff] }
 0x242   :  { %1751 = vmatprep.subr.mxu0 %v669_v39  ;;  %1822 = vmatprep.subr.mxu1 %v671_v40  ;;  %v582_v39 = vld [vmem:[#allocation5 + $0x1010] sm:$0xff]  ;;  %v829_v40 = vld [vmem:[#allocation5 + $0x17c8] sm:$0xff] }
 0x245   :  { %1752 = vmatpush1.xpose.msra.mxu0 %v668_v42  ;;  %1823 = vmatpush1.xpose.msra.mxu1 %v670_v43  ;;  %v831_v42 = vld [vmem:[#allocation5 + $0x17d8] sm:$0xff]  ;;  %v828_v43 = vld [vmem:[#allocation5 + $0x17c0] sm:$0xff] }
 0x246   :  { %1753 = vmatprep.subr.mxu0 %v661_v44  ;;  %1824 = vmatprep.subr.mxu1 %v663_v45  ;;  %v830_v44 = vld [vmem:[#allocation5 + $0x17d0] sm:$0xff]  ;;  %v821_v45 = vld [vmem:[#allocation5 + $0x1788] sm:$0xff] }
 0x249   :  { %1754 = vmatpush1.xpose.msra.mxu0 %v660_v48  ;;  %1825 = vmatpush1.xpose.msra.mxu1 %v662_v49  ;;  %v823_v48 = vld [vmem:[#allocation5 + $0x1798] sm:$0xff]  ;;  %v820_v49 = vld [vmem:[#allocation5 + $0x1780] sm:$0xff] }
 0x24a   :  { %1755 = vmatprep.subr.mxu0 %v653_v55  ;;  %1826 = vmatprep.subr.mxu1 %v655_v56  ;;  %v822_v55 = vld [vmem:[#allocation5 + $0x1790] sm:$0xff]  ;;  %v813_v56 = vld [vmem:[#allocation5 + $0x1748] sm:$0xff] }
 0x24d   :  { %1756 = vmatpush1.xpose.msra.mxu0 %v652_v57  ;;  %1827 = vmatpush1.xpose.msra.mxu1 %v654_v58  ;;  %v815_v57 = vld [vmem:[#allocation5 + $0x1758] sm:$0xff]  ;;  %v812_v58 = vld [vmem:[#allocation5 + $0x1740] sm:$0xff] }
 0x24e   :  { %1757 = vmatprep.subr.mxu0 %v645_v61  ;;  %1828 = vmatprep.subr.mxu1 %v647_v62  ;;  %v814_v61 = vld [vmem:[#allocation5 + $0x1750] sm:$0xff]  ;;  %v805_v62 = vld [vmem:[#allocation5 + $0x1708] sm:$0xff] }
 0x251   :  { %1758 = vmatpush1.xpose.msra.mxu0 %v644_v63  ;;  %1829 = vmatpush1.xpose.msra.mxu1 %v646_v0  ;;  %v807_v63 = vld [vmem:[#allocation5 + $0x1718] sm:$0xff]  ;;  %v804_v0 = vld [vmem:[#allocation5 + $0x1700] sm:$0xff] }
 0x252   :  { %1759 = vmatprep.subr.mxu0 %v637_v1  ;;  %1830 = vmatprep.subr.mxu1 %v639_v2  ;;  %v806_v1 = vld [vmem:[#allocation5 + $0x1710] sm:$0xff]  ;;  %v797_v2 = vld [vmem:[#allocation5 + $0x16c8] sm:$0xff] }
 0x255   :  { %1760 = vmatpush1.xpose.msra.mxu0 %v636_v50  ;;  %1831 = vmatpush1.xpose.msra.mxu1 %v638_v3  ;;  %v799_v50 = vld [vmem:[#allocation5 + $0x16d8] sm:$0xff]  ;;  %v796_v3 = vld [vmem:[#allocation5 + $0x16c0] sm:$0xff] }
 0x256   :  { %1761 = vmatprep.subr.mxu0 %v629_v4  ;;  %1832 = vmatprep.subr.mxu1 %v631_v5  ;;  %v798_v4 = vld [vmem:[#allocation5 + $0x16d0] sm:$0xff]  ;;  %v789_v5 = vld [vmem:[#allocation5 + $0x1688] sm:$0xff] }
 0x259   :  { %1762 = vmatpush1.xpose.msra.mxu0 %v628_v6  ;;  %1833 = vmatpush1.xpose.msra.mxu1 %v630_v7  ;;  %v791_v6 = vld [vmem:[#allocation5 + $0x1698] sm:$0xff]  ;;  %v788_v7 = vld [vmem:[#allocation5 + $0x1680] sm:$0xff] }
 0x25a   :  { %1763 = vmatprep.subr.mxu0 %v621_v8  ;;  %1834 = vmatprep.subr.mxu1 %v623_v9  ;;  %v790_v8 = vld [vmem:[#allocation5 + $0x1690] sm:$0xff]  ;;  %v781_v9 = vld [vmem:[#allocation5 + $0x1648] sm:$0xff] }
 0x25d   :  { %1764 = vmatpush1.xpose.msra.mxu0 %v620_v10  ;;  %1835 = vmatpush1.xpose.msra.mxu1 %v622_v13  ;;  %v783_v10 = vld [vmem:[#allocation5 + $0x1658] sm:$0xff]  ;;  %v780_v13 = vld [vmem:[#allocation5 + $0x1640] sm:$0xff] }
 0x25e   :  { %1765 = vmatprep.subr.mxu0 %v613_v14  ;;  %1836 = vmatprep.subr.mxu1 %v615_v15  ;;  %v782_v14 = vld [vmem:[#allocation5 + $0x1650] sm:$0xff]  ;;  %v773_v15 = vld [vmem:[#allocation5 + $0x1608] sm:$0xff] }
 0x261   :  { %1766 = vmatpush1.xpose.msra.mxu0 %v612_v16  ;;  %1837 = vmatpush1.xpose.msra.mxu1 %v614_v21  ;;  %v775_v16 = vld [vmem:[#allocation5 + $0x1618] sm:$0xff]  ;;  %v772_v21 = vld [vmem:[#allocation5 + $0x1600] sm:$0xff] }
 0x262   :  { %1767 = vmatprep.subr.mxu0 %v605_v22  ;;  %1838 = vmatprep.subr.mxu1 %v607_v23  ;;  %v774_v22 = vld [vmem:[#allocation5 + $0x1610] sm:$0xff]  ;;  %v765_v23 = vld [vmem:[#allocation5 + $0x15c8] sm:$0xff] }
 0x265   :  { %1768 = vmatpush1.xpose.msra.mxu0 %v604_v24  ;;  %1839 = vmatpush1.xpose.msra.mxu1 %v606_v27  ;;  %v767_v24 = vld [vmem:[#allocation5 + $0x15d8] sm:$0xff]  ;;  %v764_v27 = vld [vmem:[#allocation5 + $0x15c0] sm:$0xff] }
 0x266   :  { %1769 = vmatprep.subr.mxu0 %v597_v28  ;;  %1840 = vmatprep.subr.mxu1 %v599_v29  ;;  %v766_v28 = vld [vmem:[#allocation5 + $0x15d0] sm:$0xff]  ;;  %v757_v29 = vld [vmem:[#allocation5 + $0x1588] sm:$0xff] }
 0x269   :  { %1770 = vmatpush1.xpose.msra.mxu0 %v596_v30  ;;  %1841 = vmatpush1.xpose.msra.mxu1 %v598_v31  ;;  %v759_v30 = vld [vmem:[#allocation5 + $0x1598] sm:$0xff]  ;;  %v756_v31 = vld [vmem:[#allocation5 + $0x1580] sm:$0xff] }
 0x26a   :  { %1771 = vmatprep.subr.mxu0 %v589_v32  ;;  %1842 = vmatprep.subr.mxu1 %v591_v33  ;;  %v758_v32 = vld [vmem:[#allocation5 + $0x1590] sm:$0xff]  ;;  %v749_v33 = vld [vmem:[#allocation5 + $0x1548] sm:$0xff] }
 0x26d   :  { %1772 = vmatpush1.xpose.msra.mxu0 %v588_v34  ;;  %1843 = vmatpush1.xpose.msra.mxu1 %v590_v35  ;;  %v751_v34 = vld [vmem:[#allocation5 + $0x1558] sm:$0xff]  ;;  %v748_v35 = vld [vmem:[#allocation5 + $0x1540] sm:$0xff] }
 0x26e   :  { %1773 = vmatprep.subr.mxu0 %v581_v36  ;;  %1844 = vmatprep.subr.mxu1 %v583_v37  ;;  %v750_v36 = vld [vmem:[#allocation5 + $0x1550] sm:$0xff]  ;;  %v741_v37 = vld [vmem:[#allocation5 + $0x1508] sm:$0xff] }
 0x271   :  { %1774 = vmatpush1.xpose.msra.mxu0 %v580_v38  ;;  %1845 = vmatpush1.xpose.msra.mxu1 %v582_v39  ;;  %v743_v38 = vld [vmem:[#allocation5 + $0x1518] sm:$0xff]  ;;  %v740_v39 = vld [vmem:[#allocation5 + $0x1500] sm:$0xff] }
 0x272   :  { %1775 = vmatprep.subr.mxu0 %v829_v40  ;;  %1846 = vmatprep.subr.mxu1 %v831_v42  ;;  %v742_v40 = vld [vmem:[#allocation5 + $0x1510] sm:$0xff]  ;;  %v733_v42 = vld [vmem:[#allocation5 + $0x14c8] sm:$0xff] }
 0x275   :  { %1776 = vmatpush2.xpose.msra.mxu0 %v828_v43  ;;  %1847 = vmatpush2.xpose.msra.mxu1 %v830_v44  ;;  %v735_v43 = vld [vmem:[#allocation5 + $0x14d8] sm:$0xff]  ;;  %v732_v44 = vld [vmem:[#allocation5 + $0x14c0] sm:$0xff] }
 0x276   :  { %1777 = vmatprep.subr.mxu0 %v821_v45  ;;  %1848 = vmatprep.subr.mxu1 %v823_v48  ;;  %v734_v45 = vld [vmem:[#allocation5 + $0x14d0] sm:$0xff]  ;;  %v725_v48 = vld [vmem:[#allocation5 + $0x1488] sm:$0xff] }
 0x279   :  { %1778 = vmatpush2.xpose.msra.mxu0 %v820_v49  ;;  %1849 = vmatpush2.xpose.msra.mxu1 %v822_v55  ;;  %v727_v49 = vld [vmem:[#allocation5 + $0x1498] sm:$0xff]  ;;  %v724_v55 = vld [vmem:[#allocation5 + $0x1480] sm:$0xff] }
 0x27a   :  { %1779 = vmatprep.subr.mxu0 %v813_v56  ;;  %1850 = vmatprep.subr.mxu1 %v815_v57  ;;  %v726_v56 = vld [vmem:[#allocation5 + $0x1490] sm:$0xff]  ;;  %v717_v57 = vld [vmem:[#allocation5 + $0x1448] sm:$0xff] }
 0x27d   :  { %1780 = vmatpush2.xpose.msra.mxu0 %v812_v58  ;;  %1851 = vmatpush2.xpose.msra.mxu1 %v814_v61  ;;  %v719_v58 = vld [vmem:[#allocation5 + $0x1458] sm:$0xff]  ;;  %v716_v61 = vld [vmem:[#allocation5 + $0x1440] sm:$0xff] }
 0x27e   :  { %1781 = vmatprep.subr.mxu0 %v805_v62  ;;  %1852 = vmatprep.subr.mxu1 %v807_v63  ;;  %v718_v62 = vld [vmem:[#allocation5 + $0x1450] sm:$0xff]  ;;  %v709_v63 = vld [vmem:[#allocation5 + $0x1408] sm:$0xff] }
 0x281   :  { %1782 = vmatpush2.xpose.msra.mxu0 %v804_v0  ;;  %1853 = vmatpush2.xpose.msra.mxu1 %v806_v1  ;;  %v711_v0 = vld [vmem:[#allocation5 + $0x1418] sm:$0xff]  ;;  %v708_v1 = vld [vmem:[#allocation5 + $0x1400] sm:$0xff] }
 0x282   :  { %1783 = vmatprep.subr.mxu0 %v797_v2  ;;  %1854 = vmatprep.subr.mxu1 %v799_v50  ;;  %v710_v2 = vld [vmem:[#allocation5 + $0x1410] sm:$0xff]  ;;  %v705_v50 = vld [vmem:[#allocation5 + $0x13e8] sm:$0xff] }
 0x285   :  { %1784 = vmatpush2.xpose.msra.mxu0 %v796_v3  ;;  %1855 = vmatpush2.xpose.msra.mxu1 %v798_v4  ;;  %v707_v3 = vld [vmem:[#allocation5 + $0x13f8] sm:$0xff]  ;;  %v704_v4 = vld [vmem:[#allocation5 + $0x13e0] sm:$0xff] }
 0x286   :  { %1785 = vmatprep.subr.mxu0 %v789_v5  ;;  %1856 = vmatprep.subr.mxu1 %v791_v6  ;;  %v706_v5 = vld [vmem:[#allocation5 + $0x13f0] sm:$0xff]  ;;  %v697_v6 = vld [vmem:[#allocation5 + $0x13a8] sm:$0xff] }
 0x289   :  { %1786 = vmatpush2.xpose.msra.mxu0 %v788_v7  ;;  %1857 = vmatpush2.xpose.msra.mxu1 %v790_v8  ;;  %v699_v7 = vld [vmem:[#allocation5 + $0x13b8] sm:$0xff]  ;;  %v696_v8 = vld [vmem:[#allocation5 + $0x13a0] sm:$0xff] }
 0x28a   :  { %1787 = vmatprep.subr.mxu0 %v781_v9  ;;  %1858 = vmatprep.subr.mxu1 %v783_v10  ;;  %v698_v9 = vld [vmem:[#allocation5 + $0x13b0] sm:$0xff]  ;;  %v689_v10 = vld [vmem:[#allocation5 + $0x1368] sm:$0xff] }
 0x28d   :  { %1788 = vmatpush2.xpose.msra.mxu0 %v780_v13  ;;  %1859 = vmatpush2.xpose.msra.mxu1 %v782_v14  ;;  %v691_v13 = vld [vmem:[#allocation5 + $0x1378] sm:$0xff]  ;;  %v688_v14 = vld [vmem:[#allocation5 + $0x1360] sm:$0xff] }
 0x28e   :  { %1789 = vmatprep.subr.mxu0 %v773_v15  ;;  %1860 = vmatprep.subr.mxu1 %v775_v16  ;;  %v690_v15 = vld [vmem:[#allocation5 + $0x1370] sm:$0xff]  ;;  %v681_v16 = vld [vmem:[#allocation5 + $0x1328] sm:$0xff] }
 0x291   :  { %1790 = vmatpush2.xpose.msra.mxu0 %v772_v21  ;;  %1861 = vmatpush2.xpose.msra.mxu1 %v774_v22  ;;  %v683_v21 = vld [vmem:[#allocation5 + $0x1338] sm:$0xff]  ;;  %v680_v22 = vld [vmem:[#allocation5 + $0x1320] sm:$0xff] }
 0x292   :  { %1791 = vmatprep.subr.mxu0 %v765_v23  ;;  %1862 = vmatprep.subr.mxu1 %v767_v24  ;;  %v682_v23 = vld [vmem:[#allocation5 + $0x1330] sm:$0xff]  ;;  %v673_v24 = vld [vmem:[#allocation5 + $0x12e8] sm:$0xff] }
 0x295   :  { %1792 = vmatpush2.xpose.msra.mxu0 %v764_v27  ;;  %1863 = vmatpush2.xpose.msra.mxu1 %v766_v28  ;;  %v675_v27 = vld [vmem:[#allocation5 + $0x12f8] sm:$0xff]  ;;  %v672_v28 = vld [vmem:[#allocation5 + $0x12e0] sm:$0xff] }
 0x296   :  { %1793 = vmatprep.subr.mxu0 %v757_v29  ;;  %1864 = vmatprep.subr.mxu1 %v759_v30  ;;  %v674_v29 = vld [vmem:[#allocation5 + $0x12f0] sm:$0xff]  ;;  %v665_v30 = vld [vmem:[#allocation5 + $0x12a8] sm:$0xff] }
 0x299   :  { %1794 = vmatpush2.xpose.msra.mxu0 %v756_v31  ;;  %1865 = vmatpush2.xpose.msra.mxu1 %v758_v32  ;;  %v667_v31 = vld [vmem:[#allocation5 + $0x12b8] sm:$0xff]  ;;  %v664_v32 = vld [vmem:[#allocation5 + $0x12a0] sm:$0xff] }
 0x29a   :  { %1795 = vmatprep.subr.mxu0 %v749_v33  ;;  %1866 = vmatprep.subr.mxu1 %v751_v34  ;;  %v666_v33 = vld [vmem:[#allocation5 + $0x12b0] sm:$0xff]  ;;  %v657_v34 = vld [vmem:[#allocation5 + $0x1268] sm:$0xff] }
 0x29d   :  { %1796 = vmatpush2.xpose.msra.mxu0 %v748_v35  ;;  %1867 = vmatpush2.xpose.msra.mxu1 %v750_v36  ;;  %v659_v35 = vld [vmem:[#allocation5 + $0x1278] sm:$0xff]  ;;  %v656_v36 = vld [vmem:[#allocation5 + $0x1260] sm:$0xff] }
 0x29e   :  { %1797 = vmatprep.subr.mxu0 %v741_v37  ;;  %1868 = vmatprep.subr.mxu1 %v743_v38  ;;  %v658_v37 = vld [vmem:[#allocation5 + $0x1270] sm:$0xff]  ;;  %v649_v38 = vld [vmem:[#allocation5 + $0x1228] sm:$0xff] }
 0x2a1   :  { %1798 = vmatpush2.xpose.msra.mxu0 %v740_v39  ;;  %1869 = vmatpush2.xpose.msra.mxu1 %v742_v40  ;;  %v651_v39 = vld [vmem:[#allocation5 + $0x1238] sm:$0xff]  ;;  %v648_v40 = vld [vmem:[#allocation5 + $0x1220] sm:$0xff] }
 0x2a2   :  { %1799 = vmatprep.subr.mxu0 %v733_v42  ;;  %1870 = vmatprep.subr.mxu1 %v735_v43  ;;  %v650_v42 = vld [vmem:[#allocation5 + $0x1230] sm:$0xff]  ;;  %v641_v43 = vld [vmem:[#allocation5 + $0x11e8] sm:$0xff] }
 0x2a5   :  { %1800 = vmatpush2.xpose.msra.mxu0 %v732_v44  ;;  %1871 = vmatpush2.xpose.msra.mxu1 %v734_v45  ;;  %v643_v44 = vld [vmem:[#allocation5 + $0x11f8] sm:$0xff]  ;;  %v640_v45 = vld [vmem:[#allocation5 + $0x11e0] sm:$0xff] }
 0x2a6   :  { %1801 = vmatprep.subr.mxu0 %v725_v48  ;;  %1872 = vmatprep.subr.mxu1 %v727_v49  ;;  %v642_v48 = vld [vmem:[#allocation5 + $0x11f0] sm:$0xff]  ;;  %v633_v49 = vld [vmem:[#allocation5 + $0x11a8] sm:$0xff] }
 0x2a9   :  { %1802 = vmatpush2.xpose.msra.mxu0 %v724_v55  ;;  %1873 = vmatpush2.xpose.msra.mxu1 %v726_v56  ;;  %v635_v55 = vld [vmem:[#allocation5 + $0x11b8] sm:$0xff]  ;;  %v632_v56 = vld [vmem:[#allocation5 + $0x11a0] sm:$0xff] }
 0x2aa   :  { %1803 = vmatprep.subr.mxu0 %v717_v57  ;;  %1874 = vmatprep.subr.mxu1 %v719_v58  ;;  %v634_v57 = vld [vmem:[#allocation5 + $0x11b0] sm:$0xff]  ;;  %v625_v58 = vld [vmem:[#allocation5 + $0x1168] sm:$0xff] }
 0x2ad   :  { %1804 = vmatpush2.xpose.msra.mxu0 %v716_v61  ;;  %1875 = vmatpush2.xpose.msra.mxu1 %v718_v62  ;;  %v627_v61 = vld [vmem:[#allocation5 + $0x1178] sm:$0xff]  ;;  %v624_v62 = vld [vmem:[#allocation5 + $0x1160] sm:$0xff] }
 0x2ae   :  { %1805 = vmatprep.subr.mxu0 %v709_v63  ;;  %1876 = vmatprep.subr.mxu1 %v711_v0  ;;  %v626_v63 = vld [vmem:[#allocation5 + $0x1170] sm:$0xff]  ;;  %v617_v0 = vld [vmem:[#allocation5 + $0x1128] sm:$0xff] }
 0x2b1   :  { %1806 = vmatpush2.xpose.msra.mxu0 %v708_v1  ;;  %1877 = vmatpush2.xpose.msra.mxu1 %v710_v2  ;;  %v619_v1 = vld [vmem:[#allocation5 + $0x1138] sm:$0xff]  ;;  %v616_v2 = vld [vmem:[#allocation5 + $0x1120] sm:$0xff] }
 0x2b2   :  { %1885 = vmatprep.subr.mxu0 %v705_v50  ;;  %1956 = vmatprep.subr.mxu1 %v707_v3  ;;  %v618_v50 = vld [vmem:[#allocation5 + $0x1130] sm:$0xff]  ;;  %v609_v3 = vld [vmem:[#allocation5 + $0x10e8] sm:$0xff] }
 0x2b4   :  { %1808 = vmatmul.mubr.f32.vlgmr.msra.gmra.mxu0 %v2637_v18  ;;  %1879 = vmatmul.mubr.f32.vlgmr.msra.gmra.mxu1 %v2641_v19 }
 0x2b5   :  { %1886 = vmatpush1.xpose.msra.mxu0 %v704_v4  ;;  %1957 = vmatpush1.xpose.msra.mxu1 %v706_v5  ;;  %v611_v4 = vld [vmem:[#allocation5 + $0x10f8] sm:$0xff]  ;;  %v608_v5 = vld [vmem:[#allocation5 + $0x10e0] sm:$0xff] }
 0x2b6   :  { %1887 = vmatprep.subr.mxu0 %v697_v6  ;;  %1958 = vmatprep.subr.mxu1 %v699_v7  ;;  %v610_v6 = vld [vmem:[#allocation5 + $0x10f0] sm:$0xff]  ;;  %v601_v7 = vld [vmem:[#allocation5 + $0x10a8] sm:$0xff] }
 0x2b7   :  { %1949 = vmatprep.mubr.f32.mxu0 %v2648_v25  ;;  %2020 = vmatprep.mubr.f32.mxu1 %v2652_v26 }
 0x2b9   :  { %1888 = vmatpush1.xpose.msra.mxu0 %v696_v8  ;;  %1959 = vmatpush1.xpose.msra.mxu1 %v698_v9  ;;  %v603_v8 = vld [vmem:[#allocation5 + $0x10b8] sm:$0xff]  ;;  %v600_v9 = vld [vmem:[#allocation5 + $0x10a0] sm:$0xff] }
 0x2ba   :  { %1889 = vmatprep.subr.mxu0 %v689_v10  ;;  %1960 = vmatprep.subr.mxu1 %v691_v13  ;;  %v602_v10 = vld [vmem:[#allocation5 + $0x10b0] sm:$0xff]  ;;  %v593_v13 = vld [vmem:[#allocation5 + $0x1068] sm:$0xff] }
 0x2bd   :  { %1890 = vmatpush1.xpose.msra.mxu0 %v688_v14  ;;  %1961 = vmatpush1.xpose.msra.mxu1 %v690_v15  ;;  %v595_v14 = vld [vmem:[#allocation5 + $0x1078] sm:$0xff]  ;;  %v592_v15 = vld [vmem:[#allocation5 + $0x1060] sm:$0xff] }
 0x2be   :  { %1891 = vmatprep.subr.mxu0 %v681_v16  ;;  %1962 = vmatprep.subr.mxu1 %v683_v21  ;;  %v594_v16 = vld [vmem:[#allocation5 + $0x1070] sm:$0xff]  ;;  %v585_v21 = vld [vmem:[#allocation5 + $0x1028] sm:$0xff] }
 0x2c1   :  { %1892 = vmatpush1.xpose.msra.mxu0 %v680_v22  ;;  %1963 = vmatpush1.xpose.msra.mxu1 %v682_v23  ;;  %v587_v22 = vld [vmem:[#allocation5 + $0x1038] sm:$0xff]  ;;  %v584_v23 = vld [vmem:[#allocation5 + $0x1020] sm:$0xff] }
 0x2c2   :  { %1893 = vmatprep.subr.mxu0 %v673_v24  ;;  %1964 = vmatprep.subr.mxu1 %v675_v27  ;;  %v586_v24 = vld [vmem:[#allocation5 + $0x1030] sm:$0xff]  ;;  %v833_v27 = vld [vmem:[#allocation5 + $0x17e8] sm:$0xff] }
 0x2c5   :  { %1894 = vmatpush1.xpose.msra.mxu0 %v672_v28  ;;  %1965 = vmatpush1.xpose.msra.mxu1 %v674_v29  ;;  %v835_v28 = vld [vmem:[#allocation5 + $0x17f8] sm:$0xff]  ;;  %v832_v29 = vld [vmem:[#allocation5 + $0x17e0] sm:$0xff] }
 0x2c6   :  { %1895 = vmatprep.subr.mxu0 %v665_v30  ;;  %1966 = vmatprep.subr.mxu1 %v667_v31  ;;  %v834_v30 = vld [vmem:[#allocation5 + $0x17f0] sm:$0xff]  ;;  %v825_v31 = vld [vmem:[#allocation5 + $0x17a8] sm:$0xff] }
 0x2c9   :  { %1896 = vmatpush1.xpose.msra.mxu0 %v664_v32  ;;  %1967 = vmatpush1.xpose.msra.mxu1 %v666_v33  ;;  %v827_v32 = vld [vmem:[#allocation5 + $0x17b8] sm:$0xff]  ;;  %v824_v33 = vld [vmem:[#allocation5 + $0x17a0] sm:$0xff] }
 0x2ca   :  { %1897 = vmatprep.subr.mxu0 %v657_v34  ;;  %1968 = vmatprep.subr.mxu1 %v659_v35  ;;  %v826_v34 = vld [vmem:[#allocation5 + $0x17b0] sm:$0xff]  ;;  %v817_v35 = vld [vmem:[#allocation5 + $0x1768] sm:$0xff] }
 0x2cd   :  { %1898 = vmatpush1.xpose.msra.mxu0 %v656_v36  ;;  %1969 = vmatpush1.xpose.msra.mxu1 %v658_v37  ;;  %v819_v36 = vld [vmem:[#allocation5 + $0x1778] sm:$0xff]  ;;  %v816_v37 = vld [vmem:[#allocation5 + $0x1760] sm:$0xff] }
 0x2ce   :  { %1899 = vmatprep.subr.mxu0 %v649_v38  ;;  %1970 = vmatprep.subr.mxu1 %v651_v39  ;;  %v818_v38 = vld [vmem:[#allocation5 + $0x1770] sm:$0xff]  ;;  %v809_v39 = vld [vmem:[#allocation5 + $0x1728] sm:$0xff] }
 0x2d1   :  { %1900 = vmatpush1.xpose.msra.mxu0 %v648_v40  ;;  %1971 = vmatpush1.xpose.msra.mxu1 %v650_v42  ;;  %v811_v40 = vld [vmem:[#allocation5 + $0x1738] sm:$0xff]  ;;  %v808_v42 = vld [vmem:[#allocation5 + $0x1720] sm:$0xff] }
 0x2d2   :  { %1901 = vmatprep.subr.mxu0 %v641_v43  ;;  %1972 = vmatprep.subr.mxu1 %v643_v44  ;;  %v810_v43 = vld [vmem:[#allocation5 + $0x1730] sm:$0xff]  ;;  %v801_v44 = vld [vmem:[#allocation5 + $0x16e8] sm:$0xff] }
 0x2d5   :  { %1902 = vmatpush1.xpose.msra.mxu0 %v640_v45  ;;  %1973 = vmatpush1.xpose.msra.mxu1 %v642_v48  ;;  %v803_v45 = vld [vmem:[#allocation5 + $0x16f8] sm:$0xff]  ;;  %v800_v48 = vld [vmem:[#allocation5 + $0x16e0] sm:$0xff] }
 0x2d6   :  { %1903 = vmatprep.subr.mxu0 %v633_v49  ;;  %1974 = vmatprep.subr.mxu1 %v635_v55  ;;  %v802_v49 = vld [vmem:[#allocation5 + $0x16f0] sm:$0xff]  ;;  %v793_v55 = vld [vmem:[#allocation5 + $0x16a8] sm:$0xff] }
 0x2d9   :  { %1904 = vmatpush1.xpose.msra.mxu0 %v632_v56  ;;  %1975 = vmatpush1.xpose.msra.mxu1 %v634_v57  ;;  %v795_v56 = vld [vmem:[#allocation5 + $0x16b8] sm:$0xff]  ;;  %v792_v57 = vld [vmem:[#allocation5 + $0x16a0] sm:$0xff] }
 0x2da   :  { %1905 = vmatprep.subr.mxu0 %v625_v58  ;;  %1976 = vmatprep.subr.mxu1 %v627_v61  ;;  %v794_v58 = vld [vmem:[#allocation5 + $0x16b0] sm:$0xff]  ;;  %v785_v61 = vld [vmem:[#allocation5 + $0x1668] sm:$0xff] }
 0x2dd   :  { %1906 = vmatpush1.xpose.msra.mxu0 %v624_v62  ;;  %1977 = vmatpush1.xpose.msra.mxu1 %v626_v63  ;;  %v787_v62 = vld [vmem:[#allocation5 + $0x1678] sm:$0xff]  ;;  %v784_v63 = vld [vmem:[#allocation5 + $0x1660] sm:$0xff] }
 0x2de   :  { %1907 = vmatprep.subr.mxu0 %v617_v0  ;;  %1978 = vmatprep.subr.mxu1 %v619_v1  ;;  %v786_v0 = vld [vmem:[#allocation5 + $0x1670] sm:$0xff]  ;;  %v777_v1 = vld [vmem:[#allocation5 + $0x1628] sm:$0xff] }
 0x2e1   :  { %1908 = vmatpush1.xpose.msra.mxu0 %v616_v2  ;;  %1979 = vmatpush1.xpose.msra.mxu1 %v618_v50  ;;  %v779_v2 = vld [vmem:[#allocation5 + $0x1638] sm:$0xff]  ;;  %v776_v50 = vld [vmem:[#allocation5 + $0x1620] sm:$0xff] }
 0x2e2   :  { %1909 = vmatprep.subr.mxu0 %v609_v3  ;;  %1980 = vmatprep.subr.mxu1 %v611_v4  ;;  %v778_v3 = vld [vmem:[#allocation5 + $0x1630] sm:$0xff]  ;;  %v769_v4 = vld [vmem:[#allocation5 + $0x15e8] sm:$0xff] }
 0x2e5   :  { %1910 = vmatpush1.xpose.msra.mxu0 %v608_v5  ;;  %1981 = vmatpush1.xpose.msra.mxu1 %v610_v6  ;;  %v771_v5 = vld [vmem:[#allocation5 + $0x15f8] sm:$0xff]  ;;  %v768_v6 = vld [vmem:[#allocation5 + $0x15e0] sm:$0xff] }
 0x2e6   :  { %1911 = vmatprep.subr.mxu0 %v601_v7  ;;  %1982 = vmatprep.subr.mxu1 %v603_v8  ;;  %v770_v7 = vld [vmem:[#allocation5 + $0x15f0] sm:$0xff]  ;;  %v761_v8 = vld [vmem:[#allocation5 + $0x15a8] sm:$0xff] }
 0x2e9   :  { %1912 = vmatpush1.xpose.msra.mxu0 %v600_v9  ;;  %1983 = vmatpush1.xpose.msra.mxu1 %v602_v10  ;;  %v763_v9 = vld [vmem:[#allocation5 + $0x15b8] sm:$0xff]  ;;  %v760_v10 = vld [vmem:[#allocation5 + $0x15a0] sm:$0xff] }
 0x2ea   :  { %1913 = vmatprep.subr.mxu0 %v593_v13  ;;  %1984 = vmatprep.subr.mxu1 %v595_v14  ;;  %v762_v13 = vld [vmem:[#allocation5 + $0x15b0] sm:$0xff]  ;;  %v753_v14 = vld [vmem:[#allocation5 + $0x1568] sm:$0xff] }
 0x2ed   :  { %1914 = vmatpush1.xpose.msra.mxu0 %v592_v15  ;;  %1985 = vmatpush1.xpose.msra.mxu1 %v594_v16  ;;  %v755_v15 = vld [vmem:[#allocation5 + $0x1578] sm:$0xff]  ;;  %v752_v16 = vld [vmem:[#allocation5 + $0x1560] sm:$0xff] }
 0x2ee   :  { %1915 = vmatprep.subr.mxu0 %v585_v21  ;;  %1986 = vmatprep.subr.mxu1 %v587_v22  ;;  %v754_v21 = vld [vmem:[#allocation5 + $0x1570] sm:$0xff]  ;;  %v745_v22 = vld [vmem:[#allocation5 + $0x1528] sm:$0xff] }
 0x2f1   :  { %1916 = vmatpush1.xpose.msra.mxu0 %v584_v23  ;;  %1987 = vmatpush1.xpose.msra.mxu1 %v586_v24  ;;  %v747_v23 = vld [vmem:[#allocation5 + $0x1538] sm:$0xff]  ;;  %v744_v24 = vld [vmem:[#allocation5 + $0x1520] sm:$0xff] }
 0x2f2   :  { %1917 = vmatprep.subr.mxu0 %v833_v27  ;;  %1988 = vmatprep.subr.mxu1 %v835_v28  ;;  %v746_v27 = vld [vmem:[#allocation5 + $0x1530] sm:$0xff]  ;;  %v737_v28 = vld [vmem:[#allocation5 + $0x14e8] sm:$0xff] }
 0x2f5   :  { %1918 = vmatpush2.xpose.msra.mxu0 %v832_v29  ;;  %1989 = vmatpush2.xpose.msra.mxu1 %v834_v30  ;;  %v739_v29 = vld [vmem:[#allocation5 + $0x14f8] sm:$0xff]  ;;  %v736_v30 = vld [vmem:[#allocation5 + $0x14e0] sm:$0xff] }
 0x2f6   :  { %1919 = vmatprep.subr.mxu0 %v825_v31  ;;  %1990 = vmatprep.subr.mxu1 %v827_v32  ;;  %v738_v31 = vld [vmem:[#allocation5 + $0x14f0] sm:$0xff]  ;;  %v729_v32 = vld [vmem:[#allocation5 + $0x14a8] sm:$0xff] }
 0x2f9   :  { %1920 = vmatpush2.xpose.msra.mxu0 %v824_v33  ;;  %1991 = vmatpush2.xpose.msra.mxu1 %v826_v34  ;;  %v731_v33 = vld [vmem:[#allocation5 + $0x14b8] sm:$0xff]  ;;  %v728_v34 = vld [vmem:[#allocation5 + $0x14a0] sm:$0xff] }
 0x2fa   :  { %1921 = vmatprep.subr.mxu0 %v817_v35  ;;  %1992 = vmatprep.subr.mxu1 %v819_v36  ;;  %v730_v35 = vld [vmem:[#allocation5 + $0x14b0] sm:$0xff]  ;;  %v721_v36 = vld [vmem:[#allocation5 + $0x1468] sm:$0xff] }
 0x2fd   :  { %1922 = vmatpush2.xpose.msra.mxu0 %v816_v37  ;;  %1993 = vmatpush2.xpose.msra.mxu1 %v818_v38  ;;  %v723_v37 = vld [vmem:[#allocation5 + $0x1478] sm:$0xff]  ;;  %v720_v38 = vld [vmem:[#allocation5 + $0x1460] sm:$0xff] }
 0x2fe   :  { %1923 = vmatprep.subr.mxu0 %v809_v39  ;;  %1994 = vmatprep.subr.mxu1 %v811_v40  ;;  %v722_v39 = vld [vmem:[#allocation5 + $0x1470] sm:$0xff]  ;;  %v713_v40 = vld [vmem:[#allocation5 + $0x1428] sm:$0xff] }
 0x301   :  { %1924 = vmatpush2.xpose.msra.mxu0 %v808_v42  ;;  %1995 = vmatpush2.xpose.msra.mxu1 %v810_v43  ;;  %v715_v42 = vld [vmem:[#allocation5 + $0x1438] sm:$0xff]  ;;  %v712_v43 = vld [vmem:[#allocation5 + $0x1420] sm:$0xff] }
 0x302   :  { %1925 = vmatprep.subr.mxu0 %v801_v44  ;;  %1996 = vmatprep.subr.mxu1 %v803_v45  ;;  %v714_v44 = vld [vmem:[#allocation5 + $0x1430] sm:$0xff]  ;;  %v957_v45 = vld [vmem:[#allocation5 + $0x1bc8] sm:$0xff] }
 0x305   :  { %1926 = vmatpush2.xpose.msra.mxu0 %v800_v48  ;;  %1997 = vmatpush2.xpose.msra.mxu1 %v802_v49  ;;  %v959_v48 = vld [vmem:[#allocation5 + $0x1bd8] sm:$0xff]  ;;  %v956_v49 = vld [vmem:[#allocation5 + $0x1bc0] sm:$0xff] }
 0x306   :  { %1927 = vmatprep.subr.mxu0 %v793_v55  ;;  %1998 = vmatprep.subr.mxu1 %v795_v56  ;;  %v958_v55 = vld [vmem:[#allocation5 + $0x1bd0] sm:$0xff]  ;;  %v949_v56 = vld [vmem:[#allocation5 + $0x1b88] sm:$0xff] }
 0x309   :  { %1928 = vmatpush2.xpose.msra.mxu0 %v792_v57  ;;  %1999 = vmatpush2.xpose.msra.mxu1 %v794_v58  ;;  %v951_v57 = vld [vmem:[#allocation5 + $0x1b98] sm:$0xff]  ;;  %v948_v58 = vld [vmem:[#allocation5 + $0x1b80] sm:$0xff] }
 0x30a   :  { %1929 = vmatprep.subr.mxu0 %v785_v61  ;;  %2000 = vmatprep.subr.mxu1 %v787_v62  ;;  %v950_v61 = vld [vmem:[#allocation5 + $0x1b90] sm:$0xff]  ;;  %v941_v62 = vld [vmem:[#allocation5 + $0x1b48] sm:$0xff] }
 0x30d   :  { %1930 = vmatpush2.xpose.msra.mxu0 %v784_v63  ;;  %2001 = vmatpush2.xpose.msra.mxu1 %v786_v0  ;;  %v943_v63 = vld [vmem:[#allocation5 + $0x1b58] sm:$0xff]  ;;  %v940_v0 = vld [vmem:[#allocation5 + $0x1b40] sm:$0xff] }
 0x30e   :  { %1931 = vmatprep.subr.mxu0 %v777_v1  ;;  %2002 = vmatprep.subr.mxu1 %v779_v2  ;;  %v942_v1 = vld [vmem:[#allocation5 + $0x1b50] sm:$0xff]  ;;  %v933_v2 = vld [vmem:[#allocation5 + $0x1b08] sm:$0xff] }
 0x311   :  { %1932 = vmatpush2.xpose.msra.mxu0 %v776_v50  ;;  %2003 = vmatpush2.xpose.msra.mxu1 %v778_v3  ;;  %v935_v50 = vld [vmem:[#allocation5 + $0x1b18] sm:$0xff]  ;;  %v932_v3 = vld [vmem:[#allocation5 + $0x1b00] sm:$0xff] }
 0x312   :  { %1933 = vmatprep.subr.mxu0 %v769_v4  ;;  %2004 = vmatprep.subr.mxu1 %v771_v5  ;;  %v934_v4 = vld [vmem:[#allocation5 + $0x1b10] sm:$0xff]  ;;  %v925_v5 = vld [vmem:[#allocation5 + $0x1ac8] sm:$0xff] }
 0x315   :  { %1934 = vmatpush2.xpose.msra.mxu0 %v768_v6  ;;  %2005 = vmatpush2.xpose.msra.mxu1 %v770_v7  ;;  %v927_v6 = vld [vmem:[#allocation5 + $0x1ad8] sm:$0xff]  ;;  %v917_v7 = vld [vmem:[#allocation5 + $0x1a88] sm:$0xff] }
 0x316   :  { %1935 = vmatprep.subr.mxu0 %v761_v8  ;;  %2006 = vmatprep.subr.mxu1 %v763_v9  ;;  %v919_v8 = vld [vmem:[#allocation5 + $0x1a98] sm:$0xff]  ;;  %v916_v9 = vld [vmem:[#allocation5 + $0x1a80] sm:$0xff] }
 0x319   :  { %1936 = vmatpush2.xpose.msra.mxu0 %v760_v10  ;;  %2007 = vmatpush2.xpose.msra.mxu1 %v762_v13  ;;  %v918_v10 = vld [vmem:[#allocation5 + $0x1a90] sm:$0xff]  ;;  %v909_v13 = vld [vmem:[#allocation5 + $0x1a48] sm:$0xff] }
 0x31a   :  { %1937 = vmatprep.subr.mxu0 %v753_v14  ;;  %2008 = vmatprep.subr.mxu1 %v755_v15  ;;  %v911_v14 = vld [vmem:[#allocation5 + $0x1a58] sm:$0xff]  ;;  %v908_v15 = vld [vmem:[#allocation5 + $0x1a40] sm:$0xff] }
 0x31d   :  { %1938 = vmatpush2.xpose.msra.mxu0 %v752_v16  ;;  %2009 = vmatpush2.xpose.msra.mxu1 %v754_v21  ;;  %v910_v16 = vld [vmem:[#allocation5 + $0x1a50] sm:$0xff]  ;;  %v901_v21 = vld [vmem:[#allocation5 + $0x1a08] sm:$0xff] }
 0x31e   :  { %1939 = vmatprep.subr.mxu0 %v745_v22  ;;  %2010 = vmatprep.subr.mxu1 %v747_v23  ;;  %v903_v22 = vld [vmem:[#allocation5 + $0x1a18] sm:$0xff]  ;;  %v900_v23 = vld [vmem:[#allocation5 + $0x1a00] sm:$0xff] }
 0x321   :  { %1940 = vmatpush2.xpose.msra.mxu0 %v744_v24  ;;  %2011 = vmatpush2.xpose.msra.mxu1 %v746_v27  ;;  %v902_v24 = vld [vmem:[#allocation5 + $0x1a10] sm:$0xff]  ;;  %v893_v27 = vld [vmem:[#allocation5 + $0x19c8] sm:$0xff] }
 0x322   :  { %1941 = vmatprep.subr.mxu0 %v737_v28  ;;  %2012 = vmatprep.subr.mxu1 %v739_v29  ;;  %v895_v28 = vld [vmem:[#allocation5 + $0x19d8] sm:$0xff]  ;;  %v892_v29 = vld [vmem:[#allocation5 + $0x19c0] sm:$0xff] }
 0x325   :  { %1942 = vmatpush2.xpose.msra.mxu0 %v736_v30  ;;  %2013 = vmatpush2.xpose.msra.mxu1 %v738_v31  ;;  %v894_v30 = vld [vmem:[#allocation5 + $0x19d0] sm:$0xff]  ;;  %v885_v31 = vld [vmem:[#allocation5 + $0x1988] sm:$0xff] }
 0x326   :  { %1943 = vmatprep.subr.mxu0 %v729_v32  ;;  %2014 = vmatprep.subr.mxu1 %v731_v33  ;;  %v887_v32 = vld [vmem:[#allocation5 + $0x1998] sm:$0xff]  ;;  %v884_v33 = vld [vmem:[#allocation5 + $0x1980] sm:$0xff] }
 0x329   :  { %1944 = vmatpush2.xpose.msra.mxu0 %v728_v34  ;;  %2015 = vmatpush2.xpose.msra.mxu1 %v730_v35  ;;  %v886_v34 = vld [vmem:[#allocation5 + $0x1990] sm:$0xff]  ;;  %v877_v35 = vld [vmem:[#allocation5 + $0x1948] sm:$0xff] }
 0x32a   :  { %1945 = vmatprep.subr.mxu0 %v721_v36  ;;  %2016 = vmatprep.subr.mxu1 %v723_v37  ;;  %v879_v36 = vld [vmem:[#allocation5 + $0x1958] sm:$0xff]  ;;  %v876_v37 = vld [vmem:[#allocation5 + $0x1940] sm:$0xff] }
 0x32d   :  { %1946 = vmatpush2.xpose.msra.mxu0 %v720_v38  ;;  %2017 = vmatpush2.xpose.msra.mxu1 %v722_v39  ;;  %v878_v38 = vld [vmem:[#allocation5 + $0x1950] sm:$0xff]  ;;  %v869_v39 = vld [vmem:[#allocation5 + $0x1908] sm:$0xff] }
 0x32e   :  { %1947 = vmatprep.subr.mxu0 %v713_v40  ;;  %2018 = vmatprep.subr.mxu1 %v715_v42  ;;  %v871_v40 = vld [vmem:[#allocation5 + $0x1918] sm:$0xff]  ;;  %v868_v42 = vld [vmem:[#allocation5 + $0x1900] sm:$0xff] }
 0x331   :  { %1948 = vmatpush2.xpose.msra.mxu0 %v712_v43  ;;  %2019 = vmatpush2.xpose.msra.mxu1 %v714_v44  ;;  %v870_v43 = vld [vmem:[#allocation5 + $0x1910] sm:$0xff]  ;;  %v861_v44 = vld [vmem:[#allocation5 + $0x18c8] sm:$0xff] }
 0x332   :  { %2027 = vmatprep.subr.mxu0 %v957_v45  ;;  %2098 = vmatprep.subr.mxu1 %v959_v48  ;;  %v863_v45 = vld [vmem:[#allocation5 + $0x18d8] sm:$0xff]  ;;  %v860_v48 = vld [vmem:[#allocation5 + $0x18c0] sm:$0xff] }
 0x334   :  { %1950 = vmatmul.mubr.f32.vlgmr.msra.gmra.mxu0 %v2666_v59  ;;  %2021 = vmatmul.mubr.f32.vlgmr.msra.gmra.mxu1 %v2670_v60 }
 0x335   :  { %2028 = vmatpush1.xpose.msra.mxu0 %v956_v49  ;;  %2099 = vmatpush1.xpose.msra.mxu1 %v958_v55  ;;  %v862_v49 = vld [vmem:[#allocation5 + $0x18d0] sm:$0xff]  ;;  %v853_v55 = vld [vmem:[#allocation5 + $0x1888] sm:$0xff] }
 0x336   :  { %2029 = vmatprep.subr.mxu0 %v949_v56  ;;  %2100 = vmatprep.subr.mxu1 %v951_v57  ;;  %v855_v56 = vld [vmem:[#allocation5 + $0x1898] sm:$0xff]  ;;  %v852_v57 = vld [vmem:[#allocation5 + $0x1880] sm:$0xff] }
 0x337   :  { %2091 = vmatprep.mubr.f32.mxu0 %v2618_v53  ;;  %2162 = vmatprep.mubr.f32.mxu1 %v2622_v54  ;;  %v924_v53 = vld [vmem:[#allocation5 + $0x1ac0] sm:$0xff]  ;;  %v926_v54 = vld [vmem:[#allocation5 + $0x1ad0] sm:$0xff] }
 0x339   :  { %2030 = vmatpush1.xpose.msra.mxu0 %v948_v58  ;;  %2101 = vmatpush1.xpose.msra.mxu1 %v950_v61  ;;  %v854_v58 = vld [vmem:[#allocation5 + $0x1890] sm:$0xff]  ;;  %v845_v61 = vld [vmem:[#allocation5 + $0x1848] sm:$0xff] }
 0x33a   :  { %2031 = vmatprep.subr.mxu0 %v941_v62  ;;  %2102 = vmatprep.subr.mxu1 %v943_v63  ;;  %v847_v62 = vld [vmem:[#allocation5 + $0x1858] sm:$0xff]  ;;  %v844_v63 = vld [vmem:[#allocation5 + $0x1840] sm:$0xff] }
 0x33d   :  { %2032 = vmatpush1.xpose.msra.mxu0 %v940_v0  ;;  %2103 = vmatpush1.xpose.msra.mxu1 %v942_v1  ;;  %v846_v0 = vld [vmem:[#allocation5 + $0x1850] sm:$0xff]  ;;  %v837_v1 = vld [vmem:[#allocation5 + $0x1808] sm:$0xff] }
 0x33e   :  { %2033 = vmatprep.subr.mxu0 %v933_v2  ;;  %2104 = vmatprep.subr.mxu1 %v935_v50  ;;  %v839_v2 = vld [vmem:[#allocation5 + $0x1818] sm:$0xff]  ;;  %v836_v50 = vld [vmem:[#allocation5 + $0x1800] sm:$0xff] }
 0x341   :  { %2034 = vmatpush1.xpose.msra.mxu0 %v932_v3  ;;  %2105 = vmatpush1.xpose.msra.mxu1 %v934_v4  ;;  %v838_v3 = vld [vmem:[#allocation5 + $0x1810] sm:$0xff]  ;;  %v1085_v4 = vld [vmem:[#allocation5 + $0x1fc8] sm:$0xff] }
 0x342   :  { %2035 = vmatprep.subr.mxu0 %v925_v5  ;;  %2106 = vmatprep.subr.mxu1 %v927_v6  ;;  %v1087_v5 = vld [vmem:[#allocation5 + $0x1fd8] sm:$0xff]  ;;  %v1084_v6 = vld [vmem:[#allocation5 + $0x1fc0] sm:$0xff] }
 0x345   :  { %2036 = vmatpush1.xpose.msra.mxu0 %v924_v53  ;;  %2107 = vmatpush1.xpose.msra.mxu1 %v926_v54  ;;  %v1086_v53 = vld [vmem:[#allocation5 + $0x1fd0] sm:$0xff]  ;;  %v1077_v54 = vld [vmem:[#allocation5 + $0x1f88] sm:$0xff] }
 0x346   :  { %2037 = vmatprep.subr.mxu0 %v917_v7  ;;  %2108 = vmatprep.subr.mxu1 %v919_v8  ;;  %v1079_v7 = vld [vmem:[#allocation5 + $0x1f98] sm:$0xff]  ;;  %v1076_v8 = vld [vmem:[#allocation5 + $0x1f80] sm:$0xff] }
 0x349   :  { %2038 = vmatpush1.xpose.msra.mxu0 %v916_v9  ;;  %2109 = vmatpush1.xpose.msra.mxu1 %v918_v10  ;;  %v1078_v9 = vld [vmem:[#allocation5 + $0x1f90] sm:$0xff]  ;;  %v1069_v10 = vld [vmem:[#allocation5 + $0x1f48] sm:$0xff] }
 0x34a   :  { %2039 = vmatprep.subr.mxu0 %v909_v13  ;;  %2110 = vmatprep.subr.mxu1 %v911_v14  ;;  %v1071_v13 = vld [vmem:[#allocation5 + $0x1f58] sm:$0xff]  ;;  %v1068_v14 = vld [vmem:[#allocation5 + $0x1f40] sm:$0xff] }
 0x34d   :  { %2040 = vmatpush1.xpose.msra.mxu0 %v908_v15  ;;  %2111 = vmatpush1.xpose.msra.mxu1 %v910_v16  ;;  %v1070_v15 = vld [vmem:[#allocation5 + $0x1f50] sm:$0xff]  ;;  %v1061_v16 = vld [vmem:[#allocation5 + $0x1f08] sm:$0xff] }
 0x34e   :  { %2041 = vmatprep.subr.mxu0 %v901_v21  ;;  %2112 = vmatprep.subr.mxu1 %v903_v22  ;;  %v1063_v21 = vld [vmem:[#allocation5 + $0x1f18] sm:$0xff]  ;;  %v1060_v22 = vld [vmem:[#allocation5 + $0x1f00] sm:$0xff] }
 0x351   :  { %2042 = vmatpush1.xpose.msra.mxu0 %v900_v23  ;;  %2113 = vmatpush1.xpose.msra.mxu1 %v902_v24  ;;  %v1062_v23 = vld [vmem:[#allocation5 + $0x1f10] sm:$0xff]  ;;  %v1053_v24 = vld [vmem:[#allocation5 + $0x1ec8] sm:$0xff] }
 0x352   :  { %2043 = vmatprep.subr.mxu0 %v893_v27  ;;  %2114 = vmatprep.subr.mxu1 %v895_v28  ;;  %v1055_v27 = vld [vmem:[#allocation5 + $0x1ed8] sm:$0xff]  ;;  %v1052_v28 = vld [vmem:[#allocation5 + $0x1ec0] sm:$0xff] }
 0x355   :  { %2044 = vmatpush1.xpose.msra.mxu0 %v892_v29  ;;  %2115 = vmatpush1.xpose.msra.mxu1 %v894_v30  ;;  %v1054_v29 = vld [vmem:[#allocation5 + $0x1ed0] sm:$0xff]  ;;  %v1045_v30 = vld [vmem:[#allocation5 + $0x1e88] sm:$0xff] }
 0x356   :  { %2045 = vmatprep.subr.mxu0 %v885_v31  ;;  %2116 = vmatprep.subr.mxu1 %v887_v32  ;;  %v1047_v31 = vld [vmem:[#allocation5 + $0x1e98] sm:$0xff]  ;;  %v1044_v32 = vld [vmem:[#allocation5 + $0x1e80] sm:$0xff] }
 0x359   :  { %2046 = vmatpush1.xpose.msra.mxu0 %v884_v33  ;;  %2117 = vmatpush1.xpose.msra.mxu1 %v886_v34  ;;  %v1046_v33 = vld [vmem:[#allocation5 + $0x1e90] sm:$0xff]  ;;  %v1037_v34 = vld [vmem:[#allocation5 + $0x1e48] sm:$0xff] }
 0x35a   :  { %2047 = vmatprep.subr.mxu0 %v877_v35  ;;  %2118 = vmatprep.subr.mxu1 %v879_v36  ;;  %v1039_v35 = vld [vmem:[#allocation5 + $0x1e58] sm:$0xff]  ;;  %v1036_v36 = vld [vmem:[#allocation5 + $0x1e40] sm:$0xff] }
 0x35d   :  { %2048 = vmatpush1.xpose.msra.mxu0 %v876_v37  ;;  %2119 = vmatpush1.xpose.msra.mxu1 %v878_v38  ;;  %v1038_v37 = vld [vmem:[#allocation5 + $0x1e50] sm:$0xff]  ;;  %v1029_v38 = vld [vmem:[#allocation5 + $0x1e08] sm:$0xff] }
 0x35e   :  { %2049 = vmatprep.subr.mxu0 %v869_v39  ;;  %2120 = vmatprep.subr.mxu1 %v871_v40  ;;  %v1031_v39 = vld [vmem:[#allocation5 + $0x1e18] sm:$0xff]  ;;  %v1028_v40 = vld [vmem:[#allocation5 + $0x1e00] sm:$0xff] }
 0x361   :  { %2050 = vmatpush1.xpose.msra.mxu0 %v868_v42  ;;  %2121 = vmatpush1.xpose.msra.mxu1 %v870_v43  ;;  %v1030_v42 = vld [vmem:[#allocation5 + $0x1e10] sm:$0xff]  ;;  %v1021_v43 = vld [vmem:[#allocation5 + $0x1dc8] sm:$0xff] }
 0x362   :  { %2051 = vmatprep.subr.mxu0 %v861_v44  ;;  %2122 = vmatprep.subr.mxu1 %v863_v45  ;;  %v1023_v44 = vld [vmem:[#allocation5 + $0x1dd8] sm:$0xff]  ;;  %v1020_v45 = vld [vmem:[#allocation5 + $0x1dc0] sm:$0xff] }
 0x365   :  { %2052 = vmatpush1.xpose.msra.mxu0 %v860_v48  ;;  %2123 = vmatpush1.xpose.msra.mxu1 %v862_v49  ;;  %v1022_v48 = vld [vmem:[#allocation5 + $0x1dd0] sm:$0xff]  ;;  %v1013_v49 = vld [vmem:[#allocation5 + $0x1d88] sm:$0xff] }
 0x366   :  { %2053 = vmatprep.subr.mxu0 %v853_v55  ;;  %2124 = vmatprep.subr.mxu1 %v855_v56  ;;  %v1015_v55 = vld [vmem:[#allocation5 + $0x1d98] sm:$0xff]  ;;  %v1012_v56 = vld [vmem:[#allocation5 + $0x1d80] sm:$0xff] }
 0x369   :  { %2054 = vmatpush1.xpose.msra.mxu0 %v852_v57  ;;  %2125 = vmatpush1.xpose.msra.mxu1 %v854_v58  ;;  %v1014_v57 = vld [vmem:[#allocation5 + $0x1d90] sm:$0xff]  ;;  %v1005_v58 = vld [vmem:[#allocation5 + $0x1d48] sm:$0xff] }
 0x36a   :  { %2055 = vmatprep.subr.mxu0 %v845_v61  ;;  %2126 = vmatprep.subr.mxu1 %v847_v62  ;;  %v1007_v61 = vld [vmem:[#allocation5 + $0x1d58] sm:$0xff]  ;;  %v1004_v62 = vld [vmem:[#allocation5 + $0x1d40] sm:$0xff] }
 0x36d   :  { %2056 = vmatpush1.xpose.msra.mxu0 %v844_v63  ;;  %2127 = vmatpush1.xpose.msra.mxu1 %v846_v0  ;;  %v1006_v63 = vld [vmem:[#allocation5 + $0x1d50] sm:$0xff]  ;;  %v997_v0 = vld [vmem:[#allocation5 + $0x1d08] sm:$0xff] }
 0x36e   :  { %2057 = vmatprep.subr.mxu0 %v837_v1  ;;  %2128 = vmatprep.subr.mxu1 %v839_v2  ;;  %v999_v1 = vld [vmem:[#allocation5 + $0x1d18] sm:$0xff]  ;;  %v996_v2 = vld [vmem:[#allocation5 + $0x1d00] sm:$0xff] }
 0x371   :  { %2058 = vmatpush1.xpose.msra.mxu0 %v836_v50  ;;  %2129 = vmatpush1.xpose.msra.mxu1 %v838_v3  ;;  %v998_v50 = vld [vmem:[#allocation5 + $0x1d10] sm:$0xff]  ;;  %v989_v3 = vld [vmem:[#allocation5 + $0x1cc8] sm:$0xff] }
 0x372   :  { %2059 = vmatprep.subr.mxu0 %v1085_v4  ;;  %2130 = vmatprep.subr.mxu1 %v1087_v5  ;;  %v991_v4 = vld [vmem:[#allocation5 + $0x1cd8] sm:$0xff]  ;;  %v988_v5 = vld [vmem:[#allocation5 + $0x1cc0] sm:$0xff] }
 0x375   :  { %2060 = vmatpush2.xpose.msra.mxu0 %v1084_v6  ;;  %2131 = vmatpush2.xpose.msra.mxu1 %v1086_v53  ;;  %v990_v6 = vld [vmem:[#allocation5 + $0x1cd0] sm:$0xff]  ;;  %v981_v53 = vld [vmem:[#allocation5 + $0x1c88] sm:$0xff] }
 0x376   :  { %2061 = vmatprep.subr.mxu0 %v1077_v54  ;;  %2132 = vmatprep.subr.mxu1 %v1079_v7  ;;  %v983_v54 = vld [vmem:[#allocation5 + $0x1c98] sm:$0xff]  ;;  %v980_v7 = vld [vmem:[#allocation5 + $0x1c80] sm:$0xff] }
 0x379   :  { %2062 = vmatpush2.xpose.msra.mxu0 %v1076_v8  ;;  %2133 = vmatpush2.xpose.msra.mxu1 %v1078_v9  ;;  %v982_v8 = vld [vmem:[#allocation5 + $0x1c90] sm:$0xff]  ;;  %v973_v9 = vld [vmem:[#allocation5 + $0x1c48] sm:$0xff] }
 0x37a   :  { %2063 = vmatprep.subr.mxu0 %v1069_v10  ;;  %2134 = vmatprep.subr.mxu1 %v1071_v13  ;;  %v975_v10 = vld [vmem:[#allocation5 + $0x1c58] sm:$0xff]  ;;  %v972_v13 = vld [vmem:[#allocation5 + $0x1c40] sm:$0xff] }
 0x37d   :  { %2064 = vmatpush2.xpose.msra.mxu0 %v1068_v14  ;;  %2135 = vmatpush2.xpose.msra.mxu1 %v1070_v15  ;;  %v974_v14 = vld [vmem:[#allocation5 + $0x1c50] sm:$0xff]  ;;  %v965_v15 = vld [vmem:[#allocation5 + $0x1c08] sm:$0xff] }
 0x37e   :  { %2065 = vmatprep.subr.mxu0 %v1061_v16  ;;  %2136 = vmatprep.subr.mxu1 %v1063_v21  ;;  %v967_v16 = vld [vmem:[#allocation5 + $0x1c18] sm:$0xff]  ;;  %v964_v21 = vld [vmem:[#allocation5 + $0x1c00] sm:$0xff] }
 0x381   :  { %2066 = vmatpush2.xpose.msra.mxu0 %v1060_v22  ;;  %2137 = vmatpush2.xpose.msra.mxu1 %v1062_v23  ;;  %v966_v22 = vld [vmem:[#allocation5 + $0x1c10] sm:$0xff]  ;;  %v961_v23 = vld [vmem:[#allocation5 + $0x1be8] sm:$0xff] }
 0x382   :  { %2067 = vmatprep.subr.mxu0 %v1053_v24  ;;  %2138 = vmatprep.subr.mxu1 %v1055_v27  ;;  %v963_v24 = vld [vmem:[#allocation5 + $0x1bf8] sm:$0xff]  ;;  %v960_v27 = vld [vmem:[#allocation5 + $0x1be0] sm:$0xff] }
 0x385   :  { %2068 = vmatpush2.xpose.msra.mxu0 %v1052_v28  ;;  %2139 = vmatpush2.xpose.msra.mxu1 %v1054_v29  ;;  %v962_v28 = vld [vmem:[#allocation5 + $0x1bf0] sm:$0xff]  ;;  %v953_v29 = vld [vmem:[#allocation5 + $0x1ba8] sm:$0xff] }
 0x386   :  { %2069 = vmatprep.subr.mxu0 %v1045_v30  ;;  %2140 = vmatprep.subr.mxu1 %v1047_v31  ;;  %v955_v30 = vld [vmem:[#allocation5 + $0x1bb8] sm:$0xff]  ;;  %v952_v31 = vld [vmem:[#allocation5 + $0x1ba0] sm:$0xff] }
 0x389   :  { %2070 = vmatpush2.xpose.msra.mxu0 %v1044_v32  ;;  %2141 = vmatpush2.xpose.msra.mxu1 %v1046_v33  ;;  %v954_v32 = vld [vmem:[#allocation5 + $0x1bb0] sm:$0xff]  ;;  %v945_v33 = vld [vmem:[#allocation5 + $0x1b68] sm:$0xff] }
 0x38a   :  { %2071 = vmatprep.subr.mxu0 %v1037_v34  ;;  %2142 = vmatprep.subr.mxu1 %v1039_v35  ;;  %v947_v34 = vld [vmem:[#allocation5 + $0x1b78] sm:$0xff]  ;;  %v944_v35 = vld [vmem:[#allocation5 + $0x1b60] sm:$0xff] }
 0x38d   :  { %2072 = vmatpush2.xpose.msra.mxu0 %v1036_v36  ;;  %2143 = vmatpush2.xpose.msra.mxu1 %v1038_v37  ;;  %v937_v36 = vld [vmem:[#allocation5 + $0x1b28] sm:$0xff]  ;;  %v936_v37 = vld [vmem:[#allocation5 + $0x1b20] sm:$0xff] }
 0x38e   :  { %2073 = vmatprep.subr.mxu0 %v1029_v38  ;;  %2144 = vmatprep.subr.mxu1 %v1031_v39  ;;  %v938_v38 = vld [vmem:[#allocation5 + $0x1b30] sm:$0xff]  ;;  %v929_v39 = vld [vmem:[#allocation5 + $0x1ae8] sm:$0xff] }
 0x391   :  { %2074 = vmatpush2.xpose.msra.mxu0 %v1028_v40  ;;  %2145 = vmatpush2.xpose.msra.mxu1 %v1030_v42  ;;  %v931_v40 = vld [vmem:[#allocation5 + $0x1af8] sm:$0xff]  ;;  %v921_v42 = vld [vmem:[#allocation5 + $0x1aa8] sm:$0xff] }
 0x392   :  { %2075 = vmatprep.subr.mxu0 %v1021_v43  ;;  %2146 = vmatprep.subr.mxu1 %v1023_v44  ;;  %v923_v43 = vld [vmem:[#allocation5 + $0x1ab8] sm:$0xff]  ;;  %v920_v44 = vld [vmem:[#allocation5 + $0x1aa0] sm:$0xff] }
 0x395   :  { %2076 = vmatpush2.xpose.msra.mxu0 %v1020_v45  ;;  %2147 = vmatpush2.xpose.msra.mxu1 %v1022_v48  ;;  %v922_v45 = vld [vmem:[#allocation5 + $0x1ab0] sm:$0xff]  ;;  %v913_v48 = vld [vmem:[#allocation5 + $0x1a68] sm:$0xff] }
 0x396   :  { %2077 = vmatprep.subr.mxu0 %v1013_v49  ;;  %2148 = vmatprep.subr.mxu1 %v1015_v55  ;;  %v915_v49 = vld [vmem:[#allocation5 + $0x1a78] sm:$0xff]  ;;  %v912_v55 = vld [vmem:[#allocation5 + $0x1a60] sm:$0xff] }
 0x399   :  { %2078 = vmatpush2.xpose.msra.mxu0 %v1012_v56  ;;  %2149 = vmatpush2.xpose.msra.mxu1 %v1014_v57  ;;  %v914_v56 = vld [vmem:[#allocation5 + $0x1a70] sm:$0xff]  ;;  %v905_v57 = vld [vmem:[#allocation5 + $0x1a28] sm:$0xff] }
 0x39a   :  { %2079 = vmatprep.subr.mxu0 %v1005_v58  ;;  %2150 = vmatprep.subr.mxu1 %v1007_v61  ;;  %v907_v58 = vld [vmem:[#allocation5 + $0x1a38] sm:$0xff]  ;;  %v904_v61 = vld [vmem:[#allocation5 + $0x1a20] sm:$0xff] }
 0x39d   :  { %2080 = vmatpush2.xpose.msra.mxu0 %v1004_v62  ;;  %2151 = vmatpush2.xpose.msra.mxu1 %v1006_v63  ;;  %v906_v62 = vld [vmem:[#allocation5 + $0x1a30] sm:$0xff]  ;;  %v897_v63 = vld [vmem:[#allocation5 + $0x19e8] sm:$0xff] }
 0x39e   :  { %2081 = vmatprep.subr.mxu0 %v997_v0  ;;  %2152 = vmatprep.subr.mxu1 %v999_v1  ;;  %v899_v0 = vld [vmem:[#allocation5 + $0x19f8] sm:$0xff]  ;;  %v896_v1 = vld [vmem:[#allocation5 + $0x19e0] sm:$0xff] }
 0x3a1   :  { %2082 = vmatpush2.xpose.msra.mxu0 %v996_v2  ;;  %2153 = vmatpush2.xpose.msra.mxu1 %v998_v50  ;;  %v898_v2 = vld [vmem:[#allocation5 + $0x19f0] sm:$0xff]  ;;  %v889_v50 = vld [vmem:[#allocation5 + $0x19a8] sm:$0xff] }
 0x3a2   :  { %2083 = vmatprep.subr.mxu0 %v989_v3  ;;  %2154 = vmatprep.subr.mxu1 %v991_v4  ;;  %v891_v3 = vld [vmem:[#allocation5 + $0x19b8] sm:$0xff]  ;;  %v888_v4 = vld [vmem:[#allocation5 + $0x19a0] sm:$0xff] }
 0x3a5   :  { %2084 = vmatpush2.xpose.msra.mxu0 %v988_v5  ;;  %2155 = vmatpush2.xpose.msra.mxu1 %v990_v6  ;;  %v890_v5 = vld [vmem:[#allocation5 + $0x19b0] sm:$0xff]  ;;  %v881_v6 = vld [vmem:[#allocation5 + $0x1968] sm:$0xff] }
 0x3a6   :  { %2085 = vmatprep.subr.mxu0 %v981_v53  ;;  %2156 = vmatprep.subr.mxu1 %v983_v54  ;;  %v883_v53 = vld [vmem:[#allocation5 + $0x1978] sm:$0xff]  ;;  %v880_v54 = vld [vmem:[#allocation5 + $0x1960] sm:$0xff] }
 0x3a9   :  { %2086 = vmatpush2.xpose.msra.mxu0 %v980_v7  ;;  %2157 = vmatpush2.xpose.msra.mxu1 %v982_v8  ;;  %v882_v7 = vld [vmem:[#allocation5 + $0x1970] sm:$0xff]  ;;  %v873_v8 = vld [vmem:[#allocation5 + $0x1928] sm:$0xff] }
 0x3aa   :  { %2087 = vmatprep.subr.mxu0 %v973_v9  ;;  %2158 = vmatprep.subr.mxu1 %v975_v10  ;;  %v875_v9 = vld [vmem:[#allocation5 + $0x1938] sm:$0xff]  ;;  %v872_v10 = vld [vmem:[#allocation5 + $0x1920] sm:$0xff] }
 0x3ad   :  { %2088 = vmatpush2.xpose.msra.mxu0 %v972_v13  ;;  %2159 = vmatpush2.xpose.msra.mxu1 %v974_v14  ;;  %v874_v13 = vld [vmem:[#allocation5 + $0x1930] sm:$0xff]  ;;  %v865_v14 = vld [vmem:[#allocation5 + $0x18e8] sm:$0xff] }
 0x3ae   :  { %2089 = vmatprep.subr.mxu0 %v965_v15  ;;  %2160 = vmatprep.subr.mxu1 %v967_v16  ;;  %v867_v15 = vld [vmem:[#allocation5 + $0x18f8] sm:$0xff]  ;;  %v864_v16 = vld [vmem:[#allocation5 + $0x18e0] sm:$0xff] }
 0x3b1   :  { %2090 = vmatpush2.xpose.msra.mxu0 %v964_v21  ;;  %2161 = vmatpush2.xpose.msra.mxu1 %v966_v22  ;;  %v866_v21 = vld [vmem:[#allocation5 + $0x18f0] sm:$0xff]  ;;  %v857_v22 = vld [vmem:[#allocation5 + $0x18a8] sm:$0xff] }
 0x3b2   :  { %2169 = vmatprep.subr.mxu0 %v961_v23  ;;  %2240 = vmatprep.subr.mxu1 %v963_v24  ;;  %v859_v23 = vld [vmem:[#allocation5 + $0x18b8] sm:$0xff]  ;;  %v856_v24 = vld [vmem:[#allocation5 + $0x18a0] sm:$0xff] }
 0x3b4   :  { %2092 = vmatmul.mubr.f32.vlgmr.msra.gmra.mxu0 %v2637_v18  ;;  %2163 = vmatmul.mubr.f32.vlgmr.msra.gmra.mxu1 %v2641_v19  ;;  %v946_v18 = vld [vmem:[#allocation5 + $0x1b70] sm:$0xff]  ;;  %v939_v19 = vld [vmem:[#allocation5 + $0x1b38] sm:$0xff] }
 0x3b5   :  { %2170 = vmatpush1.xpose.msra.mxu0 %v960_v27  ;;  %2241 = vmatpush1.xpose.msra.mxu1 %v962_v28  ;;  %v858_v27 = vld [vmem:[#allocation5 + $0x18b0] sm:$0xff]  ;;  %v849_v28 = vld [vmem:[#allocation5 + $0x1868] sm:$0xff] }
 0x3b6   :  { %2171 = vmatprep.subr.mxu0 %v953_v29  ;;  %2242 = vmatprep.subr.mxu1 %v955_v30  ;;  %v851_v29 = vld [vmem:[#allocation5 + $0x1878] sm:$0xff]  ;;  %v848_v30 = vld [vmem:[#allocation5 + $0x1860] sm:$0xff] }
 0x3b7   :  { %2233 = vmatprep.mubr.f32.mxu0 %v2648_v25  ;;  %2304 = vmatprep.mubr.f32.mxu1 %v2652_v26  ;;  %v928_v25 = vld [vmem:[#allocation5 + $0x1ae0] sm:$0xff]  ;;  %v930_v26 = vld [vmem:[#allocation5 + $0x1af0] sm:$0xff] }
 0x3b9   :  { %2172 = vmatpush1.xpose.msra.mxu0 %v952_v31  ;;  %2243 = vmatpush1.xpose.msra.mxu1 %v954_v32  ;;  %v850_v31 = vld [vmem:[#allocation5 + $0x1870] sm:$0xff]  ;;  %v841_v32 = vld [vmem:[#allocation5 + $0x1828] sm:$0xff] }
 0x3ba   :  { %2173 = vmatprep.subr.mxu0 %v945_v33  ;;  %2244 = vmatprep.subr.mxu1 %v947_v34  ;;  %v843_v33 = vld [vmem:[#allocation5 + $0x1838] sm:$0xff]  ;;  %v840_v34 = vld [vmem:[#allocation5 + $0x1820] sm:$0xff] }
 0x3bd   :  { %2174 = vmatpush1.xpose.msra.mxu0 %v944_v35  ;;  %2245 = vmatpush1.xpose.msra.mxu1 %v946_v18  ;;  %v842_v35 = vld [vmem:[#allocation5 + $0x1830] sm:$0xff]  ;;  %v1089_v18 = vld [vmem:[#allocation5 + $0x1fe8] sm:$0xff] }
 0x3be   :  { %2175 = vmatprep.subr.mxu0 %v937_v36  ;;  %2246 = vmatprep.subr.mxu1 %v939_v19  ;;  %v1091_v36 = vld [vmem:[#allocation5 + $0x1ff8] sm:$0xff]  ;;  %v1088_v19 = vld [vmem:[#allocation5 + $0x1fe0] sm:$0xff] }
 0x3c1   :  { %2176 = vmatpush1.xpose.msra.mxu0 %v936_v37  ;;  %2247 = vmatpush1.xpose.msra.mxu1 %v938_v38  ;;  %v1090_v37 = vld [vmem:[#allocation5 + $0x1ff0] sm:$0xff]  ;;  %v1081_v38 = vld [vmem:[#allocation5 + $0x1fa8] sm:$0xff] }
 0x3c2   :  { %2177 = vmatprep.subr.mxu0 %v929_v39  ;;  %2248 = vmatprep.subr.mxu1 %v931_v40  ;;  %v1083_v39 = vld [vmem:[#allocation5 + $0x1fb8] sm:$0xff]  ;;  %v1080_v40 = vld [vmem:[#allocation5 + $0x1fa0] sm:$0xff] }
 0x3c5   :  { %2178 = vmatpush1.xpose.msra.mxu0 %v928_v25  ;;  %2249 = vmatpush1.xpose.msra.mxu1 %v930_v26  ;;  %v1082_v25 = vld [vmem:[#allocation5 + $0x1fb0] sm:$0xff]  ;;  %v1073_v26 = vld [vmem:[#allocation5 + $0x1f68] sm:$0xff] }
 0x3c6   :  { %2179 = vmatprep.subr.mxu0 %v921_v42  ;;  %2250 = vmatprep.subr.mxu1 %v923_v43  ;;  %v1075_v42 = vld [vmem:[#allocation5 + $0x1f78] sm:$0xff]  ;;  %v1072_v43 = vld [vmem:[#allocation5 + $0x1f60] sm:$0xff] }
 0x3c9   :  { %2180 = vmatpush1.xpose.msra.mxu0 %v920_v44  ;;  %2251 = vmatpush1.xpose.msra.mxu1 %v922_v45  ;;  %v1074_v44 = vld [vmem:[#allocation5 + $0x1f70] sm:$0xff]  ;;  %v1065_v45 = vld [vmem:[#allocation5 + $0x1f28] sm:$0xff] }
 0x3ca   :  { %2181 = vmatprep.subr.mxu0 %v913_v48  ;;  %2252 = vmatprep.subr.mxu1 %v915_v49  ;;  %v1067_v48 = vld [vmem:[#allocation5 + $0x1f38] sm:$0xff]  ;;  %v1064_v49 = vld [vmem:[#allocation5 + $0x1f20] sm:$0xff] }
 0x3cd   :  { %2182 = vmatpush1.xpose.msra.mxu0 %v912_v55  ;;  %2253 = vmatpush1.xpose.msra.mxu1 %v914_v56  ;;  %v1066_v55 = vld [vmem:[#allocation5 + $0x1f30] sm:$0xff]  ;;  %v1057_v56 = vld [vmem:[#allocation5 + $0x1ee8] sm:$0xff] }
 0x3ce   :  { %2183 = vmatprep.subr.mxu0 %v905_v57  ;;  %2254 = vmatprep.subr.mxu1 %v907_v58  ;;  %v1059_v57 = vld [vmem:[#allocation5 + $0x1ef8] sm:$0xff]  ;;  %v1056_v58 = vld [vmem:[#allocation5 + $0x1ee0] sm:$0xff] }
 0x3d1   :  { %2184 = vmatpush1.xpose.msra.mxu0 %v904_v61  ;;  %2255 = vmatpush1.xpose.msra.mxu1 %v906_v62  ;;  %v1058_v61 = vld [vmem:[#allocation5 + $0x1ef0] sm:$0xff]  ;;  %v1049_v62 = vld [vmem:[#allocation5 + $0x1ea8] sm:$0xff] }
 0x3d2   :  { %2185 = vmatprep.subr.mxu0 %v897_v63  ;;  %2256 = vmatprep.subr.mxu1 %v899_v0  ;;  %v1051_v63 = vld [vmem:[#allocation5 + $0x1eb8] sm:$0xff]  ;;  %v1048_v0 = vld [vmem:[#allocation5 + $0x1ea0] sm:$0xff] }
 0x3d5   :  { %2186 = vmatpush1.xpose.msra.mxu0 %v896_v1  ;;  %2257 = vmatpush1.xpose.msra.mxu1 %v898_v2  ;;  %v1050_v1 = vld [vmem:[#allocation5 + $0x1eb0] sm:$0xff]  ;;  %v1041_v2 = vld [vmem:[#allocation5 + $0x1e68] sm:$0xff] }
 0x3d6   :  { %2187 = vmatprep.subr.mxu0 %v889_v50  ;;  %2258 = vmatprep.subr.mxu1 %v891_v3  ;;  %v1043_v50 = vld [vmem:[#allocation5 + $0x1e78] sm:$0xff]  ;;  %v1040_v3 = vld [vmem:[#allocation5 + $0x1e60] sm:$0xff] }
 0x3d9   :  { %2188 = vmatpush1.xpose.msra.mxu0 %v888_v4  ;;  %2259 = vmatpush1.xpose.msra.mxu1 %v890_v5  ;;  %v1042_v4 = vld [vmem:[#allocation5 + $0x1e70] sm:$0xff]  ;;  %v1033_v5 = vld [vmem:[#allocation5 + $0x1e28] sm:$0xff] }
 0x3da   :  { %2189 = vmatprep.subr.mxu0 %v881_v6  ;;  %2260 = vmatprep.subr.mxu1 %v883_v53  ;;  %v1035_v6 = vld [vmem:[#allocation5 + $0x1e38] sm:$0xff]  ;;  %v1032_v53 = vld [vmem:[#allocation5 + $0x1e20] sm:$0xff] }
 0x3dd   :  { %2190 = vmatpush1.xpose.msra.mxu0 %v880_v54  ;;  %2261 = vmatpush1.xpose.msra.mxu1 %v882_v7  ;;  %v1034_v54 = vld [vmem:[#allocation5 + $0x1e30] sm:$0xff]  ;;  %v1025_v7 = vld [vmem:[#allocation5 + $0x1de8] sm:$0xff] }
 0x3de   :  { %2191 = vmatprep.subr.mxu0 %v873_v8  ;;  %2262 = vmatprep.subr.mxu1 %v875_v9  ;;  %v1027_v8 = vld [vmem:[#allocation5 + $0x1df8] sm:$0xff]  ;;  %v1024_v9 = vld [vmem:[#allocation5 + $0x1de0] sm:$0xff] }
 0x3e1   :  { %2192 = vmatpush1.xpose.msra.mxu0 %v872_v10  ;;  %2263 = vmatpush1.xpose.msra.mxu1 %v874_v13  ;;  %v1026_v10 = vld [vmem:[#allocation5 + $0x1df0] sm:$0xff]  ;;  %v1017_v13 = vld [vmem:[#allocation5 + $0x1da8] sm:$0xff] }
 0x3e2   :  { %2193 = vmatprep.subr.mxu0 %v865_v14  ;;  %2264 = vmatprep.subr.mxu1 %v867_v15  ;;  %v1019_v14 = vld [vmem:[#allocation5 + $0x1db8] sm:$0xff]  ;;  %v1016_v15 = vld [vmem:[#allocation5 + $0x1da0] sm:$0xff] }
 0x3e5   :  { %2194 = vmatpush1.xpose.msra.mxu0 %v864_v16  ;;  %2265 = vmatpush1.xpose.msra.mxu1 %v866_v21  ;;  %v1018_v16 = vld [vmem:[#allocation5 + $0x1db0] sm:$0xff]  ;;  %v1009_v21 = vld [vmem:[#allocation5 + $0x1d68] sm:$0xff] }
 0x3e6   :  { %2195 = vmatprep.subr.mxu0 %v857_v22  ;;  %2266 = vmatprep.subr.mxu1 %v859_v23  ;;  %v1011_v22 = vld [vmem:[#allocation5 + $0x1d78] sm:$0xff]  ;;  %v1008_v23 = vld [vmem:[#allocation5 + $0x1d60] sm:$0xff] }
 0x3e9   :  { %2196 = vmatpush1.xpose.msra.mxu0 %v856_v24  ;;  %2267 = vmatpush1.xpose.msra.mxu1 %v858_v27  ;;  %v1010_v24 = vld [vmem:[#allocation5 + $0x1d70] sm:$0xff]  ;;  %v1001_v27 = vld [vmem:[#allocation5 + $0x1d28] sm:$0xff] }
 0x3ea   :  { %2197 = vmatprep.subr.mxu0 %v849_v28  ;;  %2268 = vmatprep.subr.mxu1 %v851_v29  ;;  %v1003_v28 = vld [vmem:[#allocation5 + $0x1d38] sm:$0xff]  ;;  %v1000_v29 = vld [vmem:[#allocation5 + $0x1d20] sm:$0xff] }
 0x3ed   :  { %2198 = vmatpush1.xpose.msra.mxu0 %v848_v30  ;;  %2269 = vmatpush1.xpose.msra.mxu1 %v850_v31  ;;  %v1002_v30 = vld [vmem:[#allocation5 + $0x1d30] sm:$0xff]  ;;  %v993_v31 = vld [vmem:[#allocation5 + $0x1ce8] sm:$0xff] }
 0x3ee   :  { %2199 = vmatprep.subr.mxu0 %v841_v32  ;;  %2270 = vmatprep.subr.mxu1 %v843_v33  ;;  %v995_v32 = vld [vmem:[#allocation5 + $0x1cf8] sm:$0xff]  ;;  %v992_v33 = vld [vmem:[#allocation5 + $0x1ce0] sm:$0xff] }
 0x3f1   :  { %2200 = vmatpush1.xpose.msra.mxu0 %v840_v34  ;;  %2271 = vmatpush1.xpose.msra.mxu1 %v842_v35  ;;  %v994_v34 = vld [vmem:[#allocation5 + $0x1cf0] sm:$0xff]  ;;  %v985_v35 = vld [vmem:[#allocation5 + $0x1ca8] sm:$0xff] }
 0x3f2   :  { %2201 = vmatprep.subr.mxu0 %v1089_v18  ;;  %2272 = vmatprep.subr.mxu1 %v1091_v36  ;;  %v987_v18 = vld [vmem:[#allocation5 + $0x1cb8] sm:$0xff]  ;;  %v984_v36 = vld [vmem:[#allocation5 + $0x1ca0] sm:$0xff] }
 0x3f5   :  { %2202 = vmatpush2.xpose.msra.mxu0 %v1088_v19  ;;  %2273 = vmatpush2.xpose.msra.mxu1 %v1090_v37  ;;  %v986_v19 = vld [vmem:[#allocation5 + $0x1cb0] sm:$0xff]  ;;  %v977_v37 = vld [vmem:[#allocation5 + $0x1c68] sm:$0xff] }
 0x3f6   :  { %2203 = vmatprep.subr.mxu0 %v1081_v38  ;;  %2274 = vmatprep.subr.mxu1 %v1083_v39  ;;  %v979_v38 = vld [vmem:[#allocation5 + $0x1c78] sm:$0xff]  ;;  %v976_v39 = vld [vmem:[#allocation5 + $0x1c60] sm:$0xff] }
 0x3f9   :  { %2204 = vmatpush2.xpose.msra.mxu0 %v1080_v40  ;;  %2275 = vmatpush2.xpose.msra.mxu1 %v1082_v25  ;;  %v978_v40 = vld [vmem:[#allocation5 + $0x1c70] sm:$0xff]  ;;  %v969_v25 = vld [vmem:[#allocation5 + $0x1c28] sm:$0xff] }
 0x3fa   :  { %2205 = vmatprep.subr.mxu0 %v1073_v26  ;;  %2276 = vmatprep.subr.mxu1 %v1075_v42  ;;  %v971_v26 = vld [vmem:[#allocation5 + $0x1c38] sm:$0xff]  ;;  %v968_v42 = vld [vmem:[#allocation5 + $0x1c20] sm:$0xff] }
 0x3fd   :  { %2206 = vmatpush2.xpose.msra.mxu0 %v1072_v43  ;;  %2277 = vmatpush2.xpose.msra.mxu1 %v1074_v44  ;;  %v970_v43 = vld [vmem:[#allocation5 + $0x1c30] sm:$0xff]  ;;  %v1241_v44 = vpop.f32.mrf.mxu0 }
 0x3fe   :  { %2207 = vmatprep.subr.mxu0 %v1065_v45  ;;  %2278 = vmatprep.subr.mxu1 %v1067_v48  ;;  %v1312_v45 = vpop.f32.mrf.mxu1 }
 0x3ff   :  { %v1243_v48 = vpop.f32.mrf.mxu0 }
 0x401   :  { %2208 = vmatpush2.xpose.msra.mxu0 %v1064_v49  ;;  %2279 = vmatpush2.xpose.msra.mxu1 %v1066_v55  ;;  %v1383_v49 = vpop.f32.mrf.mxu0  ;;  %v1314_v55 = vpop.f32.mrf.mxu1 }
 0x402   :  { %2209 = vmatprep.subr.mxu0 %v1057_v56  ;;  %2280 = vmatprep.subr.mxu1 %v1059_v57 }
 0x403   :  { %v1454_v56 = vpop.f32.mrf.mxu1  ;;  %v1385_v57 = vpop.f32.mrf.mxu0 }
 0x405   :  { %2210 = vmatpush2.xpose.msra.mxu0 %v1056_v58  ;;  %2281 = vmatpush2.xpose.msra.mxu1 %v1058_v61  ;;  %v1525_v58 = vpop.f32.mrf.mxu0  ;;  %v1456_v61 = vpop.f32.mrf.mxu1 }
 0x406   :  { %2211 = vmatprep.subr.mxu0 %v1049_v62  ;;  %2282 = vmatprep.subr.mxu1 %v1051_v63 }
 0x407   :  { %v1596_v62 = vpop.f32.mrf.mxu1  ;;  %v1527_v63 = vpop.f32.mrf.mxu0 }
 0x409   :  { %2212 = vmatpush2.xpose.msra.mxu0 %v1048_v0  ;;  %2283 = vmatpush2.xpose.msra.mxu1 %v1050_v1  ;;  %v1667_v0 = vpop.f32.mrf.mxu0  ;;  %v1598_v1 = vpop.f32.mrf.mxu1 }
 0x40a   :  { %2213 = vmatprep.subr.mxu0 %v1041_v2  ;;  %2284 = vmatprep.subr.mxu1 %v1043_v50 }
 0x40b   :  { %v1738_v2 = vpop.f32.mrf.mxu1  ;;  %v1669_v50 = vpop.f32.mrf.mxu0 }
 0x40d   :  { %2214 = vmatpush2.xpose.msra.mxu0 %v1040_v3  ;;  %2285 = vmatpush2.xpose.msra.mxu1 %v1042_v4  ;;  %v1092_v3 = vld [vmem:[#allocation7] sm:$0xff]  ;;  %v1809_v4 = vpop.f32.mrf.mxu0 }
 0x40e   :  { %2215 = vmatprep.subr.mxu0 %v1033_v5  ;;  %2286 = vmatprep.subr.mxu1 %v1035_v6  ;;  %v1146_v5 = vrot.slane %v1092_v3, %v2630_v12  ;;  %v1740_v6 = vpop.f32.mrf.mxu1 }
 0x411   :  { %2216 = vmatpush2.xpose.msra.mxu0 %v1032_v53  ;;  %2287 = vmatpush2.xpose.msra.mxu1 %v1034_v54  ;;  %v1138_v53 = vrot.slane %v1092_v3, %v2627_v11 }
 0x412   :  { %2217 = vmatprep.subr.mxu0 %v1025_v7  ;;  %2288 = vmatprep.subr.mxu1 %v1027_v8  ;;  %v1880_v7 = vpop.f32.mrf.mxu1  ;;  %v1811_v8 = vpop.f32.mrf.mxu0 }
 0x415   :  { %2218 = vmatpush2.xpose.msra.mxu0 %v1024_v9  ;;  %2289 = vmatpush2.xpose.msra.mxu1 %v1026_v10  ;;  %v1158_v9 = vrot.slane %v1092_v3, %v2633_v17 }
 0x416   :  { %2219 = vmatprep.subr.mxu0 %v1017_v13  ;;  %2290 = vmatprep.subr.mxu1 %v1019_v14  ;;  %v1526_v13 = vadd.f32 %v1525_v58, %v1146_v5  ;;  %v1951_v14 = vpop.f32.mrf.mxu0 }
 0x419   :  { %2220 = vmatpush2.xpose.msra.mxu0 %v1016_v15  ;;  %2291 = vmatpush2.xpose.msra.mxu1 %v1018_v16  ;;  %v1154_v15 = vrot.slane %v1092_v3, %v2659_v51  ;;  %v1242_v16 = vadd.f32 %v1241_v44, %v1138_v53 }
 0x41a   :  { %2221 = vmatprep.subr.mxu0 %v1009_v21  ;;  %2292 = vmatprep.subr.mxu1 %v1011_v22  ;;  %v1882_v22 = vpop.f32.mrf.mxu1 }
 0x41d   :  { %2222 = vmatpush2.xpose.msra.mxu0 %v1008_v23  ;;  %2293 = vmatpush2.xpose.msra.mxu1 %v1010_v24  ;;  %v1812_v23 = vadd.f32 %v1811_v8, %v1158_v9 }
 0x41e   :  { %2223 = vmatprep.subr.mxu0 %v1001_v27  ;;  %2294 = vmatprep.subr.mxu1 %v1003_v28  ;;  %v1597_v27 = vadd.f32 %v1596_v62, %v1526_v13 }
 0x421   :  { %2224 = vmatpush2.xpose.msra.mxu0 %v1000_v29  ;;  %2295 = vmatpush2.xpose.msra.mxu1 %v1002_v30  ;;  %v2022_v29 = vpop.f32.mrf.mxu1  ;;  %v1953_v30 = vpop.f32.mrf.mxu0 }
 0x422   :  { %2225 = vmatprep.subr.mxu0 %v993_v31  ;;  %2296 = vmatprep.subr.mxu1 %v995_v32  ;;  %v1810_v31 = vadd.f32 %v1809_v4, %v1154_v15  ;;  %v1313_v32 = vadd.f32 %v1312_v45, %v1242_v16 }
 0x425   :  { %2226 = vmatpush2.xpose.msra.mxu0 %v992_v33  ;;  %2297 = vmatpush2.xpose.msra.mxu1 %v994_v34  ;;  %v1668_v34 = vadd.f32 %v1667_v0, %v1597_v27 }
 0x426   :  { %2227 = vmatprep.subr.mxu0 %v985_v35  ;;  %2298 = vmatprep.subr.mxu1 %v987_v18  ;;  %v2311_v18 = vld [vmem:[#allocation8] sm:$0xff] }
 0x427   :  { %v2320_v44 = vrot.slane %v2311_v18, %v2609_v46  ;;  %v1739_v45 = vadd.f32 %v1738_v2, %v1668_v34  ;;  %v2340_v8 = vrot.slane %v2311_v18, %v2662_v52 }
 0x429   :  { %2228 = vmatpush2.xpose.msra.mxu0 %v984_v36  ;;  %2299 = vmatpush2.xpose.msra.mxu1 %v986_v19  ;;  %v1883_v36 = vadd.f32 %v1882_v22, %v1812_v23  ;;  %v1162_v19 = vrot.slane %v1092_v3, %v2662_v52 }
 0x42a   :  { %2229 = vmatprep.subr.mxu0 %v977_v37  ;;  %2300 = vmatprep.subr.mxu1 %v979_v38  ;;  %v1384_v37 = vadd.f32 %v1383_v49, %v1313_v32  ;;  %v2316_v49 = vrot.slane %v2311_v18, %v2627_v11 }
 0x42d   :  { %2230 = vmatpush2.xpose.msra.mxu0 %v976_v39  ;;  %2301 = vmatpush2.xpose.msra.mxu1 %v978_v40  ;;  %v2328_v39 = vrot.slane %v2311_v18, %v2612_v47  ;;  %v2024_v40 = vpop.f32.mrf.mxu1 }
 0x42e   :  { %2231 = vmatprep.subr.mxu0 %v969_v25  ;;  %2302 = vmatprep.subr.mxu1 %v971_v26  ;;  %v1881_v25 = vadd.f32 %v1880_v7, %v1810_v31  ;;  %v1954_v26 = vadd.f32 %v1953_v30, %v1883_v36 }
 0x430   :  { %v1952_v58 = vadd.f32 %v1951_v14, %v1881_v25 }
 0x431   :  { %2232 = vmatpush2.xpose.msra.mxu0 %v968_v42  ;;  %2303 = vmatpush2.xpose.msra.mxu1 %v970_v43  ;;  %v1166_v42 = vrot.slane %v1092_v3, %v2644_v20 }
 0x432   :  { %v2023_v2 = vadd.f32 %v2022_v29, %v1952_v58 }
 0x434   :  { %2234 = vmatmul.mubr.f32.vlgmr.msra.gmra.mxu0 %v2666_v59  ;;  %2305 = vmatmul.mubr.f32.vlgmr.msra.gmra.mxu1 %v2670_v60  ;;  %v1150_v59 = vrot.slane %v1092_v3, %v2612_v47  ;;  %v1142_v60 = vrot.slane %v1092_v3, %v2609_v46  ;;  %v2025_v47 = vadd.f32 %v2024_v40, %v1954_v26  ;;  %v2567_v3 = vmov 1966171168  }
 0x436   :  { %v1528_v54 = vadd.f32 %v1527_v63, %v1150_v59  ;;  %v1244_v10 = vadd.f32 %v1243_v48, %v1142_v60  ;;  %v2324_v48 = vrot.slane %v2311_v18, %v2630_v12  ;;  %v1455_v63 = vadd.f32 %v1454_v56, %v1384_v37 }
 0x437   :  { %v2332_v12 = vrot.slane %v2311_v18, %v2659_v51 }
 0x438   :  { %v1599_v21 = vadd.f32 %v1598_v1, %v1528_v54  ;;  %v1315_v24 = vadd.f32 %v1314_v55, %v1244_v10  ;;  %v2336_v1 = vrot.slane %v2311_v18, %v2633_v17  ;;  %v2355_v4 = vadd.f32 %v2324_v48, %v1739_v45 }
 0x439   :  { %v2353_v5 = vadd.f32 %v2316_v49, %v1455_v63  ;;  %v2357_v14 = vadd.f32 %v2332_v12, %v2023_v2 }
 0x43a   :  { %v1670_v28 = vadd.f32 %v1669_v50, %v1599_v21  ;;  %v1386_v33 = vadd.f32 %v1385_v57, %v1315_v24  ;;  %v2358_v54 = vadd.f32 %v2336_v1, %v2025_v47  ;;  %v2363_v10 = vmax.f32 %v2355_v4, 0.0 }
 0x43b   :  { %v2344_v21 = vrot.slane %v2311_v18, %v2644_v20  ;;  %v2361_v51 = vmax.f32 %v2353_v5, 0.0  ;;  %v2365_v31 = vmax.f32 %v2357_v14, 0.0 }
 0x43c   :  { %v1741_v38 = vadd.f32 %v1740_v6, %v1670_v28  ;;  %v1457_v43 = vadd.f32 %v1456_v61, %v1386_v33  ;;  %v2382_v61 = vunpack.c.l.s4 %v2567_v3  ;;  %v2366_v24 = vmax.f32 %v2358_v54, 0.0 }
 0x43e   :  { %v2356_v0 = vadd.f32 %v2328_v39, %v1741_v38  ;;  %v2354_v59 = vadd.f32 %v2320_v44, %v1457_v43  ;;  %v2383_v9 = vunpack.c.0.s8 %v2382_v61  ;;  %v2379_v33 = vcombine.low %v2365_v31, %v2366_v24 }
 0x440   :  { %v2364_v6 = vmax.f32 %v2356_v0, 0.0  ;;  %v2362_v17 = vmax.f32 %v2354_v59, 0.0  ;;  %v2386_v30 = vsub.s32 %v2383_v9, %v2606_v41 }
 0x442   :  { %v2378_v23 = vcombine.low %v2363_v10, %v2364_v6  ;;  %v2377_v29 = vcombine.low %v2361_v51, %v2362_v17  ;;  %v2401_v37 = vrot.slane %v2379_v33, %v2386_v30 }
 0x444   :  { %v2394_v32 = vrot.slane %v2378_v23, %v2386_v30  ;;  %v2387_v36 = vrot.slane %v2377_v29, %v2386_v30 }
 0x446   :  { %v2409_v20 = vcombine.low %v2387_v36, %v2394_v32 }
 0x448   :  { %v2417_v39 = vrot.slane %v2409_v20, %v2386_v30 }
 0x474   :  { %v2093_v35 = vpop.f32.mrf.mxu0  ;;  %v2164_v55 = vpop.f32.mrf.mxu1 }
 0x475   :  { %v2094_v62 = vadd.f32 %v2093_v35, %v1162_v19 }
 0x476   :  { %v2095_v57 = vpop.f32.mrf.mxu0  ;;  %v2166_v46 = vpop.f32.mrf.mxu1 }
 0x477   :  { %v2096_v50 = vadd.f32 %v2095_v57, %v1166_v42  ;;  %v2165_v60 = vadd.f32 %v2164_v55, %v2094_v62 }
 0x479   :  { %v2167_v11 = vadd.f32 %v2166_v46, %v2096_v50 }
 0x4f4   :  { %v2235_v53 = vpop.f32.mrf.mxu0  ;;  %v2306_v56 = vpop.f32.mrf.mxu1 }
 0x4f5   :  { %v2236_v7 = vadd.f32 %v2235_v53, %v2165_v60 }
 0x4f6   :  { %v2237_v13 = vpop.f32.mrf.mxu0  ;;  %v2308_v22 = vpop.f32.mrf.mxu1 }
 0x4f7   :  { %v2307_v15 = vadd.f32 %v2306_v56, %v2236_v7  ;;  %v2238_v16 = vadd.f32 %v2237_v13, %v2167_v11 }
 0x4f9   :  { %v2359_v27 = vadd.f32 %v2340_v8, %v2307_v15  ;;  %v2309_v28 = vadd.f32 %v2308_v22, %v2238_v16 }
 0x4fb   :  { %v2360_v52 = vadd.f32 %v2344_v21, %v2309_v28  ;;  %v2367_v34 = vmax.f32 %v2359_v27, 0.0 }
 0x4fd   :  { %v2368_v35 = vmax.f32 %v2360_v52, 0.0 }
 0x4ff   :  { %v2380_v19 = vcombine.low %v2367_v34, %v2368_v35 }
 0x501   :  { %v2408_v38 = vrot.slane %v2380_v19, %v2386_v30 }
 0x503   :  { %v2410_v18 = vcombine.low %v2401_v37, %v2408_v38 }
 0x505   :  { %v2424_v40 = vrot.slane %v2410_v18, %v2386_v30 }
 0x507   :  { %v2425_v25 = vcombine.low %v2417_v39, %v2424_v40 }
 0x509   :  { %2427 = vst [vmem:[#allocation10] sm:$0xff] %v2425_v25 }
 0x50a   :  { %2544 = shalt.err (!%p2541_p10)
}
 0x50b   :  { %2437 = dma.vmem_to_hbm [thread:$0]  %s2435_s3, 128, %s2722_s4, [#allocation4]  }
 0x50c   :  { %2559 = dma.done.wait [#allocation4], 128  }
 0x50d   :  { %2560 = vsyncadd [#allocation4], 4294967168 }
 0x50e   :  { %2441 = vsyncpa [#allocation3], 1 }
 0x50f   :  { %2442 = vsyncpa [#allocation6], 1 }
 0x510   :  { %2443 = vsyncpa [#allocation9], 1 }
 0x511   :  { %2444 = vsyncpa [#allocation4], 1 }

</bundles_post_ra>
